<compile_context>
chip_gen: v6e
topology: v6e:2x2x1
jax: 0.10.0
libtpu: 0.0.40
codegen_flags: <defaults>
</compile_context>

<pallas_src>
import functools

import numpy as np
import jax
import jax.numpy as jnp
from jax.experimental import pallas as pl
from jax.experimental.pallas import tpu as pltpu


# ----------------------------------------------------------------------------
# Geometry (batch=2, 4x16x16 input, AlexNet-style split model)
# ----------------------------------------------------------------------------
N = 2
CIN, C1, C2 = 4, 8, 16
HW = 16
HIDDEN, NCLASS = 32, 10

# Layer-1 padded-flat layout: channel-major rows, spatial (18x18) flattened on
# lanes, stored at lane offset X_OFF inside a 768-wide, zero-filled slab.
HP1, WP1 = HW + 2, HW + 2            # 18 x 18
L1 = N * HP1 * WP1                   # 648
X_OFF = 32                           # headroom so negative tap offsets stay >= 0
X_WIDTH = 768                        # multiple of 128
Q1 = 640                             # conv1/pool1 compute width (covers all valid q)

# Layer-2 padded-flat layout (after pool1): 8x8 spatial + pad -> 10x10.
HP2, WP2 = 10, 10
L2 = N * HP2 * WP2                   # 200
A2_OFF = 16
A2_WIDTH = 256
Q2 = 192                             # conv2/pool2 compute width

FC_LANES = 32                        # pooled features laid out as lane = hw*2 + n


# ----------------------------------------------------------------------------
# Fused forward kernel (single invocation, everything resident in VMEM)
# ----------------------------------------------------------------------------
def _fused_forward_kernel(x_ref, w1_ref, b1_ref, g1_ref, w2_ref, b2_ref,
                          g2_ref, w3_ref, b3_ref, w4_ref, b4_ref,
                          out_ref, act1, act2, act3, fcin):
    f32 = jnp.float32

    def conv3x3(w_ref, src_ref, base, width, wp, cout):
        # transposed im2col: acc[cout, q] = sum_taps W_tap @ src[:, q + off_tap]
        acc = jnp.zeros((cout, width), f32)
        for t in range(9):
            a, b = divmod(t, 3)
            off = (a - 1) * wp + (b - 1)
            acc = acc + jnp.dot(
                w_ref[t], src_ref[:, base + off: base + off + width],
                preferred_element_type=f32)
        return acc

    # ---- conv1 + bias + ReLU (lane-dense (8, 640)) -------------------------
    c1 = jnp.maximum(conv3x3(w1_ref, x_ref, X_OFF, Q1, WP1, C1) + b1_ref[...], 0.0)
    act1[:, Q1:X_WIDTH] = jnp.zeros((C1, X_WIDTH - Q1), f32)   # keep pool reads finite
    act1[:, 0:Q1] = c1

    # ---- pool1: max of 4 shifted windows, then compact + re-pad via G1 -----
    p1 = jnp.maximum(
        jnp.maximum(act1[:, 0:Q1], act1[:, 1:1 + Q1]),
        jnp.maximum(act1[:, WP1:WP1 + Q1], act1[:, WP1 + 1:WP1 + 1 + Q1]))
    act2[...] = jnp.dot(p1, g1_ref[...], preferred_element_type=f32)   # (8, 256)

    # ---- conv2 + bias + ReLU (lane-dense (16, 192)) ------------------------
    c2 = jnp.maximum(conv3x3(w2_ref, act2, A2_OFF, Q2, WP2, C2) + b2_ref[...], 0.0)
    act3[:, Q2:A2_WIDTH] = jnp.zeros((C2, A2_WIDTH - Q2), f32)
    act3[:, 0:Q2] = c2

    # ---- pool2: shifted-window max, compact to (C2, lane = hw*2 + n) -------
    p2 = jnp.maximum(
        jnp.maximum(act3[:, 0:Q2], act3[:, 1:1 + Q2]),
        jnp.maximum(act3[:, WP2:WP2 + Q2], act3[:, WP2 + 1:WP2 + 1 + Q2]))
    fcin[...] = jnp.dot(p2, g2_ref[...], preferred_element_type=f32)   # (16, 32)

    # ---- fc1 + ReLU, transposed (hidden, batch) ----------------------------
    # Contract over the flattened (c2, hw) features as 16 per-position matmuls
    # so channels stay on sublanes and no in-kernel transpose is needed.
    h1 = jnp.zeros((HIDDEN, N), f32)
    for hw in range(16):
        h1 = h1 + jnp.dot(w3_ref[hw], fcin[:, 2 * hw: 2 * hw + 2],
                          preferred_element_type=f32)
    h1 = jnp.maximum(h1 + b3_ref[...], 0.0)

    # ---- fc2 -> logits^T (NCLASS, N) ---------------------------------------
    out_ref[...] = jnp.dot(w4_ref[...], h1, preferred_element_type=f32) + b4_ref[...]


def _fused_forward_call(x_prep, kp):
    return pl.pallas_call(
        _fused_forward_kernel,
        out_shape=jax.ShapeDtypeStruct((NCLASS, N), jnp.float32),
        scratch_shapes=[
            pltpu.VMEM((C1, X_WIDTH), jnp.float32),    # conv1 output (padded-flat)
            pltpu.VMEM((C1, A2_WIDTH), jnp.float32),   # pooled + re-padded layer-2 input
            pltpu.VMEM((C2, A2_WIDTH), jnp.float32),   # conv2 output (padded-flat)
            pltpu.VMEM((C2, FC_LANES), jnp.float32),   # pooled features (c, hw*2 + n)
        ],
    )(x_prep, kp["w1t"], kp["b1"], kp["g1"], kp["w2t"], kp["b2"],
      kp["g2"], kp["w3s"], kp["b3"], kp["w4t"], kp["b4"])


# ----------------------------------------------------------------------------
# One-time parameter / constant packing (all transposes live here, not at runtime)
# ----------------------------------------------------------------------------
def init_params(key):
    """Parameters in the original (torch-like) layouts."""
    ks = jax.random.split(key, 8)
    s = 0.05
    return {
        "w1": s * jax.random.normal(ks[0], (3 * 3 * CIN, C1), jnp.float32),
        "b1": s * jax.random.normal(ks[1], (1, C1), jnp.float32),
        "w2": s * jax.random.normal(ks[2], (3 * 3 * C1, C2), jnp.float32),
        "b2": s * jax.random.normal(ks[3], (1, C2), jnp.float32),
        "w3": s * jax.random.normal(ks[4], (C2 * 4 * 4, HIDDEN), jnp.float32),
        "b3": s * jax.random.normal(ks[5], (1, HIDDEN), jnp.float32),
        "w4": s * jax.random.normal(ks[6], (HIDDEN, NCLASS), jnp.float32),
        "b4": s * jax.random.normal(ks[7], (1, NCLASS), jnp.float32),
    }


def _make_g1():
    """pooled-value position (layer-1 padded-flat) -> layer-2 padded-flat column."""
    g = np.zeros((Q1, A2_WIDTH), np.float32)
    for n in range(N):
        for ho in range(HW // 2):
            for wo in range(HW // 2):
                q = n * HP1 * WP1 + (2 * ho + 1) * WP1 + (2 * wo + 1)
                dest = n * HP2 * WP2 + (ho + 1) * WP2 + (wo + 1)
                g[q, A2_OFF + dest] = 1.0
    return jnp.asarray(g)


def _make_g2():
    """pooled-value position (layer-2 padded-flat) -> fc-input lane hw*2 + n."""
    g = np.zeros((Q2, FC_LANES), np.float32)
    for n in range(N):
        for ho in range(4):
            for wo in range(4):
                q = n * HP2 * WP2 + (2 * ho + 1) * WP2 + (2 * wo + 1)
                g[q, (ho * 4 + wo) * N + n] = 1.0
    return jnp.asarray(g)


def pack_params(params):
    # conv weights: (kh*kw*Cin, Cout) -> per-tap (9, Cout, Cin)
    w1t = params["w1"].reshape(3, 3, CIN, C1).transpose(0, 1, 3, 2).reshape(9, C1, CIN)
    w2t = params["w2"].reshape(3, 3, C1, C2).transpose(0, 1, 3, 2).reshape(9, C2, C1)
    # fc1 weight rows are in torch-flatten order f = c*16 + (ho*4+wo);
    # repack to [hw, k, c] so the kernel never has to transpose activations.
    w3s = params["w3"].reshape(C2, 16, HIDDEN).transpose(1, 2, 0)
    return {
        "w1t": w1t, "b1": params["b1"].reshape(C1, 1),
        "g1": _make_g1(),
        "w2t": w2t, "b2": params["b2"].reshape(C2, 1),
        "g2": _make_g2(),
        "w3s": w3s, "b3": params["b3"].reshape(HIDDEN, 1),
        "w4t": params["w4"].T, "b4": params["b4"].reshape(NCLASS, 1),
    }


# ----------------------------------------------------------------------------
# Forward wrapper (input layout prep + single pallas_call + final tiny .T)
# ----------------------------------------------------------------------------
def _prep_input(x_nchw):
    """NCHW -> channel-major, spatially padded, flattened slab (CIN, X_WIDTH)."""
    xc = jnp.transpose(x_nchw, (1, 0, 2, 3))                 # (C, N, H, W)
    xp = jnp.pad(xc, ((0, 0), (0, 0), (1, 1), (1, 1)))       # (C, N, 18, 18)
    flat = xp.reshape(CIN, L1)
    return jnp.pad(flat, ((0, 0), (X_OFF, X_WIDTH - X_OFF - L1)))


@jax.jit
def forward(packed, x_nchw):
    x_prep = _prep_input(x_nchw)
    logits_t = _fused_forward_call(x_prep, packed)           # (NCLASS, N)
    return logits_t.T                                        # (N, NCLASS)


# ----------------------------------------------------------------------------
# Pure-JAX reference (same math, torch-style layouts) for a numerical check
# ----------------------------------------------------------------------------
def _reference_forward(params, x_nchw):
    hi = jax.lax.Precision.HIGHEST

    def im2col(x):
        n, h, w, c = x.shape
        xp = jnp.pad(x, ((0, 0), (1, 1), (1, 1), (0, 0)))
        cols = [xp[:, a:a + h, b:b + w, :] for a in range(3) for b in range(3)]
        patches = jnp.stack(cols, axis=3)                    # (n, h, w, 9, c)
        return patches.reshape(n * h * w, 9 * c), (n, h, w)

    def conv_relu(x, w, b):
        cols, (n, h, wd) = im2col(x)
        out = jnp.maximum(jnp.dot(cols, w, precision=hi) + b, 0.0)
        return out.reshape(n, h, wd, w.shape[1])

    def pool(x):
        n, h, w, c = x.shape
        return x.reshape(n, h // 2, 2, w // 2, 2, c).max(axis=(2, 4))

    x = jnp.transpose(x_nchw, (0, 2, 3, 1))
    x = pool(conv_relu(x, params["w1"], params["b1"]))
    x = pool(conv_relu(x, params["w2"], params["b2"]))
    n = x.shape[0]
    x = jnp.transpose(x, (0, 3, 1, 2)).reshape(n, -1)        # torch.flatten order
    x = jnp.maximum(jnp.dot(x, params["w3"], precision=hi) + params["b3"], 0.0)
    return jnp.dot(x, params["w4"], precision=hi) + params["b4"]


if __name__ == "__main__":
    key = jax.random.PRNGKey(0)
    k_param, k_x = jax.random.split(key)
    params = init_params(k_param)
    packed = pack_params(params)
    x = jax.random.normal(k_x, (N, CIN, HW, HW), jnp.float32)   # NCHW input

    out = jax.block_until_ready(forward(packed, x))
    ref = jax.block_until_ready(_reference_forward(params, x))

    assert out.shape == (N, NCLASS) and out.dtype == jnp.float32
    max_err = float(jnp.max(jnp.abs(out - ref)))
    assert jnp.allclose(out, ref, rtol=1e-2, atol=1e-3), f"max abs err = {max_err}"
    print("KERNEL_OK")
</pallas_src>

<mosaic_0001>
module attributes {stable_mosaic.version = 11 : i64} {
  func.func @_fused_forward_kernel(%arg0: memref<4x768xf32, #tpu.memory_space<vmem>>, %arg1: memref<9x8x4xf32, #tpu.memory_space<vmem>>, %arg2: memref<8x1xf32, #tpu.memory_space<vmem>>, %arg3: memref<640x256xf32, #tpu.memory_space<vmem>>, %arg4: memref<9x16x8xf32, #tpu.memory_space<vmem>>, %arg5: memref<16x1xf32, #tpu.memory_space<vmem>>, %arg6: memref<192x32xf32, #tpu.memory_space<vmem>>, %arg7: memref<16x32x16xf32, #tpu.memory_space<vmem>>, %arg8: memref<32x1xf32, #tpu.memory_space<vmem>>, %arg9: memref<10x32xf32, #tpu.memory_space<vmem>>, %arg10: memref<10x1xf32, #tpu.memory_space<vmem>>, %arg11: memref<10x2xf32, #tpu.memory_space<vmem>>, %arg12: memref<8x768xf32, #tpu.memory_space<vmem>>, %arg13: memref<8x256xf32, #tpu.memory_space<vmem>>, %arg14: memref<16x256xf32, #tpu.memory_space<vmem>>, %arg15: memref<16x32xf32, #tpu.memory_space<vmem>>) attributes {dimension_semantics = [], scalar_prefetch = 0 : i64, scratch_operands = 4 : i64, tpu.core_type = #tpu.core_type<tc>} {
    %cst = arith.constant 0.000000e+00 : f32
    %0 = vector.broadcast %cst : f32 to vector<8x640xf32>
    %c0 = arith.constant 0 : index
    %c0_0 = arith.constant 0 : index
    %c0_1 = arith.constant 0 : index
    %1 = vector.load %arg1[%c0, %c0_0, %c0_1] : memref<9x8x4xf32, #tpu.memory_space<vmem>>, vector<1x8x4xf32>
    %2 = vector.shape_cast %1 : vector<1x8x4xf32> to vector<8x4xf32>
    %c0_2 = arith.constant 0 : index
    %c13 = arith.constant 13 : index
    %3 = vector.load %arg0[%c0_2, %c13] : memref<4x768xf32, #tpu.memory_space<vmem>>, vector<4x640xf32>
    %cst_3 = arith.constant dense<0.000000e+00> : vector<8x640xf32>
    %4 = tpu.matmul %2, %3, %cst_3 {dimension_numbers = #tpu.dot_dimension_numbers<[1], [0], [0], [1], [0, 0, 1, 1], [], []>} : vector<8x4xf32>, vector<4x640xf32>, vector<8x640xf32> -> vector<8x640xf32>
    %5 = arith.addf %0, %4 : vector<8x640xf32>
    %c1 = arith.constant 1 : index
    %c0_4 = arith.constant 0 : index
    %c0_5 = arith.constant 0 : index
    %6 = vector.load %arg1[%c1, %c0_4, %c0_5] : memref<9x8x4xf32, #tpu.memory_space<vmem>>, vector<1x8x4xf32>
    %7 = vector.shape_cast %6 : vector<1x8x4xf32> to vector<8x4xf32>
    %c0_6 = arith.constant 0 : index
    %c14 = arith.constant 14 : index
    %8 = vector.load %arg0[%c0_6, %c14] : memref<4x768xf32, #tpu.memory_space<vmem>>, vector<4x640xf32>
    %cst_7 = arith.constant dense<0.000000e+00> : vector<8x640xf32>
    %9 = tpu.matmul %7, %8, %cst_7 {dimension_numbers = #tpu.dot_dimension_numbers<[1], [0], [0], [1], [0, 0, 1, 1], [], []>} : vector<8x4xf32>, vector<4x640xf32>, vector<8x640xf32> -> vector<8x640xf32>
    %10 = arith.addf %5, %9 : vector<8x640xf32>
    %c2 = arith.constant 2 : index
    %c0_8 = arith.constant 0 : index
    %c0_9 = arith.constant 0 : index
    %11 = vector.load %arg1[%c2, %c0_8, %c0_9] : memref<9x8x4xf32, #tpu.memory_space<vmem>>, vector<1x8x4xf32>
    %12 = vector.shape_cast %11 : vector<1x8x4xf32> to vector<8x4xf32>
    %c0_10 = arith.constant 0 : index
    %c15 = arith.constant 15 : index
    %13 = vector.load %arg0[%c0_10, %c15] : memref<4x768xf32, #tpu.memory_space<vmem>>, vector<4x640xf32>
    %cst_11 = arith.constant dense<0.000000e+00> : vector<8x640xf32>
    %14 = tpu.matmul %12, %13, %cst_11 {dimension_numbers = #tpu.dot_dimension_numbers<[1], [0], [0], [1], [0, 0, 1, 1], [], []>} : vector<8x4xf32>, vector<4x640xf32>, vector<8x640xf32> -> vector<8x640xf32>
    %15 = arith.addf %10, %14 : vector<8x640xf32>
    %c3 = arith.constant 3 : index
    %c0_12 = arith.constant 0 : index
    %c0_13 = arith.constant 0 : index
    %16 = vector.load %arg1[%c3, %c0_12, %c0_13] : memref<9x8x4xf32, #tpu.memory_space<vmem>>, vector<1x8x4xf32>
    %17 = vector.shape_cast %16 : vector<1x8x4xf32> to vector<8x4xf32>
    %c0_14 = arith.constant 0 : index
    %c31 = arith.constant 31 : index
    %18 = vector.load %arg0[%c0_14, %c31] : memref<4x768xf32, #tpu.memory_space<vmem>>, vector<4x640xf32>
    %cst_15 = arith.constant dense<0.000000e+00> : vector<8x640xf32>
    %19 = tpu.matmul %17, %18, %cst_15 {dimension_numbers = #tpu.dot_dimension_numbers<[1], [0], [0], [1], [0, 0, 1, 1], [], []>} : vector<8x4xf32>, vector<4x640xf32>, vector<8x640xf32> -> vector<8x640xf32>
    %20 = arith.addf %15, %19 : vector<8x640xf32>
    %c4 = arith.constant 4 : index
    %c0_16 = arith.constant 0 : index
    %c0_17 = arith.constant 0 : index
    %21 = vector.load %arg1[%c4, %c0_16, %c0_17] : memref<9x8x4xf32, #tpu.memory_space<vmem>>, vector<1x8x4xf32>
    %22 = vector.shape_cast %21 : vector<1x8x4xf32> to vector<8x4xf32>
    %c0_18 = arith.constant 0 : index
    %c32 = arith.constant 32 : index
    %23 = vector.load %arg0[%c0_18, %c32] : memref<4x768xf32, #tpu.memory_space<vmem>>, vector<4x640xf32>
    %cst_19 = arith.constant dense<0.000000e+00> : vector<8x640xf32>
    %24 = tpu.matmul %22, %23, %cst_19 {dimension_numbers = #tpu.dot_dimension_numbers<[1], [0], [0], [1], [0, 0, 1, 1], [], []>} : vector<8x4xf32>, vector<4x640xf32>, vector<8x640xf32> -> vector<8x640xf32>
    %25 = arith.addf %20, %24 : vector<8x640xf32>
    %c5 = arith.constant 5 : index
    %c0_20 = arith.constant 0 : index
    %c0_21 = arith.constant 0 : index
    %26 = vector.load %arg1[%c5, %c0_20, %c0_21] : memref<9x8x4xf32, #tpu.memory_space<vmem>>, vector<1x8x4xf32>
    %27 = vector.shape_cast %26 : vector<1x8x4xf32> to vector<8x4xf32>
    %c0_22 = arith.constant 0 : index
    %c33 = arith.constant 33 : index
    %28 = vector.load %arg0[%c0_22, %c33] : memref<4x768xf32, #tpu.memory_space<vmem>>, vector<4x640xf32>
    %cst_23 = arith.constant dense<0.000000e+00> : vector<8x640xf32>
    %29 = tpu.matmul %27, %28, %cst_23 {dimension_numbers = #tpu.dot_dimension_numbers<[1], [0], [0], [1], [0, 0, 1, 1], [], []>} : vector<8x4xf32>, vector<4x640xf32>, vector<8x640xf32> -> vector<8x640xf32>
    %30 = arith.addf %25, %29 : vector<8x640xf32>
    %c6 = arith.constant 6 : index
    %c0_24 = arith.constant 0 : index
    %c0_25 = arith.constant 0 : index
    %31 = vector.load %arg1[%c6, %c0_24, %c0_25] : memref<9x8x4xf32, #tpu.memory_space<vmem>>, vector<1x8x4xf32>
    %32 = vector.shape_cast %31 : vector<1x8x4xf32> to vector<8x4xf32>
    %c0_26 = arith.constant 0 : index
    %c49 = arith.constant 49 : index
    %33 = vector.load %arg0[%c0_26, %c49] : memref<4x768xf32, #tpu.memory_space<vmem>>, vector<4x640xf32>
    %cst_27 = arith.constant dense<0.000000e+00> : vector<8x640xf32>
    %34 = tpu.matmul %32, %33, %cst_27 {dimension_numbers = #tpu.dot_dimension_numbers<[1], [0], [0], [1], [0, 0, 1, 1], [], []>} : vector<8x4xf32>, vector<4x640xf32>, vector<8x640xf32> -> vector<8x640xf32>
    %35 = arith.addf %30, %34 : vector<8x640xf32>
    %c7 = arith.constant 7 : index
    %c0_28 = arith.constant 0 : index
    %c0_29 = arith.constant 0 : index
    %36 = vector.load %arg1[%c7, %c0_28, %c0_29] : memref<9x8x4xf32, #tpu.memory_space<vmem>>, vector<1x8x4xf32>
    %37 = vector.shape_cast %36 : vector<1x8x4xf32> to vector<8x4xf32>
    %c0_30 = arith.constant 0 : index
    %c50 = arith.constant 50 : index
    %38 = vector.load %arg0[%c0_30, %c50] : memref<4x768xf32, #tpu.memory_space<vmem>>, vector<4x640xf32>
    %cst_31 = arith.constant dense<0.000000e+00> : vector<8x640xf32>
    %39 = tpu.matmul %37, %38, %cst_31 {dimension_numbers = #tpu.dot_dimension_numbers<[1], [0], [0], [1], [0, 0, 1, 1], [], []>} : vector<8x4xf32>, vector<4x640xf32>, vector<8x640xf32> -> vector<8x640xf32>
    %40 = arith.addf %35, %39 : vector<8x640xf32>
    %c8 = arith.constant 8 : index
    %c0_32 = arith.constant 0 : index
    %c0_33 = arith.constant 0 : index
    %41 = vector.load %arg1[%c8, %c0_32, %c0_33] : memref<9x8x4xf32, #tpu.memory_space<vmem>>, vector<1x8x4xf32>
    %42 = vector.shape_cast %41 : vector<1x8x4xf32> to vector<8x4xf32>
    %c0_34 = arith.constant 0 : index
    %c51 = arith.constant 51 : index
    %43 = vector.load %arg0[%c0_34, %c51] : memref<4x768xf32, #tpu.memory_space<vmem>>, vector<4x640xf32>
    %cst_35 = arith.constant dense<0.000000e+00> : vector<8x640xf32>
    %44 = tpu.matmul %42, %43, %cst_35 {dimension_numbers = #tpu.dot_dimension_numbers<[1], [0], [0], [1], [0, 0, 1, 1], [], []>} : vector<8x4xf32>, vector<4x640xf32>, vector<8x640xf32> -> vector<8x640xf32>
    %45 = arith.addf %40, %44 : vector<8x640xf32>
    %c0_36 = arith.constant 0 : index
    %c0_37 = arith.constant 0 : index
    %46 = vector.load %arg2[%c0_36, %c0_37] : memref<8x1xf32, #tpu.memory_space<vmem>>, vector<8x1xf32>
    %47 = vector.broadcast %46 : vector<8x1xf32> to vector<8x640xf32>
    %48 = arith.addf %45, %47 : vector<8x640xf32>
    %cst_38 = arith.constant 0.000000e+00 : f32
    %49 = vector.broadcast %cst_38 : f32 to vector<8x640xf32>
    %50 = arith.maximumf %48, %49 : vector<8x640xf32>
    %cst_39 = arith.constant 0.000000e+00 : f32
    %51 = vector.broadcast %cst_39 : f32 to vector<8x128xf32>
    %c0_40 = arith.constant 0 : index
    %c640 = arith.constant 640 : index
    %52 = vector.load %arg12[%c0_40, %c640] : memref<8x768xf32, #tpu.memory_space<vmem>>, vector<8x128xf32>
    tpu.vector_store %arg12[%c0_40, %c640], %51 {strides = array<i32>} : memref<8x768xf32, #tpu.memory_space<vmem>>, vector<8x128xf32>,
    %c0_41 = arith.constant 0 : index
    %c0_42 = arith.constant 0 : index
    %53 = vector.load %arg12[%c0_41, %c0_42] : memref<8x768xf32, #tpu.memory_space<vmem>>, vector<8x640xf32>
    tpu.vector_store %arg12[%c0_41, %c0_42], %50 {strides = array<i32>} : memref<8x768xf32, #tpu.memory_space<vmem>>, vector<8x640xf32>,
    %c0_43 = arith.constant 0 : index
    %c0_44 = arith.constant 0 : index
    %54 = vector.load %arg12[%c0_43, %c0_44] : memref<8x768xf32, #tpu.memory_space<vmem>>, vector<8x640xf32>
    %c0_45 = arith.constant 0 : index
    %c1_46 = arith.constant 1 : index
    %55 = vector.load %arg12[%c0_45, %c1_46] : memref<8x768xf32, #tpu.memory_space<vmem>>, vector<8x640xf32>
    %56 = arith.maximumf %54, %55 : vector<8x640xf32>
    %c0_47 = arith.constant 0 : index
    %c18 = arith.constant 18 : index
    %57 = vector.load %arg12[%c0_47, %c18] : memref<8x768xf32, #tpu.memory_space<vmem>>, vector<8x640xf32>
    %c0_48 = arith.constant 0 : index
    %c19 = arith.constant 19 : index
    %58 = vector.load %arg12[%c0_48, %c19] : memref<8x768xf32, #tpu.memory_space<vmem>>, vector<8x640xf32>
    %59 = arith.maximumf %57, %58 : vector<8x640xf32>
    %60 = arith.maximumf %56, %59 : vector<8x640xf32>
    %c0_49 = arith.constant 0 : index
    %c0_50 = arith.constant 0 : index
    %61 = vector.load %arg3[%c0_49, %c0_50] : memref<640x256xf32, #tpu.memory_space<vmem>>, vector<640x256xf32>
    %cst_51 = arith.constant dense<0.000000e+00> : vector<8x256xf32>
    %62 = tpu.matmul %60, %61, %cst_51 {dimension_numbers = #tpu.dot_dimension_numbers<[1], [0], [0], [1], [0, 0, 1, 1], [], []>} : vector<8x640xf32>, vector<640x256xf32>, vector<8x256xf32> -> vector<8x256xf32>
    %c0_52 = arith.constant 0 : index
    %c0_53 = arith.constant 0 : index
    %63 = vector.load %arg13[%c0_52, %c0_53] : memref<8x256xf32, #tpu.memory_space<vmem>>, vector<8x256xf32>
    tpu.vector_store %arg13[%c0_52, %c0_53], %62 {strides = array<i32>} : memref<8x256xf32, #tpu.memory_space<vmem>>, vector<8x256xf32>,
    %cst_54 = arith.constant 0.000000e+00 : f32
    %64 = vector.broadcast %cst_54 : f32 to vector<16x192xf32>
    %c0_55 = arith.constant 0 : index
    %c0_56 = arith.constant 0 : index
    %c0_57 = arith.constant 0 : index
    %65 = vector.load %arg4[%c0_55, %c0_56, %c0_57] : memref<9x16x8xf32, #tpu.memory_space<vmem>>, vector<1x16x8xf32>
    %66 = vector.shape_cast %65 : vector<1x16x8xf32> to vector<16x8xf32>
    %c0_58 = arith.constant 0 : index
    %c5_59 = arith.constant 5 : index
    %67 = vector.load %arg13[%c0_58, %c5_59] : memref<8x256xf32, #tpu.memory_space<vmem>>, vector<8x192xf32>
    %cst_60 = arith.constant dense<0.000000e+00> : vector<16x192xf32>
    %68 = tpu.matmul %66, %67, %cst_60 {dimension_numbers = #tpu.dot_dimension_numbers<[1], [0], [0], [1], [0, 0, 1, 1], [], []>} : vector<16x8xf32>, vector<8x192xf32>, vector<16x192xf32> -> vector<16x192xf32>
    %69 = arith.addf %64, %68 : vector<16x192xf32>
    %c1_61 = arith.constant 1 : index
    %c0_62 = arith.constant 0 : index
    %c0_63 = arith.constant 0 : index
    %70 = vector.load %arg4[%c1_61, %c0_62, %c0_63] : memref<9x16x8xf32, #tpu.memory_space<vmem>>, vector<1x16x8xf32>
    %71 = vector.shape_cast %70 : vector<1x16x8xf32> to vector<16x8xf32>
    %c0_64 = arith.constant 0 : index
    %c6_65 = arith.constant 6 : index
    %72 = vector.load %arg13[%c0_64, %c6_65] : memref<8x256xf32, #tpu.memory_space<vmem>>, vector<8x192xf32>
    %cst_66 = arith.constant dense<0.000000e+00> : vector<16x192xf32>
    %73 = tpu.matmul %71, %72, %cst_66 {dimension_numbers = #tpu.dot_dimension_numbers<[1], [0], [0], [1], [0, 0, 1, 1], [], []>} : vector<16x8xf32>, vector<8x192xf32>, vector<16x192xf32> -> vector<16x192xf32>
    %74 = arith.addf %69, %73 : vector<16x192xf32>
    %c2_67 = arith.constant 2 : index
    %c0_68 = arith.constant 0 : index
    %c0_69 = arith.constant 0 : index
    %75 = vector.load %arg4[%c2_67, %c0_68, %c0_69] : memref<9x16x8xf32, #tpu.memory_space<vmem>>, vector<1x16x8xf32>
    %76 = vector.shape_cast %75 : vector<1x16x8xf32> to vector<16x8xf32>
    %c0_70 = arith.constant 0 : index
    %c7_71 = arith.constant 7 : index
    %77 = vector.load %arg13[%c0_70, %c7_71] : memref<8x256xf32, #tpu.memory_space<vmem>>, vector<8x192xf32>
    %cst_72 = arith.constant dense<0.000000e+00> : vector<16x192xf32>
    %78 = tpu.matmul %76, %77, %cst_72 {dimension_numbers = #tpu.dot_dimension_numbers<[1], [0], [0], [1], [0, 0, 1, 1], [], []>} : vector<16x8xf32>, vector<8x192xf32>, vector<16x192xf32> -> vector<16x192xf32>
    %79 = arith.addf %74, %78 : vector<16x192xf32>
    %c3_73 = arith.constant 3 : index
    %c0_74 = arith.constant 0 : index
    %c0_75 = arith.constant 0 : index
    %80 = vector.load %arg4[%c3_73, %c0_74, %c0_75] : memref<9x16x8xf32, #tpu.memory_space<vmem>>, vector<1x16x8xf32>
    %81 = vector.shape_cast %80 : vector<1x16x8xf32> to vector<16x8xf32>
    %c0_76 = arith.constant 0 : index
    %c15_77 = arith.constant 15 : index
    %82 = vector.load %arg13[%c0_76, %c15_77] : memref<8x256xf32, #tpu.memory_space<vmem>>, vector<8x192xf32>
    %cst_78 = arith.constant dense<0.000000e+00> : vector<16x192xf32>
    %83 = tpu.matmul %81, %82, %cst_78 {dimension_numbers = #tpu.dot_dimension_numbers<[1], [0], [0], [1], [0, 0, 1, 1], [], []>} : vector<16x8xf32>, vector<8x192xf32>, vector<16x192xf32> -> vector<16x192xf32>
    %84 = arith.addf %79, %83 : vector<16x192xf32>
    %c4_79 = arith.constant 4 : index
    %c0_80 = arith.constant 0 : index
    %c0_81 = arith.constant 0 : index
    %85 = vector.load %arg4[%c4_79, %c0_80, %c0_81] : memref<9x16x8xf32, #tpu.memory_space<vmem>>, vector<1x16x8xf32>
    %86 = vector.shape_cast %85 : vector<1x16x8xf32> to vector<16x8xf32>
    %c0_82 = arith.constant 0 : index
    %c16 = arith.constant 16 : index
    %87 = vector.load %arg13[%c0_82, %c16] : memref<8x256xf32, #tpu.memory_space<vmem>>, vector<8x192xf32>
    %cst_83 = arith.constant dense<0.000000e+00> : vector<16x192xf32>
    %88 = tpu.matmul %86, %87, %cst_83 {dimension_numbers = #tpu.dot_dimension_numbers<[1], [0], [0], [1], [0, 0, 1, 1], [], []>} : vector<16x8xf32>, vector<8x192xf32>, vector<16x192xf32> -> vector<16x192xf32>
    %89 = arith.addf %84, %88 : vector<16x192xf32>
    %c5_84 = arith.constant 5 : index
    %c0_85 = arith.constant 0 : index
    %c0_86 = arith.constant 0 : index
    %90 = vector.load %arg4[%c5_84, %c0_85, %c0_86] : memref<9x16x8xf32, #tpu.memory_space<vmem>>, vector<1x16x8xf32>
    %91 = vector.shape_cast %90 : vector<1x16x8xf32> to vector<16x8xf32>
    %c0_87 = arith.constant 0 : index
    %c17 = arith.constant 17 : index
    %92 = vector.load %arg13[%c0_87, %c17] : memref<8x256xf32, #tpu.memory_space<vmem>>, vector<8x192xf32>
    %cst_88 = arith.constant dense<0.000000e+00> : vector<16x192xf32>
    %93 = tpu.matmul %91, %92, %cst_88 {dimension_numbers = #tpu.dot_dimension_numbers<[1], [0], [0], [1], [0, 0, 1, 1], [], []>} : vector<16x8xf32>, vector<8x192xf32>, vector<16x192xf32> -> vector<16x192xf32>
    %94 = arith.addf %89, %93 : vector<16x192xf32>
    %c6_89 = arith.constant 6 : index
    %c0_90 = arith.constant 0 : index
    %c0_91 = arith.constant 0 : index
    %95 = vector.load %arg4[%c6_89, %c0_90, %c0_91] : memref<9x16x8xf32, #tpu.memory_space<vmem>>, vector<1x16x8xf32>
    %96 = vector.shape_cast %95 : vector<1x16x8xf32> to vector<16x8xf32>
    %c0_92 = arith.constant 0 : index
    %c25 = arith.constant 25 : index
    %97 = vector.load %arg13[%c0_92, %c25] : memref<8x256xf32, #tpu.memory_space<vmem>>, vector<8x192xf32>
    %cst_93 = arith.constant dense<0.000000e+00> : vector<16x192xf32>
    %98 = tpu.matmul %96, %97, %cst_93 {dimension_numbers = #tpu.dot_dimension_numbers<[1], [0], [0], [1], [0, 0, 1, 1], [], []>} : vector<16x8xf32>, vector<8x192xf32>, vector<16x192xf32> -> vector<16x192xf32>
    %99 = arith.addf %94, %98 : vector<16x192xf32>
    %c7_94 = arith.constant 7 : index
    %c0_95 = arith.constant 0 : index
    %c0_96 = arith.constant 0 : index
    %100 = vector.load %arg4[%c7_94, %c0_95, %c0_96] : memref<9x16x8xf32, #tpu.memory_space<vmem>>, vector<1x16x8xf32>
    %101 = vector.shape_cast %100 : vector<1x16x8xf32> to vector<16x8xf32>
    %c0_97 = arith.constant 0 : index
    %c26 = arith.constant 26 : index
    %102 = vector.load %arg13[%c0_97, %c26] : memref<8x256xf32, #tpu.memory_space<vmem>>, vector<8x192xf32>
    %cst_98 = arith.constant dense<0.000000e+00> : vector<16x192xf32>
    %103 = tpu.matmul %101, %102, %cst_98 {dimension_numbers = #tpu.dot_dimension_numbers<[1], [0], [0], [1], [0, 0, 1, 1], [], []>} : vector<16x8xf32>, vector<8x192xf32>, vector<16x192xf32> -> vector<16x192xf32>
    %104 = arith.addf %99, %103 : vector<16x192xf32>
    %c8_99 = arith.constant 8 : index
    %c0_100 = arith.constant 0 : index
    %c0_101 = arith.constant 0 : index
    %105 = vector.load %arg4[%c8_99, %c0_100, %c0_101] : memref<9x16x8xf32, #tpu.memory_space<vmem>>, vector<1x16x8xf32>
    %106 = vector.shape_cast %105 : vector<1x16x8xf32> to vector<16x8xf32>
    %c0_102 = arith.constant 0 : index
    %c27 = arith.constant 27 : index
    %107 = vector.load %arg13[%c0_102, %c27] : memref<8x256xf32, #tpu.memory_space<vmem>>, vector<8x192xf32>
    %cst_103 = arith.constant dense<0.000000e+00> : vector<16x192xf32>
    %108 = tpu.matmul %106, %107, %cst_103 {dimension_numbers = #tpu.dot_dimension_numbers<[1], [0], [0], [1], [0, 0, 1, 1], [], []>} : vector<16x8xf32>, vector<8x192xf32>, vector<16x192xf32> -> vector<16x192xf32>
    %109 = arith.addf %104, %108 : vector<16x192xf32>
    %c0_104 = arith.constant 0 : index
    %c0_105 = arith.constant 0 : index
    %110 = vector.load %arg5[%c0_104, %c0_105] : memref<16x1xf32, #tpu.memory_space<vmem>>, vector<16x1xf32>
    %111 = vector.broadcast %110 : vector<16x1xf32> to vector<16x192xf32>
    %112 = arith.addf %109, %111 : vector<16x192xf32>
    %cst_106 = arith.constant 0.000000e+00 : f32
    %113 = vector.broadcast %cst_106 : f32 to vector<16x192xf32>
    %114 = arith.maximumf %112, %113 : vector<16x192xf32>
    %cst_107 = arith.constant 0.000000e+00 : f32
    %115 = vector.broadcast %cst_107 : f32 to vector<16x64xf32>
    %c0_108 = arith.constant 0 : index
    %c192 = arith.constant 192 : index
    %116 = vector.load %arg14[%c0_108, %c192] : memref<16x256xf32, #tpu.memory_space<vmem>>, vector<16x64xf32>
    tpu.vector_store %arg14[%c0_108, %c192], %115 {strides = array<i32>} : memref<16x256xf32, #tpu.memory_space<vmem>>, vector<16x64xf32>,
    %c0_109 = arith.constant 0 : index
    %c0_110 = arith.constant 0 : index
    %117 = vector.load %arg14[%c0_109, %c0_110] : memref<16x256xf32, #tpu.memory_space<vmem>>, vector<16x192xf32>
    tpu.vector_store %arg14[%c0_109, %c0_110], %114 {strides = array<i32>} : memref<16x256xf32, #tpu.memory_space<vmem>>, vector<16x192xf32>,
    %c0_111 = arith.constant 0 : index
    %c0_112 = arith.constant 0 : index
    %118 = vector.load %arg14[%c0_111, %c0_112] : memref<16x256xf32, #tpu.memory_space<vmem>>, vector<16x192xf32>
    %c0_113 = arith.constant 0 : index
    %c1_114 = arith.constant 1 : index
    %119 = vector.load %arg14[%c0_113, %c1_114] : memref<16x256xf32, #tpu.memory_space<vmem>>, vector<16x192xf32>
    %120 = arith.maximumf %118, %119 : vector<16x192xf32>
    %c0_115 = arith.constant 0 : index
    %c10 = arith.constant 10 : index
    %121 = vector.load %arg14[%c0_115, %c10] : memref<16x256xf32, #tpu.memory_space<vmem>>, vector<16x192xf32>
    %c0_116 = arith.constant 0 : index
    %c11 = arith.constant 11 : index
    %122 = vector.load %arg14[%c0_116, %c11] : memref<16x256xf32, #tpu.memory_space<vmem>>, vector<16x192xf32>
    %123 = arith.maximumf %121, %122 : vector<16x192xf32>
    %124 = arith.maximumf %120, %123 : vector<16x192xf32>
    %c0_117 = arith.constant 0 : index
    %c0_118 = arith.constant 0 : index
    %125 = vector.load %arg6[%c0_117, %c0_118] : memref<192x32xf32, #tpu.memory_space<vmem>>, vector<192x32xf32>
    %cst_119 = arith.constant dense<0.000000e+00> : vector<16x32xf32>
    %126 = tpu.matmul %124, %125, %cst_119 {dimension_numbers = #tpu.dot_dimension_numbers<[1], [0], [0], [1], [0, 0, 1, 1], [], []>} : vector<16x192xf32>, vector<192x32xf32>, vector<16x32xf32> -> vector<16x32xf32>
    %c0_120 = arith.constant 0 : index
    %c0_121 = arith.constant 0 : index
    %127 = vector.load %arg15[%c0_120, %c0_121] : memref<16x32xf32, #tpu.memory_space<vmem>>, vector<16x32xf32>
    tpu.vector_store %arg15[%c0_120, %c0_121], %126 {strides = array<i32>} : memref<16x32xf32, #tpu.memory_space<vmem>>, vector<16x32xf32>,
    %cst_122 = arith.constant 0.000000e+00 : f32
    %128 = vector.broadcast %cst_122 : f32 to vector<32x2xf32>
    %c0_123 = arith.constant 0 : index
    %c0_124 = arith.constant 0 : index
    %c0_125 = arith.constant 0 : index
    %129 = vector.load %arg7[%c0_123, %c0_124, %c0_125] : memref<16x32x16xf32, #tpu.memory_space<vmem>>, vector<1x32x16xf32>
    %130 = vector.shape_cast %129 : vector<1x32x16xf32> to vector<32x16xf32>
    %c0_126 = arith.constant 0 : index
    %c0_127 = arith.constant 0 : index
    %131 = vector.load %arg15[%c0_126, %c0_127] : memref<16x32xf32, #tpu.memory_space<vmem>>, vector<16x2xf32>
    %cst_128 = arith.constant dense<0.000000e+00> : vector<32x2xf32>
    %132 = tpu.matmul %130, %131, %cst_128 {dimension_numbers = #tpu.dot_dimension_numbers<[1], [0], [0], [1], [0, 0, 1, 1], [], []>} : vector<32x16xf32>, vector<16x2xf32>, vector<32x2xf32> -> vector<32x2xf32>
    %133 = arith.addf %128, %132 : vector<32x2xf32>
    %c1_129 = arith.constant 1 : index
    %c0_130 = arith.constant 0 : index
    %c0_131 = arith.constant 0 : index
    %134 = vector.load %arg7[%c1_129, %c0_130, %c0_131] : memref<16x32x16xf32, #tpu.memory_space<vmem>>, vector<1x32x16xf32>
    %135 = vector.shape_cast %134 : vector<1x32x16xf32> to vector<32x16xf32>
    %c0_132 = arith.constant 0 : index
    %c2_133 = arith.constant 2 : index
    %136 = vector.load %arg15[%c0_132, %c2_133] : memref<16x32xf32, #tpu.memory_space<vmem>>, vector<16x2xf32>
    %cst_134 = arith.constant dense<0.000000e+00> : vector<32x2xf32>
    %137 = tpu.matmul %135, %136, %cst_134 {dimension_numbers = #tpu.dot_dimension_numbers<[1], [0], [0], [1], [0, 0, 1, 1], [], []>} : vector<32x16xf32>, vector<16x2xf32>, vector<32x2xf32> -> vector<32x2xf32>
    %138 = arith.addf %133, %137 : vector<32x2xf32>
    %c2_135 = arith.constant 2 : index
    %c0_136 = arith.constant 0 : index
    %c0_137 = arith.constant 0 : index
    %139 = vector.load %arg7[%c2_135, %c0_136, %c0_137] : memref<16x32x16xf32, #tpu.memory_space<vmem>>, vector<1x32x16xf32>
    %140 = vector.shape_cast %139 : vector<1x32x16xf32> to vector<32x16xf32>
    %c0_138 = arith.constant 0 : index
    %c4_139 = arith.constant 4 : index
    %141 = vector.load %arg15[%c0_138, %c4_139] : memref<16x32xf32, #tpu.memory_space<vmem>>, vector<16x2xf32>
    %cst_140 = arith.constant dense<0.000000e+00> : vector<32x2xf32>
    %142 = tpu.matmul %140, %141, %cst_140 {dimension_numbers = #tpu.dot_dimension_numbers<[1], [0], [0], [1], [0, 0, 1, 1], [], []>} : vector<32x16xf32>, vector<16x2xf32>, vector<32x2xf32> -> vector<32x2xf32>
    %143 = arith.addf %138, %142 : vector<32x2xf32>
    %c3_141 = arith.constant 3 : index
    %c0_142 = arith.constant 0 : index
    %c0_143 = arith.constant 0 : index
    %144 = vector.load %arg7[%c3_141, %c0_142, %c0_143] : memref<16x32x16xf32, #tpu.memory_space<vmem>>, vector<1x32x16xf32>
    %145 = vector.shape_cast %144 : vector<1x32x16xf32> to vector<32x16xf32>
    %c0_144 = arith.constant 0 : index
    %c6_145 = arith.constant 6 : index
    %146 = vector.load %arg15[%c0_144, %c6_145] : memref<16x32xf32, #tpu.memory_space<vmem>>, vector<16x2xf32>
    %cst_146 = arith.constant dense<0.000000e+00> : vector<32x2xf32>
    %147 = tpu.matmul %145, %146, %cst_146 {dimension_numbers = #tpu.dot_dimension_numbers<[1], [0], [0], [1], [0, 0, 1, 1], [], []>} : vector<32x16xf32>, vector<16x2xf32>, vector<32x2xf32> -> vector<32x2xf32>
    %148 = arith.addf %143, %147 : vector<32x2xf32>
    %c4_147 = arith.constant 4 : index
    %c0_148 = arith.constant 0 : index
    %c0_149 = arith.constant 0 : index
    %149 = vector.load %arg7[%c4_147, %c0_148, %c0_149] : memref<16x32x16xf32, #tpu.memory_space<vmem>>, vector<1x32x16xf32>
    %150 = vector.shape_cast %149 : vector<1x32x16xf32> to vector<32x16xf32>
    %c0_150 = arith.constant 0 : index
    %c8_151 = arith.constant 8 : index
    %151 = vector.load %arg15[%c0_150, %c8_151] : memref<16x32xf32, #tpu.memory_space<vmem>>, vector<16x2xf32>
    %cst_152 = arith.constant dense<0.000000e+00> : vector<32x2xf32>
    %152 = tpu.matmul %150, %151, %cst_152 {dimension_numbers = #tpu.dot_dimension_numbers<[1], [0], [0], [1], [0, 0, 1, 1], [], []>} : vector<32x16xf32>, vector<16x2xf32>, vector<32x2xf32> -> vector<32x2xf32>
    %153 = arith.addf %148, %152 : vector<32x2xf32>
    %c5_153 = arith.constant 5 : index
    %c0_154 = arith.constant 0 : index
    %c0_155 = arith.constant 0 : index
    %154 = vector.load %arg7[%c5_153, %c0_154, %c0_155] : memref<16x32x16xf32, #tpu.memory_space<vmem>>, vector<1x32x16xf32>
    %155 = vector.shape_cast %154 : vector<1x32x16xf32> to vector<32x16xf32>
    %c0_156 = arith.constant 0 : index
    %c10_157 = arith.constant 10 : index
    %156 = vector.load %arg15[%c0_156, %c10_157] : memref<16x32xf32, #tpu.memory_space<vmem>>, vector<16x2xf32>
    %cst_158 = arith.constant dense<0.000000e+00> : vector<32x2xf32>
    %157 = tpu.matmul %155, %156, %cst_158 {dimension_numbers = #tpu.dot_dimension_numbers<[1], [0], [0], [1], [0, 0, 1, 1], [], []>} : vector<32x16xf32>, vector<16x2xf32>, vector<32x2xf32> -> vector<32x2xf32>
    %158 = arith.addf %153, %157 : vector<32x2xf32>
    %c6_159 = arith.constant 6 : index
    %c0_160 = arith.constant 0 : index
    %c0_161 = arith.constant 0 : index
    %159 = vector.load %arg7[%c6_159, %c0_160, %c0_161] : memref<16x32x16xf32, #tpu.memory_space<vmem>>, vector<1x32x16xf32>
    %160 = vector.shape_cast %159 : vector<1x32x16xf32> to vector<32x16xf32>
    %c0_162 = arith.constant 0 : index
    %c12 = arith.constant 12 : index
    %161 = vector.load %arg15[%c0_162, %c12] : memref<16x32xf32, #tpu.memory_space<vmem>>, vector<16x2xf32>
    %cst_163 = arith.constant dense<0.000000e+00> : vector<32x2xf32>
    %162 = tpu.matmul %160, %161, %cst_163 {dimension_numbers = #tpu.dot_dimension_numbers<[1], [0], [0], [1], [0, 0, 1, 1], [], []>} : vector<32x16xf32>, vector<16x2xf32>, vector<32x2xf32> -> vector<32x2xf32>
    %163 = arith.addf %158, %162 : vector<32x2xf32>
    %c7_164 = arith.constant 7 : index
    %c0_165 = arith.constant 0 : index
    %c0_166 = arith.constant 0 : index
    %164 = vector.load %arg7[%c7_164, %c0_165, %c0_166] : memref<16x32x16xf32, #tpu.memory_space<vmem>>, vector<1x32x16xf32>
    %165 = vector.shape_cast %164 : vector<1x32x16xf32> to vector<32x16xf32>
    %c0_167 = arith.constant 0 : index
    %c14_168 = arith.constant 14 : index
    %166 = vector.load %arg15[%c0_167, %c14_168] : memref<16x32xf32, #tpu.memory_space<vmem>>, vector<16x2xf32>
    %cst_169 = arith.constant dense<0.000000e+00> : vector<32x2xf32>
    %167 = tpu.matmul %165, %166, %cst_169 {dimension_numbers = #tpu.dot_dimension_numbers<[1], [0], [0], [1], [0, 0, 1, 1], [], []>} : vector<32x16xf32>, vector<16x2xf32>, vector<32x2xf32> -> vector<32x2xf32>
    %168 = arith.addf %163, %167 : vector<32x2xf32>
    %c8_170 = arith.constant 8 : index
    %c0_171 = arith.constant 0 : index
    %c0_172 = arith.constant 0 : index
    %169 = vector.load %arg7[%c8_170, %c0_171, %c0_172] : memref<16x32x16xf32, #tpu.memory_space<vmem>>, vector<1x32x16xf32>
    %170 = vector.shape_cast %169 : vector<1x32x16xf32> to vector<32x16xf32>
    %c0_173 = arith.constant 0 : index
    %c16_174 = arith.constant 16 : index
    %171 = vector.load %arg15[%c0_173, %c16_174] : memref<16x32xf32, #tpu.memory_space<vmem>>, vector<16x2xf32>
    %cst_175 = arith.constant dense<0.000000e+00> : vector<32x2xf32>
    %172 = tpu.matmul %170, %171, %cst_175 {dimension_numbers = #tpu.dot_dimension_numbers<[1], [0], [0], [1], [0, 0, 1, 1], [], []>} : vector<32x16xf32>, vector<16x2xf32>, vector<32x2xf32> -> vector<32x2xf32>
    %173 = arith.addf %168, %172 : vector<32x2xf32>
    %c9 = arith.constant 9 : index
    %c0_176 = arith.constant 0 : index
    %c0_177 = arith.constant 0 : index
    %174 = vector.load %arg7[%c9, %c0_176, %c0_177] : memref<16x32x16xf32, #tpu.memory_space<vmem>>, vector<1x32x16xf32>
    %175 = vector.shape_cast %174 : vector<1x32x16xf32> to vector<32x16xf32>
    %c0_178 = arith.constant 0 : index
    %c18_179 = arith.constant 18 : index
    %176 = vector.load %arg15[%c0_178, %c18_179] : memref<16x32xf32, #tpu.memory_space<vmem>>, vector<16x2xf32>
    %cst_180 = arith.constant dense<0.000000e+00> : vector<32x2xf32>
    %177 = tpu.matmul %175, %176, %cst_180 {dimension_numbers = #tpu.dot_dimension_numbers<[1], [0], [0], [1], [0, 0, 1, 1], [], []>} : vector<32x16xf32>, vector<16x2xf32>, vector<32x2xf32> -> vector<32x2xf32>
    %178 = arith.addf %173, %177 : vector<32x2xf32>
    %c10_181 = arith.constant 10 : index
    %c0_182 = arith.constant 0 : index
    %c0_183 = arith.constant 0 : index
    %179 = vector.load %arg7[%c10_181, %c0_182, %c0_183] : memref<16x32x16xf32, #tpu.memory_space<vmem>>, vector<1x32x16xf32>
    %180 = vector.shape_cast %179 : vector<1x32x16xf32> to vector<32x16xf32>
    %c0_184 = arith.constant 0 : index
    %c20 = arith.constant 20 : index
    %181 = vector.load %arg15[%c0_184, %c20] : memref<16x32xf32, #tpu.memory_space<vmem>>, vector<16x2xf32>
    %cst_185 = arith.constant dense<0.000000e+00> : vector<32x2xf32>
    %182 = tpu.matmul %180, %181, %cst_185 {dimension_numbers = #tpu.dot_dimension_numbers<[1], [0], [0], [1], [0, 0, 1, 1], [], []>} : vector<32x16xf32>, vector<16x2xf32>, vector<32x2xf32> -> vector<32x2xf32>
    %183 = arith.addf %178, %182 : vector<32x2xf32>
    %c11_186 = arith.constant 11 : index
    %c0_187 = arith.constant 0 : index
    %c0_188 = arith.constant 0 : index
    %184 = vector.load %arg7[%c11_186, %c0_187, %c0_188] : memref<16x32x16xf32, #tpu.memory_space<vmem>>, vector<1x32x16xf32>
    %185 = vector.shape_cast %184 : vector<1x32x16xf32> to vector<32x16xf32>
    %c0_189 = arith.constant 0 : index
    %c22 = arith.constant 22 : index
    %186 = vector.load %arg15[%c0_189, %c22] : memref<16x32xf32, #tpu.memory_space<vmem>>, vector<16x2xf32>
    %cst_190 = arith.constant dense<0.000000e+00> : vector<32x2xf32>
    %187 = tpu.matmul %185, %186, %cst_190 {dimension_numbers = #tpu.dot_dimension_numbers<[1], [0], [0], [1], [0, 0, 1, 1], [], []>} : vector<32x16xf32>, vector<16x2xf32>, vector<32x2xf32> -> vector<32x2xf32>
    %188 = arith.addf %183, %187 : vector<32x2xf32>
    %c12_191 = arith.constant 12 : index
    %c0_192 = arith.constant 0 : index
    %c0_193 = arith.constant 0 : index
    %189 = vector.load %arg7[%c12_191, %c0_192, %c0_193] : memref<16x32x16xf32, #tpu.memory_space<vmem>>, vector<1x32x16xf32>
    %190 = vector.shape_cast %189 : vector<1x32x16xf32> to vector<32x16xf32>
    %c0_194 = arith.constant 0 : index
    %c24 = arith.constant 24 : index
    %191 = vector.load %arg15[%c0_194, %c24] : memref<16x32xf32, #tpu.memory_space<vmem>>, vector<16x2xf32>
    %cst_195 = arith.constant dense<0.000000e+00> : vector<32x2xf32>
    %192 = tpu.matmul %190, %191, %cst_195 {dimension_numbers = #tpu.dot_dimension_numbers<[1], [0], [0], [1], [0, 0, 1, 1], [], []>} : vector<32x16xf32>, vector<16x2xf32>, vector<32x2xf32> -> vector<32x2xf32>
    %193 = arith.addf %188, %192 : vector<32x2xf32>
    %c13_196 = arith.constant 13 : index
    %c0_197 = arith.constant 0 : index
    %c0_198 = arith.constant 0 : index
    %194 = vector.load %arg7[%c13_196, %c0_197, %c0_198] : memref<16x32x16xf32, #tpu.memory_space<vmem>>, vector<1x32x16xf32>
    %195 = vector.shape_cast %194 : vector<1x32x16xf32> to vector<32x16xf32>
    %c0_199 = arith.constant 0 : index
    %c26_200 = arith.constant 26 : index
    %196 = vector.load %arg15[%c0_199, %c26_200] : memref<16x32xf32, #tpu.memory_space<vmem>>, vector<16x2xf32>
    %cst_201 = arith.constant dense<0.000000e+00> : vector<32x2xf32>
    %197 = tpu.matmul %195, %196, %cst_201 {dimension_numbers = #tpu.dot_dimension_numbers<[1], [0], [0], [1], [0, 0, 1, 1], [], []>} : vector<32x16xf32>, vector<16x2xf32>, vector<32x2xf32> -> vector<32x2xf32>
    %198 = arith.addf %193, %197 : vector<32x2xf32>
    %c14_202 = arith.constant 14 : index
    %c0_203 = arith.constant 0 : index
    %c0_204 = arith.constant 0 : index
    %199 = vector.load %arg7[%c14_202, %c0_203, %c0_204] : memref<16x32x16xf32, #tpu.memory_space<vmem>>, vector<1x32x16xf32>
    %200 = vector.shape_cast %199 : vector<1x32x16xf32> to vector<32x16xf32>
    %c0_205 = arith.constant 0 : index
    %c28 = arith.constant 28 : index
    %201 = vector.load %arg15[%c0_205, %c28] : memref<16x32xf32, #tpu.memory_space<vmem>>, vector<16x2xf32>
    %cst_206 = arith.constant dense<0.000000e+00> : vector<32x2xf32>
    %202 = tpu.matmul %200, %201, %cst_206 {dimension_numbers = #tpu.dot_dimension_numbers<[1], [0], [0], [1], [0, 0, 1, 1], [], []>} : vector<32x16xf32>, vector<16x2xf32>, vector<32x2xf32> -> vector<32x2xf32>
    %203 = arith.addf %198, %202 : vector<32x2xf32>
    %c15_207 = arith.constant 15 : index
    %c0_208 = arith.constant 0 : index
    %c0_209 = arith.constant 0 : index
    %204 = vector.load %arg7[%c15_207, %c0_208, %c0_209] : memref<16x32x16xf32, #tpu.memory_space<vmem>>, vector<1x32x16xf32>
    %205 = vector.shape_cast %204 : vector<1x32x16xf32> to vector<32x16xf32>
    %c0_210 = arith.constant 0 : index
    %c30 = arith.constant 30 : index
    %206 = vector.load %arg15[%c0_210, %c30] : memref<16x32xf32, #tpu.memory_space<vmem>>, vector<16x2xf32>
    %cst_211 = arith.constant dense<0.000000e+00> : vector<32x2xf32>
    %207 = tpu.matmul %205, %206, %cst_211 {dimension_numbers = #tpu.dot_dimension_numbers<[1], [0], [0], [1], [0, 0, 1, 1], [], []>} : vector<32x16xf32>, vector<16x2xf32>, vector<32x2xf32> -> vector<32x2xf32>
    %208 = arith.addf %203, %207 : vector<32x2xf32>
    %c0_212 = arith.constant 0 : index
    %c0_213 = arith.constant 0 : index
    %209 = vector.load %arg8[%c0_212, %c0_213] : memref<32x1xf32, #tpu.memory_space<vmem>>, vector<32x1xf32>
    %210 = vector.broadcast %209 : vector<32x1xf32> to vector<32x2xf32>
    %211 = arith.addf %208, %210 : vector<32x2xf32>
    %cst_214 = arith.constant 0.000000e+00 : f32
    %212 = vector.broadcast %cst_214 : f32 to vector<32x2xf32>
    %213 = arith.maximumf %211, %212 : vector<32x2xf32>
    %c0_215 = arith.constant 0 : index
    %c0_216 = arith.constant 0 : index
    %214 = vector.load %arg9[%c0_215, %c0_216] : memref<10x32xf32, #tpu.memory_space<vmem>>, vector<10x32xf32>
    %cst_217 = arith.constant dense<0.000000e+00> : vector<10x2xf32>
    %215 = tpu.matmul %214, %213, %cst_217 {dimension_numbers = #tpu.dot_dimension_numbers<[1], [0], [0], [1], [0, 0, 1, 1], [], []>} : vector<10x32xf32>, vector<32x2xf32>, vector<10x2xf32> -> vector<10x2xf32>
    %c0_218 = arith.constant 0 : index
    %c0_219 = arith.constant 0 : index
    %216 = vector.load %arg10[%c0_218, %c0_219] : memref<10x1xf32, #tpu.memory_space<vmem>>, vector<10x1xf32>
    %217 = vector.broadcast %216 : vector<10x1xf32> to vector<10x2xf32>
    %218 = arith.addf %215, %217 : vector<10x2xf32>
    %c0_220 = arith.constant 0 : index
    %c0_221 = arith.constant 0 : index
    %219 = vector.load %arg11[%c0_220, %c0_221] : memref<10x2xf32, #tpu.memory_space<vmem>>, vector<10x2xf32>
    tpu.vector_store %arg11[%c0_220, %c0_221], %218 {strides = array<i32>} : memref<10x2xf32, #tpu.memory_space<vmem>>, vector<10x2xf32>,
    return
  }
}

</mosaic_0001>

<bundles_post_ra>
// kernel: forward.1
= control target key start
LH: loop header
LB: loop body
LE: loop exit
PB: predicated region body
PF: predicated region fallthrough
CT: control target
= control target key end

     0   :  { %v6453_v3 = vmov 0.0   ;;  %s6454_s23 = smov 114   ;;  %s6456_s24 = smov 113   ;;  %v6463_v7 = vmov 0   ;;  %vm62_vm0 = vcmask 932864   ;;  %vm72_vm1 = vcmask 1043456   ;;  %s7954_s0 = inlined_call_operand.vmem [shape: f32[4,768], index: 0, kind: input, shape index: {}]   ;;  %s7955_s2 = inlined_call_operand.vmem [shape: f32[8,1], index: 2, kind: input, shape index: {}]   ;;  %s7956_s1 = inlined_call_operand.vmem [shape: f32[9,8,4], index: 1, kind: input, shape index: {}]   ;;  %s7957_s3 = inlined_call_operand.vmem [shape: f32[640,256], index: 3, kind: input, shape index: {}]   ;;  %s7958_s5 = inlined_call_operand.vmem [shape: f32[16,1], index: 5, kind: input, shape index: {}]   ;;  %s7959_s4 = inlined_call_operand.vmem [shape: f32[9,16,8], index: 4, kind: input, shape index: {}]   ;;  %s7960_s6 = inlined_call_operand.vmem [shape: f32[192,32], index: 6, kind: input, shape index: {}]   ;;  %s7961_s7 = inlined_call_operand.vmem [shape: f32[16,32,16], index: 7, kind: input, shape index: {}]   ;;  %s7962_s8 = inlined_call_operand.vmem [shape: f32[32,1], index: 8, kind: input, shape index: {}]   ;;  %s7963_s10 = inlined_call_operand.vmem [shape: f32[10,1], index: 10, kind: input, shape index: {}]   ;;  %s7964_s9 = inlined_call_operand.vmem [shape: f32[10,32], index: 9, kind: input, shape index: {}]   ;;  %s7965_s11 = inlined_call_operand.vmem [shape: f32[10,2], index: 11, kind: output, shape index: {}]  }
   0x1   :  { %v6548_v0 = vld [vmem:[%s7954_s0 + $0x10] sm:$0xff]  ;;  %v6553_v1 = vld [vmem:[%s7954_s0 + $0x8] sm:$0xff]  ;;  %v6558_v2 = vld [vmem:[%s7954_s0] sm:$0xff]  ;;  %147 = vmatprep.mubr.f32.mxu0 %v6453_v3  ;;  %218 = vmatprep.mubr.f32.mxu1 %v6453_v3  ;;  %s6455_s0 = smov 115   ;;  %s6457_s25 = smov 97   ;;  %vm68_vm2 = vcmask 31744  }
   0x2   :  { %58 = vrot.lane.b32.xlu1 %v6548_v0, %s6454_s23  ;;  %54 = vrot.lane.b32.xlu0 %v6553_v1, %s6454_s23  ;;  %v48_v4 = vcombine.high %v6553_v1, %v6553_v1  ;;  %v47_v5 = vcombine.high %v6558_v2, %v6558_v2  ;;  %v49_v6 = vcombine.high %v6548_v0, %v6548_v0  ;;  %s6458_s26 = smov 96   ;;  %s6459_s27 = smov 95   ;;  %v2351_v8 = vld [vmem:[%s7955_s2] sm:$0xff]  ;;  %v5813_v16 = vld [vmem:[%s7956_s1 + $0x8] sm:$0xff]  ;;  %vm307_vm3 = vcmask 941056  }
   0x3   :  { %s6460_s28 = smov 79   ;;  %s6461_s29 = smov 78   ;;  %6423 = vset.pattern.permute.xlu0 %v6463_v7  ;;  %6449 = vset.pattern.permute.xlu1 %v6463_v7  ;;  %vm6464_vm4 = vmmov 0   ;;  %v38_v26 = vld [vmem:[%s7956_s1] sm:$0xff]  ;;  %vm561_vm5 = vcmask 924672   ;;  %v5830_v40 = vld [vmem:[%s7956_s1 + $0x10] sm:$0xff] }
   0x4   :  { %s6462_s30 = smov 77   ;;  %vm820_vm6 = vcmask 793600   ;;  %v5839_v50 = vld [vmem:[%s7956_s1 + $0x18] sm:$0xff]  ;;  %vm1079_vm7 = vcmask 785408   ;;  %vm1338_vm8 = vcmask 777216   ;;  %vm1597_vm9 = vcmask 646144  }
   0x5   :  { %vm1856_vm10 = vcmask 637952   ;;  %vm2115_vm11 = vcmask 629760   ;;  %vm2402_vm12 = vcmask 1039360   ;;  %vm2443_vm13 = vcmask 900096   ;;  %s6467_s2 = smov 122   ;;  %s6469_s14 = smov 121  }
   0x6   :  { %56 = vrot.lane.b32.xlu1 %v48_v4, %s6454_s23  ;;  %52 = vrot.lane.b32.xlu0 %v47_v5, %s6454_s23  ;;  %s6470_s15 = smov 112   ;;  %s6471_s16 = smov 111   ;;  %vm2847_vm14 = vcmask 998400   ;;  %vm2851_vm15 = vcmask 64512  }
   0x7   :  { %s6472_s17 = smov 103   ;;  %s6473_s18 = smov 102  }
   0x8   :  { %s6474_s19 = smov 101   ;;  %s6475_s12 = smov 118  }
   0x9   :  { %s6481_s20 = smov 106   ;;  %s6482_s21 = smov 104  }
   0xa   :  { %297 = vrot.lane.b32.xlu1 %v47_v5, %s6455_s0  ;;  %50 = vrot.lane.b32.xlu0 %v6558_v2, %s6454_s23 }
   0xe   :  { %60 = vrot.lane.b32.xlu1 %v49_v6, %s6454_s23  ;;  %299 = vrot.lane.b32.xlu0 %v6553_v1, %s6455_s0 }
  0x12   :  { %301 = vrot.lane.b32.xlu1 %v48_v4, %s6455_s0  ;;  %295 = vrot.lane.b32.xlu0 %v6558_v2, %s6455_s0 }
  0x16   :  { %305 = vrot.lane.b32.xlu1 %v49_v6, %s6455_s0  ;;  %303 = vrot.lane.b32.xlu0 %v6548_v0, %s6455_s0  ;;  %s6466_s0 = smov 110  }
  0x1a   :  { %553 = vrot.lane.b32.xlu1 %v6553_v1, %s6456_s24  ;;  %551 = vrot.lane.b32.xlu0 %v47_v5, %s6456_s24 }
  0x1e   :  { %557 = vrot.lane.b32.xlu1 %v6548_v0, %s6456_s24  ;;  %555 = vrot.lane.b32.xlu0 %v48_v4, %s6456_s24 }
  0x22   :  { %810 = vrot.lane.b32.xlu1 %v47_v5, %s6457_s25  ;;  %549 = vrot.lane.b32.xlu0 %v6558_v2, %s6456_s24 }
  0x26   :  { %559 = vrot.lane.b32.xlu1 %v49_v6, %s6456_s24  ;;  %812 = vrot.lane.b32.xlu0 %v6553_v1, %s6457_s25 }
  0x2a   :  { %814 = vrot.lane.b32.xlu1 %v48_v4, %s6457_s25  ;;  %808 = vrot.lane.b32.xlu0 %v6558_v2, %s6457_s25 }
  0x2e   :  { %818 = vrot.lane.b32.xlu1 %v49_v6, %s6457_s25  ;;  %816 = vrot.lane.b32.xlu0 %v6548_v0, %s6457_s25 }
  0x32   :  { %1071 = vrot.lane.b32.xlu1 %v6553_v1, %s6458_s26  ;;  %1069 = vrot.lane.b32.xlu0 %v47_v5, %s6458_s26 }
  0x36   :  { %1075 = vrot.lane.b32.xlu1 %v6548_v0, %s6458_s26  ;;  %1073 = vrot.lane.b32.xlu0 %v48_v4, %s6458_s26 }
  0x3a   :  { %1328 = vrot.lane.b32.xlu1 %v47_v5, %s6459_s27  ;;  %1067 = vrot.lane.b32.xlu0 %v6558_v2, %s6458_s26 }
  0x3e   :  { %1077 = vrot.lane.b32.xlu1 %v49_v6, %s6458_s26  ;;  %1330 = vrot.lane.b32.xlu0 %v6553_v1, %s6459_s27 }
  0x42   :  { %1332 = vrot.lane.b32.xlu1 %v48_v4, %s6459_s27  ;;  %1326 = vrot.lane.b32.xlu0 %v6558_v2, %s6459_s27 }
  0x46   :  { %1336 = vrot.lane.b32.xlu1 %v49_v6, %s6459_s27  ;;  %1334 = vrot.lane.b32.xlu0 %v6548_v0, %s6459_s27 }
  0x4a   :  { %1589 = vrot.lane.b32.xlu1 %v6553_v1, %s6460_s28  ;;  %1587 = vrot.lane.b32.xlu0 %v47_v5, %s6460_s28 }
  0x4e   :  { %1593 = vrot.lane.b32.xlu1 %v6548_v0, %s6460_s28  ;;  %1591 = vrot.lane.b32.xlu0 %v48_v4, %s6460_s28 }
  0x52   :  { %1846 = vrot.lane.b32.xlu1 %v47_v5, %s6461_s29  ;;  %1585 = vrot.lane.b32.xlu0 %v6558_v2, %s6460_s28 }
  0x56   :  { %1595 = vrot.lane.b32.xlu1 %v49_v6, %s6460_s28  ;;  %1848 = vrot.lane.b32.xlu0 %v6553_v1, %s6461_s29 }
  0x5a   :  { %1850 = vrot.lane.b32.xlu1 %v48_v4, %s6461_s29  ;;  %1844 = vrot.lane.b32.xlu0 %v6558_v2, %s6461_s29 }
  0x5e   :  { %1854 = vrot.lane.b32.xlu1 %v49_v6, %s6461_s29  ;;  %1852 = vrot.lane.b32.xlu0 %v6548_v0, %s6461_s29 }
  0x62   :  { %2107 = vrot.lane.b32.xlu1 %v6553_v1, %s6462_s30  ;;  %2105 = vrot.lane.b32.xlu0 %v47_v5, %s6462_s30 }
  0x66   :  { %2111 = vrot.lane.b32.xlu1 %v6548_v0, %s6462_s30  ;;  %2109 = vrot.lane.b32.xlu0 %v48_v4, %s6462_s30  ;;  %v5848_v0 = vld [vmem:[%s7956_s1 + $0x20] sm:$0xff] }
  0x6a   :  { %2103 = vrot.lane.b32.xlu0 %v6558_v2, %s6462_s30  ;;  %2113 = vrot.lane.b32.xlu1 %v49_v6, %s6462_s30 }
  0x6e   :  { %2354 = vperm.xlu0 %6423, %v2351_v8  }
  0x74   :  { %v59_v9 = vpop.permute.xlu1 %58  ;;  %v55_v10 = vpop.permute.xlu0 %54 }
  0x78   :  { %v57_v11 = vpop.permute.xlu1 %56  ;;  %v53_v12 = vpop.permute.xlu0 %52 }
  0x79   :  { %v64_v13 = vsel %vm62_vm0, %v53_v12, %v55_v10  ;;  %v66_v14 = vsel %vm62_vm0, %v57_v11, %v59_v9  ;;  %v65_v15 = vsel %vm62_vm0, %v55_v10, %v57_v11  ;;  %v5857_v11 = vld [vmem:[%s7956_s1 + $0x28] sm:$0xff] }
  0x7a   :  { %5814 = vmatprep.subr.msk.mxu0 %vm72_vm1, %v64_v13  ;;  %5817 = vmatprep.subr.msk.mxu1 %vm72_vm1, %v66_v14 }
  0x7b   :  { %5818 = vmatpush1.msk.msra.mxu1 %vm72_vm1, %v65_v15 }
  0x7c   :  { %v298_v17 = vpop.permute.xlu1 %297  ;;  %v51_v18 = vpop.permute.xlu0 %50  ;;  %5819 = vmatmul.mubr.msk.f32.vlgmr.msra.gmra.mxu1 %vm68_vm2, %v5813_v16 }
  0x7d   :  { %v63_v19 = vsel %vm62_vm0, %v51_v18, %v53_v12  ;;  %390 = vmatprep.mubr.f32.mxu1 %v6453_v3 }
  0x7e   :  { %5815 = vmatpush1.msk.msra.mxu0 %vm72_vm1, %v63_v19 }
  0x7f   :  { %6175 = vmatprep.subr.mxu0 %v6453_v3  ;;  %5816 = vmatmul.mubr.msk.f32.vlgmr.msra.gmra.mxu0 %vm68_vm2, %v5813_v16 }
  0x80   :  { %v61_v20 = vpop.permute.xlu1 %60  ;;  %v300_v21 = vpop.permute.xlu0 %299  ;;  %6177 = vmatprep.mubr.msk.f32.mxu0 %vm6464_vm4, %v6453_v3 }
  0x81   :  { %v67_v22 = vsel %vm62_vm0, %v59_v9, %v61_v20  ;;  %v309_v23 = vsel %vm307_vm3, %v298_v17, %v300_v21  ;;  %vm2939_vm0 = vcmask 1006592  }
  0x82   :  { %6176 = vmatpush3.msk.msra.mxu0 %vm72_vm1, %v67_v22  ;;  %5822 = vmatprep.subr.msk.mxu1 %vm72_vm1, %v309_v23 }
  0x83   :  { %6178 = vmatmul.mubr.msk.f32.vlgmr.msra.gmra.mxu0 %vm68_vm2, %v5813_v16 }
  0x84   :  { %v302_v24 = vpop.permute.xlu1 %301  ;;  %v296_v25 = vpop.permute.xlu0 %295  ;;  %461 = vmatprep.mubr.f32.mxu0 %v6453_v3 }
  0x85   :  { %v308_v27 = vsel %vm307_vm3, %v296_v25, %v298_v17  ;;  %v310_v32 = vsel %vm307_vm3, %v300_v21, %v302_v24  ;;  %v5866_v25 = vld [vmem:[%s7956_s1 + $0x30] sm:$0xff] }
  0x86   :  { %5823 = vmatpush1.msk.msra.mxu1 %vm72_vm1, %v308_v27 }
  0x87   :  { %6180 = vmatprep.subr.mxu1 %v6453_v3  ;;  %5824 = vmatmul.mubr.msk.f32.vlgmr.msra.gmra.mxu1 %vm68_vm2, %v38_v26 }
  0x88   :  { %v306_v28 = vpop.permute.xlu1 %305  ;;  %v304_v29 = vpop.permute.xlu0 %303  ;;  %6182 = vmatprep.mubr.msk.f32.mxu1 %vm6464_vm4, %v6453_v3 }
  0x89   :  { %v312_v30 = vsel %vm307_vm3, %v304_v29, %v306_v28  ;;  %v311_v31 = vsel %vm307_vm3, %v302_v24, %v304_v29  ;;  %vm3424_vm3 = vcmask 842752  }
  0x8a   :  { %5825 = vmatprep.subr.msk.mxu0 %vm72_vm1, %v311_v31  ;;  %6181 = vmatpush3.msk.msra.mxu1 %vm72_vm1, %v312_v30 }
  0x8b   :  { %5826 = vmatpush1.msk.msra.mxu0 %vm72_vm1, %v310_v32  ;;  %6183 = vmatmul.mubr.msk.f32.vlgmr.msra.gmra.mxu1 %vm68_vm2, %v38_v26 }
  0x8c   :  { %v554_v33 = vpop.permute.xlu1 %553  ;;  %v552_v34 = vpop.permute.xlu0 %551  ;;  %5827 = vmatmul.mubr.msk.f32.vlgmr.msra.gmra.mxu0 %vm68_vm2, %v38_v26  ;;  %715 = vmatprep.mubr.f32.mxu1 %v6453_v3 }
  0x8d   :  { %v563_v35 = vsel %vm561_vm5, %v552_v34, %v554_v33  ;;  %644 = vmatprep.mubr.f32.mxu0 %v6453_v3 }
  0x8e   :  { %5831 = vmatprep.subr.msk.mxu0 %vm72_vm1, %v563_v35  ;;  %v5875_v35 = vld [vmem:[%s7956_s1 + $0x38] sm:$0xff] }
  0x90   :  { %v558_v36 = vpop.permute.xlu1 %557  ;;  %v556_v37 = vpop.permute.xlu0 %555 }
  0x91   :  { %v564_v38 = vsel %vm561_vm5, %v554_v33, %v556_v37  ;;  %v565_v39 = vsel %vm561_vm5, %v556_v37, %v558_v36 }
  0x92   :  { %5834 = vmatprep.subr.msk.mxu1 %vm72_vm1, %v565_v39 }
  0x93   :  { %5835 = vmatpush1.msk.msra.mxu1 %vm72_vm1, %v564_v38 }
  0x94   :  { %v811_v41 = vpop.permute.xlu1 %810  ;;  %v550_v42 = vpop.permute.xlu0 %549  ;;  %5836 = vmatmul.mubr.msk.f32.vlgmr.msra.gmra.mxu1 %vm68_vm2, %v5830_v40 }
  0x95   :  { %v562_v43 = vsel %vm561_vm5, %v550_v42, %v552_v34  ;;  %903 = vmatprep.mubr.f32.mxu1 %v6453_v3 }
  0x96   :  { %5832 = vmatpush1.msk.msra.mxu0 %vm72_vm1, %v562_v43 }
  0x97   :  { %6185 = vmatprep.subr.mxu0 %v6453_v3  ;;  %5833 = vmatmul.mubr.msk.f32.vlgmr.msra.gmra.mxu0 %vm68_vm2, %v5830_v40 }
  0x98   :  { %v560_v44 = vpop.permute.xlu1 %559  ;;  %v813_v45 = vpop.permute.xlu0 %812  ;;  %6187 = vmatprep.mubr.msk.f32.mxu0 %vm6464_vm4, %v6453_v3 }
  0x99   :  { %v566_v46 = vsel %vm561_vm5, %v558_v36, %v560_v44  ;;  %v822_v47 = vsel %vm820_vm6, %v811_v41, %v813_v45 }
  0x9a   :  { %6186 = vmatpush3.msk.msra.mxu0 %vm72_vm1, %v566_v46  ;;  %5840 = vmatprep.subr.msk.mxu1 %vm72_vm1, %v822_v47 }
  0x9b   :  { %6188 = vmatmul.mubr.msk.f32.vlgmr.msra.gmra.mxu0 %vm68_vm2, %v5830_v40 }
  0x9c   :  { %v815_v48 = vpop.permute.xlu1 %814  ;;  %v809_v49 = vpop.permute.xlu0 %808  ;;  %974 = vmatprep.mubr.f32.mxu0 %v6453_v3 }
  0x9d   :  { %v821_v51 = vsel %vm820_vm6, %v809_v49, %v811_v41  ;;  %v823_v56 = vsel %vm820_vm6, %v813_v45, %v815_v48  ;;  %v5884_v49 = vld [vmem:[%s7956_s1 + $0x40] sm:$0xff]  ;;  %s6465_s1 = smov 127  }
  0x9e   :  { %5841 = vmatpush1.msk.msra.mxu1 %vm72_vm1, %v821_v51 }
  0x9f   :  { %6190 = vmatprep.subr.mxu1 %v6453_v3  ;;  %5842 = vmatmul.mubr.msk.f32.vlgmr.msra.gmra.mxu1 %vm68_vm2, %v5839_v50 }
  0xa0   :  { %v819_v52 = vpop.permute.xlu1 %818  ;;  %v817_v53 = vpop.permute.xlu0 %816  ;;  %6192 = vmatprep.mubr.msk.f32.mxu1 %vm6464_vm4, %v6453_v3 }
  0xa1   :  { %v825_v54 = vsel %vm820_vm6, %v817_v53, %v819_v52  ;;  %v824_v55 = vsel %vm820_vm6, %v815_v48, %v817_v53  ;;  %vm3522_vm6 = vcmask 834560  }
  0xa2   :  { %5843 = vmatprep.subr.msk.mxu0 %vm72_vm1, %v824_v55  ;;  %6191 = vmatpush3.msk.msra.mxu1 %vm72_vm1, %v825_v54 }
  0xa3   :  { %5844 = vmatpush1.msk.msra.mxu0 %vm72_vm1, %v823_v56  ;;  %6193 = vmatmul.mubr.msk.f32.vlgmr.msra.gmra.mxu1 %vm68_vm2, %v5839_v50 }
  0xa4   :  { %v1072_v57 = vpop.permute.xlu1 %1071  ;;  %v1070_v58 = vpop.permute.xlu0 %1069  ;;  %5845 = vmatmul.mubr.msk.f32.vlgmr.msra.gmra.mxu0 %vm68_vm2, %v5839_v50  ;;  %1233 = vmatprep.mubr.f32.mxu1 %v6453_v3 }
  0xa5   :  { %v1081_v59 = vsel %vm1079_vm7, %v1070_v58, %v1072_v57  ;;  %1162 = vmatprep.mubr.f32.mxu0 %v6453_v3 }
  0xa6   :  { %5849 = vmatprep.subr.msk.mxu0 %vm72_vm1, %v1081_v59 }
  0xa8   :  { %v1076_v60 = vpop.permute.xlu1 %1075  ;;  %v1074_v61 = vpop.permute.xlu0 %1073 }
  0xa9   :  { %v1082_v62 = vsel %vm1079_vm7, %v1072_v57, %v1074_v61  ;;  %v1083_v63 = vsel %vm1079_vm7, %v1074_v61, %v1076_v60 }
  0xaa   :  { %5852 = vmatprep.subr.msk.mxu1 %vm72_vm1, %v1083_v63 }
  0xab   :  { %5853 = vmatpush1.msk.msra.mxu1 %vm72_vm1, %v1082_v62 }
  0xac   :  { %v1329_v1 = vpop.permute.xlu1 %1328  ;;  %v1068_v2 = vpop.permute.xlu0 %1067  ;;  %5854 = vmatmul.mubr.msk.f32.vlgmr.msra.gmra.mxu1 %vm68_vm2, %v5848_v0 }
  0xad   :  { %v1080_v4 = vsel %vm1079_vm7, %v1068_v2, %v1070_v58  ;;  %1421 = vmatprep.mubr.f32.mxu1 %v6453_v3 }
  0xae   :  { %5850 = vmatpush1.msk.msra.mxu0 %vm72_vm1, %v1080_v4 }
  0xaf   :  { %6195 = vmatprep.subr.mxu0 %v6453_v3  ;;  %5851 = vmatmul.mubr.msk.f32.vlgmr.msra.gmra.mxu0 %vm68_vm2, %v5848_v0 }
  0xb0   :  { %v1078_v5 = vpop.permute.xlu1 %1077  ;;  %v1331_v6 = vpop.permute.xlu0 %1330  ;;  %6197 = vmatprep.mubr.msk.f32.mxu0 %vm6464_vm4, %v6453_v3 }
  0xb1   :  { %v1084_v7 = vsel %vm1079_vm7, %v1076_v60, %v1078_v5  ;;  %v1340_v8 = vsel %vm1338_vm8, %v1329_v1, %v1331_v6  ;;  %vm3731_vm7 = vcmask 1048064  }
  0xb2   :  { %6196 = vmatpush3.msk.msra.mxu0 %vm72_vm1, %v1084_v7  ;;  %5858 = vmatprep.subr.msk.mxu1 %vm72_vm1, %v1340_v8  ;;  %3732 = vst.msk [vmem:[#allocation4 + $0x8] sm:$0xff] %vm3731_vm7, %v6453_v3  ;;  %3733 = vst.msk [vmem:[#allocation4 + $0x18] sm:$0xff] %vm3731_vm7, %v6453_v3 }
  0xb3   :  { %6198 = vmatmul.mubr.msk.f32.vlgmr.msra.gmra.mxu0 %vm68_vm2, %v5848_v0 }
  0xb4   :  { %v1333_v9 = vpop.permute.xlu1 %1332  ;;  %v1327_v10 = vpop.permute.xlu0 %1326  ;;  %1492 = vmatprep.mubr.f32.mxu0 %v6453_v3 }
  0xb5   :  { %v1339_v12 = vsel %vm1338_vm8, %v1327_v10, %v1329_v1  ;;  %v1341_v17 = vsel %vm1338_vm8, %v1331_v6, %v1333_v9 }
  0xb6   :  { %5859 = vmatpush1.msk.msra.mxu1 %vm72_vm1, %v1339_v12 }
  0xb7   :  { %5860 = vmatmul.mubr.msk.f32.vlgmr.msra.gmra.mxu1 %vm68_vm2, %v5857_v11  ;;  %6200 = vmatprep.subr.mxu1 %v6453_v3 }
  0xb8   :  { %v1337_v13 = vpop.permute.xlu1 %1336  ;;  %v1335_v14 = vpop.permute.xlu0 %1334  ;;  %6202 = vmatprep.mubr.msk.f32.mxu1 %vm6464_vm4, %v6453_v3 }
  0xb9   :  { %v1342_v15 = vsel %vm1338_vm8, %v1333_v9, %v1335_v14  ;;  %v1343_v16 = vsel %vm1338_vm8, %v1335_v14, %v1337_v13  ;;  %vm3735_vm8 = vcmask 523264  }
  0xba   :  { %5861 = vmatprep.subr.msk.mxu0 %vm72_vm1, %v1342_v15  ;;  %6201 = vmatpush3.msk.msra.mxu1 %vm72_vm1, %v1343_v16 }
  0xbb   :  { %5862 = vmatpush1.msk.msra.mxu0 %vm72_vm1, %v1341_v17  ;;  %6203 = vmatmul.mubr.msk.f32.vlgmr.msra.gmra.mxu1 %vm68_vm2, %v5857_v11 }
  0xbc   :  { %v1590_v18 = vpop.permute.xlu1 %1589  ;;  %5863 = vmatmul.mubr.msk.f32.vlgmr.msra.gmra.mxu0 %vm68_vm2, %v5857_v11  ;;  %v1588_v19 = vpop.permute.xlu0 %1587  ;;  %1751 = vmatprep.mubr.f32.mxu1 %v6453_v3 }
  0xbd   :  { %v1599_v20 = vsel %vm1597_vm9, %v1588_v19, %v1590_v18  ;;  %1680 = vmatprep.mubr.f32.mxu0 %v6453_v3 }
  0xbe   :  { %5867 = vmatprep.subr.msk.mxu0 %vm72_vm1, %v1599_v20 }
  0xc0   :  { %v1594_v21 = vpop.permute.xlu1 %1593  ;;  %v1592_v22 = vpop.permute.xlu0 %1591 }
  0xc1   :  { %v1600_v23 = vsel %vm1597_vm9, %v1590_v18, %v1592_v22  ;;  %v1601_v24 = vsel %vm1597_vm9, %v1592_v22, %v1594_v21 }
  0xc2   :  { %5870 = vmatprep.subr.msk.mxu1 %vm72_vm1, %v1601_v24 }
  0xc3   :  { %5871 = vmatpush1.msk.msra.mxu1 %vm72_vm1, %v1600_v23 }
  0xc4   :  { %v1847_v26 = vpop.permute.xlu1 %1846  ;;  %5872 = vmatmul.mubr.msk.f32.vlgmr.msra.gmra.mxu1 %vm68_vm2, %v5866_v25  ;;  %v1586_v27 = vpop.permute.xlu0 %1585 }
  0xc5   :  { %v1598_v28 = vsel %vm1597_vm9, %v1586_v27, %v1588_v19  ;;  %1939 = vmatprep.mubr.f32.mxu1 %v6453_v3 }
  0xc6   :  { %5868 = vmatpush1.msk.msra.mxu0 %vm72_vm1, %v1598_v28 }
  0xc7   :  { %5869 = vmatmul.mubr.msk.f32.vlgmr.msra.gmra.mxu0 %vm68_vm2, %v5866_v25  ;;  %6205 = vmatprep.subr.mxu0 %v6453_v3 }
  0xc8   :  { %v1596_v29 = vpop.permute.xlu1 %1595  ;;  %v1849_v30 = vpop.permute.xlu0 %1848  ;;  %6207 = vmatprep.mubr.msk.f32.mxu0 %vm6464_vm4, %v6453_v3 }
  0xc9   :  { %v1602_v31 = vsel %vm1597_vm9, %v1594_v21, %v1596_v29  ;;  %v1858_v32 = vsel %vm1856_vm10, %v1847_v26, %v1849_v30  ;;  %vm3777_vm9 = vcmask 965632  }
  0xca   :  { %6206 = vmatpush3.msk.msra.mxu0 %vm72_vm1, %v1602_v31  ;;  %5876 = vmatprep.subr.msk.mxu1 %vm72_vm1, %v1858_v32 }
  0xcb   :  { %6208 = vmatmul.mubr.msk.f32.vlgmr.msra.gmra.mxu0 %vm68_vm2, %v5866_v25 }
  0xcc   :  { %v1851_v33 = vpop.permute.xlu1 %1850  ;;  %v1845_v34 = vpop.permute.xlu0 %1844  ;;  %2010 = vmatprep.mubr.f32.mxu0 %v6453_v3 }
  0xcd   :  { %v1857_v36 = vsel %vm1856_vm10, %v1845_v34, %v1847_v26  ;;  %v1859_v41 = vsel %vm1856_vm10, %v1849_v30, %v1851_v33 }
  0xce   :  { %5877 = vmatpush1.msk.msra.mxu1 %vm72_vm1, %v1857_v36 }
  0xcf   :  { %5878 = vmatmul.mubr.msk.f32.vlgmr.msra.gmra.mxu1 %vm68_vm2, %v5875_v35  ;;  %6210 = vmatprep.subr.mxu1 %v6453_v3 }
  0xd0   :  { %v1855_v37 = vpop.permute.xlu1 %1854  ;;  %v1853_v38 = vpop.permute.xlu0 %1852  ;;  %6212 = vmatprep.mubr.msk.f32.mxu1 %vm6464_vm4, %v6453_v3 }
  0xd1   :  { %v1860_v39 = vsel %vm1856_vm10, %v1851_v33, %v1853_v38  ;;  %v1861_v40 = vsel %vm1856_vm10, %v1853_v38, %v1855_v37  ;;  %vm3893_vm10 = vcmask 261120  }
  0xd2   :  { %5879 = vmatprep.subr.msk.mxu0 %vm72_vm1, %v1860_v39  ;;  %6211 = vmatpush3.msk.msra.mxu1 %vm72_vm1, %v1861_v40 }
  0xd3   :  { %5880 = vmatpush1.msk.msra.mxu0 %vm72_vm1, %v1859_v41  ;;  %6213 = vmatmul.mubr.msk.f32.vlgmr.msra.gmra.mxu1 %vm68_vm2, %v5875_v35 }
  0xd4   :  { %v2108_v42 = vpop.permute.xlu1 %2107  ;;  %5881 = vmatmul.mubr.msk.f32.vlgmr.msra.gmra.mxu0 %vm68_vm2, %v5875_v35  ;;  %v2106_v43 = vpop.permute.xlu0 %2105  ;;  %2269 = vmatprep.mubr.f32.mxu1 %v6453_v3 }
  0xd5   :  { %v2117_v44 = vsel %vm2115_vm11, %v2106_v43, %v2108_v42  ;;  %2198 = vmatprep.mubr.f32.mxu0 %v6453_v3 }
  0xd6   :  { %5885 = vmatprep.subr.msk.mxu0 %vm72_vm1, %v2117_v44 }
  0xd8   :  { %v2112_v45 = vpop.permute.xlu1 %2111  ;;  %v2110_v46 = vpop.permute.xlu0 %2109 }
  0xd9   :  { %v2118_v47 = vsel %vm2115_vm11, %v2108_v42, %v2110_v46  ;;  %v2119_v48 = vsel %vm2115_vm11, %v2110_v46, %v2112_v45 }
  0xda   :  { %5888 = vmatprep.subr.msk.mxu1 %vm72_vm1, %v2119_v48 }
  0xdb   :  { %5889 = vmatpush1.msk.msra.mxu1 %vm72_vm1, %v2118_v47 }
  0xdc   :  { %5890 = vmatmul.mubr.msk.f32.vlgmr.msra.gmra.mxu1 %vm68_vm2, %v5884_v49  ;;  %v2104_v50 = vpop.permute.xlu0 %2103  ;;  %v2114_v51 = vpop.permute.xlu1 %2113 }
  0xdd   :  { %v2116_v52 = vsel %vm2115_vm11, %v2104_v50, %v2106_v43  ;;  %v2120_v53 = vsel %vm2115_vm11, %v2112_v45, %v2114_v51  ;;  %vm3915_vm11 = vcmask 130048  }
  0xde   :  { %5886 = vmatpush1.msk.msra.mxu0 %vm72_vm1, %v2116_v52 }
  0xdf   :  { %5887 = vmatmul.mubr.msk.f32.vlgmr.msra.gmra.mxu0 %vm68_vm2, %v5884_v49  ;;  %6215 = vmatprep.subr.mxu0 %v6453_v3 }
  0xe0   :  { %6216 = vmatpush3.msk.msra.mxu0 %vm72_vm1, %v2120_v53  ;;  %6217 = vmatprep.mubr.msk.f32.mxu0 %vm6464_vm4, %v6453_v3  ;;  %vm3033_vm1 = vcmask 990208   ;;  %vm3326_vm4 = vcmask 908288  }
  0xe3   :  { %6218 = vmatmul.mubr.msk.f32.vlgmr.msra.gmra.mxu0 %vm68_vm2, %v5884_v49  ;;  %vm3228_vm2 = vcmask 916480  }
 0x13c   :  { %v220_v55 = vpop.f32.mrf.mxu1 }
 0x13e   :  { %v222_v57 = vpop.f32.mrf.mxu1 }
 0x13f   :  { %v149_v54 = vpop.f32.mrf.mxu0 }
 0x141   :  { %v151_v56 = vpop.f32.mrf.mxu0 }
 0x143   :  { %v291_v58 = vpop.f32.mrf.mxu0 }
 0x145   :  { %v6179_v59 = vpop.f32.mrf.mxu0 }
 0x147   :  { %v392_v60 = vpop.f32.mrf.mxu1 }
 0x148   :  { %v393_v61 = vadd.f32 %v392_v60, %v149_v54 }
 0x149   :  { %v394_v62 = vpop.f32.mrf.mxu1 }
 0x14a   :  { %v395_v63 = vadd.f32 %v394_v62, %v151_v56 }
 0x14b   :  { %v534_v0 = vpop.f32.mrf.mxu1 }
 0x14c   :  { %v463_v1 = vpop.f32.mrf.mxu0  ;;  %v535_v2 = vadd.f32 %v534_v0, %v291_v58 }
 0x14d   :  { %v464_v4 = vadd.f32 %v463_v1, %v220_v55  ;;  %v6184_v5 = vpop.f32.mrf.mxu1 }
 0x14e   :  { %v465_v6 = vpop.f32.mrf.mxu0 }
 0x14f   :  { %v466_v7 = vadd.f32 %v465_v6, %v222_v57 }
 0x154   :  { %v717_v9 = vpop.f32.mrf.mxu1 }
 0x155   :  { %v794_v39 = vadd.f32 %v717_v9, %v464_v4 }
 0x156   :  { %v719_v12 = vpop.f32.mrf.mxu1 }
 0x157   :  { %v646_v8 = vpop.f32.mrf.mxu0  ;;  %v795_v41 = vadd.f32 %v719_v12, %v466_v7 }
 0x158   :  { %v792_v10 = vadd.f32 %v646_v8, %v393_v61 }
 0x159   :  { %v648_v11 = vpop.f32.mrf.mxu0 }
 0x15a   :  { %v793_v44 = vadd.f32 %v648_v11, %v395_v63  ;;  %v2355_v11 = vpop.permute.xlu0 %2354 }
 0x15b   :  { %v788_v13 = vpop.f32.mrf.mxu0 }
 0x15c   :  { %v796_v42 = vadd.f32 %v788_v13, %v535_v2 }
 0x15d   :  { %v6189_v14 = vpop.f32.mrf.mxu0 }
 0x15f   :  { %v905_v15 = vpop.f32.mrf.mxu1 }
 0x160   :  { %v1051_v45 = vadd.f32 %v905_v15, %v792_v10 }
 0x161   :  { %v907_v16 = vpop.f32.mrf.mxu1 }
 0x162   :  { %v1052_v51 = vadd.f32 %v907_v16, %v793_v44  ;;  %v2552_v44 = vld [vmem:[%s7957_s3 + $0x2e8] sm:$0xff] }
 0x163   :  { %v1047_v17 = vpop.f32.mrf.mxu1 }
 0x164   :  { %v976_v19 = vpop.f32.mrf.mxu0  ;;  %v1055_v49 = vadd.f32 %v1047_v17, %v796_v42  ;;  %v2553_v42 = vld [vmem:[%s7957_s3 + $0x2f0] sm:$0xff] }
 0x165   :  { %v6194_v18 = vpop.f32.mrf.mxu1  ;;  %v1053_v46 = vadd.f32 %v976_v19, %v794_v39  ;;  %v2487_v39 = vld [vmem:[%s7957_s3 + $0xe0] sm:$0xff] }
 0x166   :  { %v978_v20 = vpop.f32.mrf.mxu0 }
 0x167   :  { %v1054_v48 = vadd.f32 %v978_v20, %v795_v41  ;;  %v2554_v41 = vld [vmem:[%s7957_s3 + $0x2f8] sm:$0xff] }
 0x168   :  { %2690 = vmatprep.subr.mxu0 %v2554_v41  ;;  %v2460_v41 = vld [vmem:[%s7957_s3 + $0x8] sm:$0xff] }
 0x169   :  { %2691 = vmatpush1.msra.mxu0 %v2553_v42  ;;  %v2526_v42 = vld [vmem:[%s7957_s3 + $0x218] sm:$0xff] }
 0x16a   :  { %2692 = vmatprep.subr.mxu0 %v2552_v44  ;;  %v2525_v44 = vld [vmem:[%s7957_s3 + $0x210] sm:$0xff] }
 0x16c   :  { %v1235_v22 = vpop.f32.mrf.mxu1 }
 0x16d   :  { %v1312_v53 = vadd.f32 %v1235_v22, %v1053_v46  ;;  %v2551_v46 = vld [vmem:[%s7957_s3 + $0x2e0] sm:$0xff] }
 0x16e   :  { %v1237_v24 = vpop.f32.mrf.mxu1  ;;  %2693 = vmatpush1.msra.mxu0 %v2551_v46  ;;  %v2524_v46 = vld [vmem:[%s7957_s3 + $0x208] sm:$0xff] }
 0x16f   :  { %v1164_v21 = vpop.f32.mrf.mxu0  ;;  %v1313_v55 = vadd.f32 %v1237_v24, %v1054_v48  ;;  %v2483_v48 = vld [vmem:[%s7957_s3 + $0xc0] sm:$0xff] }
 0x170   :  { %v1310_v52 = vadd.f32 %v1164_v21, %v1051_v45  ;;  %v2484_v45 = vld [vmem:[%s7957_s3 + $0xc8] sm:$0xff] }
 0x171   :  { %v1166_v23 = vpop.f32.mrf.mxu0 }
 0x172   :  { %v1311_v58 = vadd.f32 %v1166_v23, %v1052_v51  ;;  %v2548_v51 = vld [vmem:[%s7957_s3 + $0x2c8] sm:$0xff] }
 0x173   :  { %v1306_v25 = vpop.f32.mrf.mxu0 }
 0x174   :  { %v1314_v57 = vadd.f32 %v1306_v25, %v1055_v49  ;;  %v2549_v49 = vld [vmem:[%s7957_s3 + $0x2d0] sm:$0xff] }
 0x175   :  { %v6199_v26 = vpop.f32.mrf.mxu0 }
 0x177   :  { %v1423_v27 = vpop.f32.mrf.mxu1 }
 0x178   :  { %v1569_v59 = vadd.f32 %v1423_v27, %v1310_v52  ;;  %v2481_v52 = vld [vmem:[%s7957_s3 + $0xb0] sm:$0xff] }
 0x179   :  { %v1425_v28 = vpop.f32.mrf.mxu1 }
 0x17a   :  { %v1570_v0 = vadd.f32 %v1425_v28, %v1311_v58  ;;  %v2478_v58 = vld [vmem:[%s7957_s3 + $0x98] sm:$0xff] }
 0x17b   :  { %v1565_v29 = vpop.f32.mrf.mxu1 }
 0x17c   :  { %v1494_v31 = vpop.f32.mrf.mxu0  ;;  %v1573_v5 = vadd.f32 %v1565_v29, %v1314_v57  ;;  %v2545_v57 = vld [vmem:[%s7957_s3 + $0x2b0] sm:$0xff] }
 0x17d   :  { %v6204_v30 = vpop.f32.mrf.mxu1  ;;  %v1571_v56 = vadd.f32 %v1494_v31, %v1312_v53  ;;  %v2547_v53 = vld [vmem:[%s7957_s3 + $0x2c0] sm:$0xff] }
 0x17e   :  { %v1496_v32 = vpop.f32.mrf.mxu0 }
 0x17f   :  { %v1572_v60 = vadd.f32 %v1496_v32, %v1313_v55  ;;  %v2546_v55 = vld [vmem:[%s7957_s3 + $0x2b8] sm:$0xff] }
 0x184   :  { %v1753_v34 = vpop.f32.mrf.mxu1 }
 0x185   :  { %v1830_v61 = vadd.f32 %v1753_v34, %v1571_v56  ;;  %v2479_v56 = vld [vmem:[%s7957_s3 + $0xa0] sm:$0xff] }
 0x186   :  { %v1755_v37 = vpop.f32.mrf.mxu1 }
 0x187   :  { %v1682_v33 = vpop.f32.mrf.mxu0  ;;  %v1831_v63 = vadd.f32 %v1755_v37, %v1572_v60  ;;  %v2489_v37 = vld [vmem:[%s7957_s3 + $0xf0] sm:$0xff] }
 0x188   :  { %v1828_v1 = vadd.f32 %v1682_v33, %v1569_v59  ;;  %v2544_v59 = vld [vmem:[%s7957_s3 + $0x2a8] sm:$0xff]  ;;  %v2477_v60 = vld [vmem:[%s7957_s3 + $0x90] sm:$0xff] }
 0x189   :  { %v1684_v35 = vpop.f32.mrf.mxu0 }
 0x18a   :  { %v1829_v6 = vadd.f32 %v1684_v35, %v1570_v0  ;;  %v2542_v0 = vld [vmem:[%s7957_s3 + $0x298] sm:$0xff] }
 0x18b   :  { %v1824_v36 = vpop.f32.mrf.mxu0 }
 0x18c   :  { %v1832_v13 = vadd.f32 %v1824_v36, %v1573_v5  ;;  %v2490_v36 = vld [vmem:[%s7957_s3 + $0xf8] sm:$0xff]  ;;  %v2473_v5 = vld [vmem:[%s7957_s3 + $0x70] sm:$0xff] }
 0x18d   :  { %v6209_v38 = vpop.f32.mrf.mxu0  ;;  %2619 = vmatprep.subr.mxu1 %v2490_v36  ;;  %v2529_v36 = vld [vmem:[%s7957_s3 + $0x230] sm:$0xff] }
 0x18e   :  { %v2488_v38 = vld [vmem:[%s7957_s3 + $0xe8] sm:$0xff]  ;;  %2620 = vmatpush1.msra.mxu1 %v2489_v37  ;;  %v2462_v37 = vld [vmem:[%s7957_s3 + $0x18] sm:$0xff] }
 0x18f   :  { %v1941_v40 = vpop.f32.mrf.mxu1  ;;  %2621 = vmatprep.subr.mxu1 %v2488_v38  ;;  %v2528_v38 = vld [vmem:[%s7957_s3 + $0x228] sm:$0xff] }
 0x190   :  { %v2087_v7 = vadd.f32 %v1941_v40, %v1828_v1  ;;  %v2486_v40 = vld [vmem:[%s7957_s3 + $0xd8] sm:$0xff]  ;;  %2622 = vmatpush1.msra.mxu1 %v2487_v39  ;;  %v2541_v1 = vld [vmem:[%s7957_s3 + $0x290] sm:$0xff] }
 0x191   :  { %v1943_v43 = vpop.f32.mrf.mxu1  ;;  %2623 = vmatprep.subr.mxu1 %v2486_v40  ;;  %v2461_v39 = vld [vmem:[%s7957_s3 + $0x10] sm:$0xff]  ;;  %v2527_v40 = vld [vmem:[%s7957_s3 + $0x220] sm:$0xff] }
 0x192   :  { %v2088_v14 = vadd.f32 %v1943_v43, %v1829_v6  ;;  %v2485_v43 = vld [vmem:[%s7957_s3 + $0xd0] sm:$0xff]  ;;  %v2539_v6 = vld [vmem:[%s7957_s3 + $0x280] sm:$0xff] }
 0x193   :  { %v2083_v47 = vpop.f32.mrf.mxu1  ;;  %2624 = vmatpush1.msra.mxu1 %v2485_v43  ;;  %v2459_v43 = vld [vmem:[%s7957_s3] sm:$0xff] }
 0x194   :  { %v2012_v54 = vpop.f32.mrf.mxu0  ;;  %v2091_v18 = vadd.f32 %v2083_v47, %v1832_v13  ;;  %v2550_v47 = vld [vmem:[%s7957_s3 + $0x2d8] sm:$0xff]  ;;  %2625 = vmatprep.subr.mxu1 %v2484_v45  ;;  %v2469_v13 = vld [vmem:[%s7957_s3 + $0x50] sm:$0xff] }
 0x195   :  { %v6214_v50 = vpop.f32.mrf.mxu1  ;;  %v2089_v2 = vadd.f32 %v2012_v54, %v1830_v61  ;;  %2694 = vmatprep.subr.mxu0 %v2550_v47  ;;  %2626 = vmatpush1.msra.mxu1 %v2483_v48  ;;  %v2480_v54 = vld [vmem:[%s7957_s3 + $0xa8] sm:$0xff]  ;;  %v2543_v61 = vld [vmem:[%s7957_s3 + $0x2a0] sm:$0xff]  ;;  %v2522_v45 = vld [vmem:[%s7957_s3 + $0x1f8] sm:$0xff] }
 0x196   :  { %v2014_v62 = vpop.f32.mrf.mxu0  ;;  %v2482_v50 = vld [vmem:[%s7957_s3 + $0xb8] sm:$0xff]  ;;  %2695 = vmatpush1.msra.mxu0 %v2549_v49  ;;  %v2521_v47 = vld [vmem:[%s7957_s3 + $0x1f0] sm:$0xff]  ;;  %v2523_v48 = vld [vmem:[%s7957_s3 + $0x200] sm:$0xff] }
 0x197   :  { %v2090_v8 = vadd.f32 %v2014_v62, %v1831_v63  ;;  %2627 = vmatprep.subr.mxu1 %v2482_v50  ;;  %2696 = vmatprep.subr.mxu0 %v2548_v51  ;;  %v2476_v62 = vld [vmem:[%s7957_s3 + $0x88] sm:$0xff]  ;;  %v2475_v63 = vld [vmem:[%s7957_s3 + $0x80] sm:$0xff]  ;;  %v2586_v50 = vld [vmem:[%s7957_s3 + $0x3f8] sm:$0xff] }
 0x198   :  { %2628 = vmatpush1.msra.mxu1 %v2481_v52  ;;  %2697 = vmatpush1.msra.mxu0 %v2547_v53  ;;  %v2520_v49 = vld [vmem:[%s7957_s3 + $0x1e8] sm:$0xff]  ;;  %v2519_v51 = vld [vmem:[%s7957_s3 + $0x1e0] sm:$0xff]  ;;  %v2585_v52 = vld [vmem:[%s7957_s3 + $0x3f0] sm:$0xff] }
 0x199   :  { %2629 = vmatprep.subr.mxu1 %v2480_v54  ;;  %2698 = vmatprep.subr.mxu0 %v2546_v55  ;;  %v2518_v53 = vld [vmem:[%s7957_s3 + $0x1d8] sm:$0xff]  ;;  %v2584_v54 = vld [vmem:[%s7957_s3 + $0x3e8] sm:$0xff]  ;;  %v2517_v55 = vld [vmem:[%s7957_s3 + $0x1d0] sm:$0xff] }
 0x19a   :  { %2630 = vmatpush1.msra.mxu1 %v2479_v56  ;;  %2699 = vmatpush1.msra.mxu0 %v2545_v57  ;;  %v2583_v56 = vld [vmem:[%s7957_s3 + $0x3e0] sm:$0xff]  ;;  %v2516_v57 = vld [vmem:[%s7957_s3 + $0x1c8] sm:$0xff] }
 0x19b   :  { %2631 = vmatprep.subr.mxu1 %v2478_v58  ;;  %2700 = vmatprep.subr.mxu0 %v2544_v59  ;;  %v2582_v58 = vld [vmem:[%s7957_s3 + $0x3d8] sm:$0xff]  ;;  %v2515_v59 = vld [vmem:[%s7957_s3 + $0x1c0] sm:$0xff] }
 0x19c   :  { %v2271_v4 = vpop.f32.mrf.mxu1  ;;  %2632 = vmatpush1.msra.mxu1 %v2477_v60  ;;  %2701 = vmatpush1.msra.mxu0 %v2543_v61  ;;  %v2581_v60 = vld [vmem:[%s7957_s3 + $0x3d0] sm:$0xff]  ;;  %v2514_v61 = vld [vmem:[%s7957_s3 + $0x1b8] sm:$0xff] }
 0x19d   :  { %v2348_v9 = vadd.f32 %v2271_v4, %v2089_v2  ;;  %v2474_v2 = vld [vmem:[%s7957_s3 + $0x78] sm:$0xff]  ;;  %v2540_v4 = vld [vmem:[%s7957_s3 + $0x288] sm:$0xff]  ;;  %2633 = vmatprep.subr.mxu1 %v2476_v62  ;;  %2702 = vmatprep.subr.mxu0 %v2542_v0  ;;  %v2513_v0 = vld [vmem:[%s7957_s3 + $0x1b0] sm:$0xff] }
 0x19e   :  { %v2273_v10 = vpop.f32.mrf.mxu1  ;;  %2634 = vmatpush1.msra.mxu1 %v2475_v63  ;;  %2703 = vmatpush1.msra.mxu0 %v2541_v1  ;;  %v2580_v62 = vld [vmem:[%s7957_s3 + $0x3c8] sm:$0xff]  ;;  %v2579_v63 = vld [vmem:[%s7957_s3 + $0x3c0] sm:$0xff] }
 0x19f   :  { %v2200_v12 = vpop.f32.mrf.mxu0  ;;  %v2349_v15 = vadd.f32 %v2273_v10, %v2090_v8  ;;  %v6797_v20 = vadd.f32 %v2355_v11, %v2348_v9  ;;  %v2538_v8 = vld [vmem:[%s7957_s3 + $0x278] sm:$0xff]  ;;  %2635 = vmatprep.subr.mxu1 %v2474_v2  ;;  %v2471_v9 = vld [vmem:[%s7957_s3 + $0x60] sm:$0xff]  ;;  %2704 = vmatprep.subr.mxu0 %v2540_v4  ;;  %v2537_v10 = vld [vmem:[%s7957_s3 + $0x270] sm:$0xff] }
 0x1a0   :  { %v2346_v16 = vadd.f32 %v2200_v12, %v2087_v7  ;;  %v2472_v7 = vld [vmem:[%s7957_s3 + $0x68] sm:$0xff]  ;;  %2636 = vmatpush1.msra.mxu1 %v2473_v5  ;;  %2705 = vmatpush1.msra.mxu0 %v2539_v6  ;;  %v2578_v2 = vld [vmem:[%s7957_s3 + $0x3b8] sm:$0xff]  ;;  %v2511_v4 = vld [vmem:[%s7957_s3 + $0x1a0] sm:$0xff] }
 0x1a1   :  { %v2202_v17 = vpop.f32.mrf.mxu0  ;;  %v6803_v25 = vadd.f32 %v2355_v11, %v2349_v15  ;;  %v2364_v29 = vmax.f32 %v6797_v20, 0.0  ;;  %v2536_v12 = vld [vmem:[%s7957_s3 + $0x268] sm:$0xff]  ;;  %2637 = vmatprep.subr.mxu1 %v2472_v7  ;;  %2706 = vmatprep.subr.mxu0 %v2538_v8  ;;  %v2577_v5 = vld [vmem:[%s7957_s3 + $0x3b0] sm:$0xff]  ;;  %v2510_v6 = vld [vmem:[%s7957_s3 + $0x198] sm:$0xff] }
 0x1a2   :  { %v2347_v19 = vadd.f32 %v2202_v17, %v2088_v14  ;;  %v6799_v22 = vadd.f32 %v2355_v11, %v2346_v16  ;;  %v2535_v14 = vld [vmem:[%s7957_s3 + $0x260] sm:$0xff]  ;;  %2638 = vmatpush1.msra.mxu1 %v2471_v9  ;;  %v2468_v15 = vld [vmem:[%s7957_s3 + $0x48] sm:$0xff]  ;;  %2707 = vmatpush1.msra.mxu0 %v2537_v10  ;;  %v2534_v16 = vld [vmem:[%s7957_s3 + $0x258] sm:$0xff] }
 0x1a3   :  { %v2342_v21 = vpop.f32.mrf.mxu0  ;;  %v2365_v33 = vmax.f32 %v6803_v25, 0.0  ;;  %v2467_v17 = vld [vmem:[%s7957_s3 + $0x40] sm:$0xff]  ;;  %2708 = vmatprep.subr.mxu0 %v2536_v12  ;;  %v2512_v1 = vld [vmem:[%s7957_s3 + $0x1a8] sm:$0xff]  ;;  %v2509_v8 = vld [vmem:[%s7957_s3 + $0x190] sm:$0xff] }
 0x1a4   :  { %v6801_v23 = vadd.f32 %v2355_v11, %v2347_v19  ;;  %v2350_v24 = vadd.f32 %v2342_v21, %v2091_v18  ;;  %v2362_v30 = vmax.f32 %v6799_v22, 0.0  ;;  %v2533_v18 = vld [vmem:[%s7957_s3 + $0x250] sm:$0xff]  ;;  %v2466_v19 = vld [vmem:[%s7957_s3 + $0x38] sm:$0xff]  ;;  %2709 = vmatpush1.msra.mxu0 %v2535_v14  ;;  %v2532_v21 = vld [vmem:[%s7957_s3 + $0x248] sm:$0xff] }
 0x1a5   :  { %v6219_v26 = vpop.f32.mrf.mxu0  ;;  %2710 = vmatprep.subr.mxu0 %v2534_v16  ;;  %v2576_v7 = vld [vmem:[%s7957_s3 + $0x3a8] sm:$0xff]  ;;  %v2575_v9 = vld [vmem:[%s7957_s3 + $0x3a0] sm:$0xff]  ;;  %v2506_v14 = vld [vmem:[%s7957_s3 + $0x178] sm:$0xff] }
 0x1a6   :  { %v2363_v27 = vmax.f32 %v6801_v23, 0.0  ;;  %v6806_v28 = vadd.f32 %v2355_v11, %v2350_v24  ;;  %v6429_v35 = vpack.i.bf16 %v2362_v30, %v2365_v33  ;;  %v2470_v11 = vld [vmem:[%s7957_s3 + $0x58] sm:$0xff]  ;;  %v2465_v24 = vld [vmem:[%s7957_s3 + $0x30] sm:$0xff]  ;;  %v2531_v26 = vld [vmem:[%s7957_s3 + $0x240] sm:$0xff]  ;;  %2711 = vmatpush1.msra.mxu0 %v2533_v18 }
 0x1a7   :  { %2639 = vmatprep.subr.mxu1 %v2470_v11  ;;  %2712 = vmatprep.subr.mxu0 %v2532_v21  ;;  %v2508_v10 = vld [vmem:[%s7957_s3 + $0x188] sm:$0xff]  ;;  %v2574_v11 = vld [vmem:[%s7957_s3 + $0x398] sm:$0xff]  ;;  %v2507_v12 = vld [vmem:[%s7957_s3 + $0x180] sm:$0xff] }
 0x1a8   :  { %v2366_v31 = vmax.f32 %v6806_v28, 0.0  ;;  %v6424_v32 = vpack.i.bf16 %v2364_v29, %v2363_v27  ;;  %2640 = vmatpush1.msra.mxu1 %v2469_v13  ;;  %2713 = vmatpush1.msra.mxu0 %v2531_v26  ;;  %v2573_v13 = vld [vmem:[%s7957_s3 + $0x390] sm:$0xff]  ;;  %v2504_v18 = vld [vmem:[%s7957_s3 + $0x168] sm:$0xff]  ;;  %v2503_v21 = vld [vmem:[%s7957_s3 + $0x160] sm:$0xff] }
 0x1a9   :  { %2641 = vmatprep.subr.mxu1 %v2468_v15  ;;  %v2572_v15 = vld [vmem:[%s7957_s3 + $0x388] sm:$0xff]  ;;  %v2505_v16 = vld [vmem:[%s7957_s3 + $0x170] sm:$0xff]  ;;  %v2502_v26 = vld [vmem:[%s7957_s3 + $0x158] sm:$0xff] }
 0x1aa   :  { %6425 = vrot.lane.b32.xlu1 %v6424_v32, %s6465_s1  ;;  %v6434_v34 = vpack.i.bf16 %v6453_v3, %v2366_v31  ;;  %2642 = vmatpush1.msra.mxu1 %v2467_v17  ;;  %v2464_v32 = vld [vmem:[%s7957_s3 + $0x28] sm:$0xff]  ;;  %v2571_v17 = vld [vmem:[%s7957_s3 + $0x380] sm:$0xff] }
 0x1ab   :  { %2643 = vmatprep.subr.mxu1 %v2466_v19  ;;  %v2570_v19 = vld [vmem:[%s7957_s3 + $0x378] sm:$0xff] }
 0x1ac   :  { %6435 = vrot.lane.b32.xlu0 %v6434_v34, %s6465_s1  ;;  %v2530_v34 = vld [vmem:[%s7957_s3 + $0x238] sm:$0xff]  ;;  %2644 = vmatpush1.msra.mxu1 %v2465_v24  ;;  %v2569_v24 = vld [vmem:[%s7957_s3 + $0x370] sm:$0xff] }
 0x1ad   :  { %2645 = vmatprep.subr.mxu1 %v2464_v32  ;;  %2714 = vmatprep.subr.mxu0 %v2530_v34  ;;  %v2568_v32 = vld [vmem:[%s7957_s3 + $0x368] sm:$0xff]  ;;  %v2501_v34 = vld [vmem:[%s7957_s3 + $0x150] sm:$0xff] }
 0x1ae   :  { %6430 = vrot.lane.b32.xlu1 %v6429_v35, %s6465_s1  ;;  %v2463_v35 = vld [vmem:[%s7957_s3 + $0x20] sm:$0xff]  ;;  %2715 = vmatpush1.msra.mxu0 %v2529_v36  ;;  %v2500_v36 = vld [vmem:[%s7957_s3 + $0x148] sm:$0xff] }
 0x1af   :  { %2646 = vmatpush1.msra.mxu1 %v2463_v35  ;;  %2716 = vmatprep.subr.mxu0 %v2528_v38  ;;  %v2567_v35 = vld [vmem:[%s7957_s3 + $0x360] sm:$0xff]  ;;  %v2498_v38 = vld [vmem:[%s7957_s3 + $0x138] sm:$0xff] }
 0x1b0   :  { %2647 = vmatprep.subr.mxu1 %v2462_v37  ;;  %2717 = vmatpush1.msra.mxu0 %v2527_v40  ;;  %v2499_v37 = vld [vmem:[%s7957_s3 + $0x140] sm:$0xff]  ;;  %v2566_v40 = vld [vmem:[%s7957_s3 + $0x358] sm:$0xff] }
 0x1b1   :  { %2648 = vmatpush1.msra.mxu1 %v2461_v39  ;;  %2718 = vmatprep.subr.mxu0 %v2526_v42  ;;  %v2497_v39 = vld [vmem:[%s7957_s3 + $0x130] sm:$0xff] }
 0x1b2   :  { %2649 = vmatprep.subr.mxu1 %v2460_v41  ;;  %2719 = vmatpush1.msra.mxu0 %v2525_v44  ;;  %v2496_v41 = vld [vmem:[%s7957_s3 + $0x128] sm:$0xff]  ;;  %v2565_v42 = vld [vmem:[%s7957_s3 + $0x350] sm:$0xff] }
 0x1b3   :  { %2650 = vmatpush1.msra.mxu1 %v2459_v43  ;;  %2720 = vmatprep.subr.mxu0 %v2524_v46  ;;  %v2495_v43 = vld [vmem:[%s7957_s3 + $0x120] sm:$0xff]  ;;  %v2564_v44 = vld [vmem:[%s7957_s3 + $0x348] sm:$0xff] }
 0x1b4   :  { %2651 = vmatprep.subr.mxu1 %v2522_v45  ;;  %2721 = vmatpush1.msra.mxu0 %v2523_v48  ;;  %v2494_v45 = vld [vmem:[%s7957_s3 + $0x118] sm:$0xff]  ;;  %v2563_v46 = vld [vmem:[%s7957_s3 + $0x340] sm:$0xff]  ;;  %v2493_v48 = vld [vmem:[%s7957_s3 + $0x110] sm:$0xff] }
 0x1b5   :  { %2652 = vmatpush2.msra.mxu1 %v2521_v47  ;;  %2722 = vmatprep.subr.mxu0 %v2586_v50 }
 0x1b6   :  { %2653 = vmatprep.subr.mxu1 %v2520_v49  ;;  %2723 = vmatpush2.msra.mxu0 %v2585_v52  ;;  %v2562_v49 = vld [vmem:[%s7957_s3 + $0x338] sm:$0xff]  ;;  %v2492_v52 = vld [vmem:[%s7957_s3 + $0x108] sm:$0xff] }
 0x1b7   :  { %2654 = vmatpush2.msra.mxu1 %v2519_v51  ;;  %2724 = vmatprep.subr.mxu0 %v2584_v54 }
 0x1b8   :  { %2655 = vmatprep.subr.mxu1 %v2518_v53  ;;  %2725 = vmatpush2.msra.mxu0 %v2583_v56  ;;  %v2561_v53 = vld [vmem:[%s7957_s3 + $0x330] sm:$0xff]  ;;  %v2560_v56 = vld [vmem:[%s7957_s3 + $0x328] sm:$0xff] }
 0x1b9   :  { %2656 = vmatpush2.msra.mxu1 %v2517_v55  ;;  %2726 = vmatprep.subr.mxu0 %v2582_v58  ;;  %v2491_v55 = vld [vmem:[%s7957_s3 + $0x100] sm:$0xff]  ;;  %v2618_v58 = vld [vmem:[%s7957_s3 + $0x4f8] sm:$0xff] }
 0x1ba   :  { %2657 = vmatprep.subr.mxu1 %v2516_v57  ;;  %2727 = vmatpush2.msra.mxu0 %v2581_v60  ;;  %v2559_v57 = vld [vmem:[%s7957_s3 + $0x320] sm:$0xff] }
 0x1bb   :  { %2658 = vmatpush2.msra.mxu1 %v2515_v59  ;;  %2728 = vmatprep.subr.mxu0 %v2580_v62 }
 0x1bc   :  { %2659 = vmatprep.subr.mxu1 %v2514_v61  ;;  %2729 = vmatpush2.msra.mxu0 %v2579_v63  ;;  %v2558_v61 = vld [vmem:[%s7957_s3 + $0x318] sm:$0xff] }
 0x1bd   :  { %2660 = vmatpush2.msra.mxu1 %v2513_v0  ;;  %2730 = vmatprep.subr.mxu0 %v2578_v2  ;;  %v2557_v2 = vld [vmem:[%s7957_s3 + $0x310] sm:$0xff] }
 0x1be   :  { %2661 = vmatprep.subr.mxu1 %v2512_v1  ;;  %2731 = vmatpush2.msra.mxu0 %v2577_v5 }
 0x1bf   :  { %2662 = vmatpush2.msra.mxu1 %v2511_v4  ;;  %2732 = vmatprep.subr.mxu0 %v2576_v7  ;;  %v2556_v7 = vld [vmem:[%s7957_s3 + $0x308] sm:$0xff] }
 0x1c0   :  { %2663 = vmatprep.subr.mxu1 %v2510_v6  ;;  %2733 = vmatpush2.msra.mxu0 %v2575_v9 }
 0x1c1   :  { %2664 = vmatpush2.msra.mxu1 %v2509_v8  ;;  %2734 = vmatprep.subr.mxu0 %v2574_v11  ;;  %v2555_v11 = vld [vmem:[%s7957_s3 + $0x300] sm:$0xff] }
 0x1c2   :  { %2665 = vmatprep.subr.mxu1 %v2508_v10  ;;  %2735 = vmatpush2.msra.mxu0 %v2573_v13 }
 0x1c3   :  { %2666 = vmatpush2.msra.mxu1 %v2507_v12  ;;  %2736 = vmatprep.subr.mxu0 %v2572_v15 }
 0x1c4   :  { %2667 = vmatprep.subr.mxu1 %v2506_v14  ;;  %2737 = vmatpush2.msra.mxu0 %v2571_v17 }
 0x1c5   :  { %2668 = vmatpush2.msra.mxu1 %v2505_v16  ;;  %2738 = vmatprep.subr.mxu0 %v2570_v19  ;;  %v2617_v19 = vld [vmem:[%s7957_s3 + $0x4f0] sm:$0xff] }
 0x1c6   :  { %2669 = vmatprep.subr.mxu1 %v2504_v18  ;;  %2739 = vmatpush2.msra.mxu0 %v2569_v24 }
 0x1c7   :  { %2670 = vmatpush2.msra.mxu1 %v2503_v21  ;;  %2740 = vmatprep.subr.mxu0 %v2568_v32  ;;  %v2616_v21 = vld [vmem:[%s7957_s3 + $0x4e8] sm:$0xff] }
 0x1c8   :  { %2671 = vmatprep.subr.mxu1 %v2502_v26  ;;  %2741 = vmatpush2.msra.mxu0 %v2567_v35  ;;  %v2615_v26 = vld [vmem:[%s7957_s3 + $0x4e0] sm:$0xff] }
 0x1c9   :  { %2672 = vmatpush2.msra.mxu1 %v2501_v34  ;;  %2742 = vmatprep.subr.mxu0 %v2566_v40  ;;  %v2610_v40 = vld [vmem:[%s7957_s3 + $0x4b8] sm:$0xff] }
 0x1ca   :  { %2673 = vmatprep.subr.mxu1 %v2500_v36  ;;  %2743 = vmatpush2.msra.mxu0 %v2565_v42  ;;  %v2614_v36 = vld [vmem:[%s7957_s3 + $0x4d8] sm:$0xff]  ;;  %v2608_v42 = vld [vmem:[%s7957_s3 + $0x4a8] sm:$0xff] }
 0x1cb   :  { %2674 = vmatpush2.msra.mxu1 %v2499_v37  ;;  %2744 = vmatprep.subr.mxu0 %v2564_v44  ;;  %v2613_v37 = vld [vmem:[%s7957_s3 + $0x4d0] sm:$0xff]  ;;  %v2606_v44 = vld [vmem:[%s7957_s3 + $0x498] sm:$0xff] }
 0x1cc   :  { %2675 = vmatprep.subr.mxu1 %v2498_v38  ;;  %2745 = vmatpush2.msra.mxu0 %v2563_v46  ;;  %v2612_v38 = vld [vmem:[%s7957_s3 + $0x4c8] sm:$0xff] }
 0x1cd   :  { %2676 = vmatpush2.msra.mxu1 %v2497_v39  ;;  %2746 = vmatprep.subr.mxu0 %v2562_v49  ;;  %v2611_v39 = vld [vmem:[%s7957_s3 + $0x4c0] sm:$0xff]  ;;  %v2604_v46 = vld [vmem:[%s7957_s3 + $0x488] sm:$0xff]  ;;  %v2601_v49 = vld [vmem:[%s7957_s3 + $0x470] sm:$0xff] }
 0x1ce   :  { %2677 = vmatprep.subr.mxu1 %v2496_v41  ;;  %2747 = vmatpush2.msra.mxu0 %v2561_v53  ;;  %v2609_v41 = vld [vmem:[%s7957_s3 + $0x4b0] sm:$0xff] }
 0x1cf   :  { %2678 = vmatpush2.msra.mxu1 %v2495_v43  ;;  %2748 = vmatprep.subr.mxu0 %v2560_v56  ;;  %v2607_v43 = vld [vmem:[%s7957_s3 + $0x4a0] sm:$0xff]  ;;  %v2597_v53 = vld [vmem:[%s7957_s3 + $0x450] sm:$0xff]  ;;  %v2594_v56 = vld [vmem:[%s7957_s3 + $0x438] sm:$0xff] }
 0x1d0   :  { %2679 = vmatprep.subr.mxu1 %v2494_v45  ;;  %2749 = vmatpush2.msra.mxu0 %v2559_v57  ;;  %v2605_v45 = vld [vmem:[%s7957_s3 + $0x490] sm:$0xff] }
 0x1d1   :  { %2680 = vmatpush2.msra.mxu1 %v2493_v48  ;;  %2750 = vmatprep.subr.mxu0 %v2558_v61  ;;  %v2602_v48 = vld [vmem:[%s7957_s3 + $0x478] sm:$0xff]  ;;  %v2593_v57 = vld [vmem:[%s7957_s3 + $0x430] sm:$0xff] }
 0x1d2   :  { %2681 = vmatprep.subr.mxu1 %v2492_v52  ;;  %2751 = vmatpush2.msra.mxu0 %v2557_v2  ;;  %v2598_v52 = vld [vmem:[%s7957_s3 + $0x458] sm:$0xff] }
 0x1d3   :  { %2682 = vmatpush2.msra.mxu1 %v2491_v55  ;;  %2752 = vmatprep.subr.mxu0 %v2556_v7  ;;  %v2595_v55 = vld [vmem:[%s7957_s3 + $0x440] sm:$0xff] }
 0x1d4   :  { %2761 = vmatprep.subr.mxu1 %v2618_v58  ;;  %2753 = vmatpush2.msra.mxu0 %v2555_v11  ;;  %v2592_v58 = vld [vmem:[%s7957_s3 + $0x428] sm:$0xff] }
 0x21c   :  { %v6426_v47 = vpop.permute.xlu1 %6425 }
 0x21d   :  { %v6428_v50 = vunpack.i.h.bf16 %v6426_v47  ;;  %v6427_v51 = vunpack.i.l.bf16 %v6426_v47  ;;  %v2603_v47 = vld [vmem:[%s7957_s3 + $0x480] sm:$0xff] }
 0x21e   :  { %v6436_v54 = vpop.permute.xlu0 %6435 }
 0x21f   :  { %v2404_v59 = vsel %vm2402_vm12, %v6427_v51, %v6428_v50  ;;  %v6438_v62 = vunpack.i.h.bf16 %v6436_v54  ;;  %v6437_v0 = vunpack.i.l.bf16 %v6436_v54  ;;  %v2596_v54 = vld [vmem:[%s7957_s3 + $0x448] sm:$0xff] }
 0x220   :  { %v6431_v60 = vpop.permute.xlu1 %6430  ;;  %v2414_v9 = vmax.f32 %v2363_v27, %v2404_v59  ;;  %v2591_v59 = vld [vmem:[%s7957_s3 + $0x420] sm:$0xff] }
 0x221   :  { %v6433_v63 = vunpack.i.h.bf16 %v6431_v60  ;;  %v6432_v1 = vunpack.i.l.bf16 %v6431_v60  ;;  %v2407_v12 = vsel %vm2402_vm12, %v6437_v0, %v6438_v62  ;;  %v2424_v23 = vmax.f32 %v6438_v62, 0.0  ;;  %v2590_v60 = vld [vmem:[%s7957_s3 + $0x418] sm:$0xff]  ;;  %v2589_v62 = vld [vmem:[%s7957_s3 + $0x410] sm:$0xff] }
 0x222   :  { %v7230_v20 = vmax.f32 %v2366_v31, %v2407_v12 }
 0x223   :  { %v2405_v4 = vsel %vm2402_vm12, %v6428_v50, %v6432_v1  ;;  %v2406_v5 = vsel %vm2402_vm12, %v6432_v1, %v6437_v0  ;;  %v2403_v6 = vsel %vm2402_vm12, %v6433_v63, %v6427_v51  ;;  %v2600_v50 = vld [vmem:[%s7957_s3 + $0x468] sm:$0xff]  ;;  %v2599_v51 = vld [vmem:[%s7957_s3 + $0x460] sm:$0xff] }
 0x224   :  { %v2413_v8 = vmax.f32 %v2362_v30, %v2403_v6  ;;  %v2415_v10 = vmax.f32 %v2364_v29, %v2405_v4  ;;  %v2416_v22 = vmax.f32 %v2365_v33, %v2406_v5  ;;  %v2588_v63 = vld [vmem:[%s7957_s3 + $0x408] sm:$0xff]  ;;  %v2587_v1 = vld [vmem:[%s7957_s3 + $0x400] sm:$0xff]  ;;  %s6468_s3 = smov 123  }
 0x226   :  { %2431 = vrot.lane.b32.xlu0 %v2413_v8, %s6466_s0  ;;  %v6439_v13 = vpack.i.bf16 %v2415_v10, %v2414_v9  ;;  %v6444_v27 = vpack.i.bf16 %v7230_v20, %v2416_v22 }
 0x228   :  { %6440 = vrot.lane.b32.xlu1 %v6439_v13, %s6466_s0 }
 0x22a   :  { %2441 = vrot.lane.b32.xlu0 %v2424_v23, %s6466_s0  ;;  %v3711_v23 = vld [vmem:[%s7958_s5] sm:$0xff] }
 0x22c   :  { %6445 = vrot.lane.b32.xlu1 %v6444_v27, %s6466_s0 }
 0x298   :  { %v2432_v15 = vpop.permute.xlu0 %2431 }
 0x29a   :  { %v6441_v29 = vpop.permute.xlu1 %6440 }
 0x29b   :  { %v6443_v30 = vunpack.i.h.bf16 %v6441_v29  ;;  %v6442_v14 = vunpack.i.l.bf16 %v6441_v29  ;;  %v5893_v29 = vld [vmem:[%s7959_s4 + $0x10] sm:$0xff] }
 0x29c   :  { %v2442_v61 = vpop.permute.xlu0 %2441 }
 0x29d   :  { %v2444_v25 = vsel %vm2443_vm13, %v2432_v15, %v6442_v14  ;;  %v2445_v33 = vsel %vm2443_vm13, %v6442_v14, %v6443_v30 }
 0x29e   :  { %v2454_v16 = vmax.f32 %v2413_v8, %v2444_v25  ;;  %v7237_v17 = vpop.permute.xlu1 %6445  ;;  %v2455_v28 = vmax.f32 %v2414_v9, %v2445_v33  ;;  %v5894_v25 = vld [vmem:[%s7959_s4 + $0x18] sm:$0xff] }
 0x29f   :  { %v6448_v31 = vunpack.i.h.bf16 %v7237_v17  ;;  %v6447_v18 = vunpack.i.l.bf16 %v7237_v17 }
 0x2a0   :  { %2683 = vmatprep.mubr.f32.mxu1 %v2455_v28  ;;  %v2834_v28 = vld [vmem:[%s7959_s4] sm:$0xff] }
 0x2a1   :  { %v2446_v24 = vsel %vm2443_vm13, %v6443_v30, %v6447_v18  ;;  %2684 = vmatmul.mubr.f32.vlgmr.msra.gmra.mxu1 %v2454_v16  ;;  %v2447_v32 = vsel %vm2443_vm13, %v6447_v18, %v6448_v31  ;;  %v2448_v0 = vsel %vm2443_vm13, %v6448_v31, %v2442_v61  ;;  %vm5805_vm13 = vcmask 15360  }
 0x2a2   :  { %v2456_v34 = vmax.f32 %v2415_v10, %v2446_v24  ;;  %2762 = vmatpush1.msra.mxu1 %v2617_v19  ;;  %v2457_v35 = vmax.f32 %v2416_v22, %v2447_v32  ;;  %2825 = vmatprep.mubr.f32.mxu1 %v6453_v3  ;;  %v2458_v2 = vmax.f32 %v7230_v20, %v2448_v0  ;;  %v3712_v22 = vld [vmem:[%s7958_s5 + $0x8] sm:$0xff]  ;;  %v5899_v32 = vld [vmem:[%s7959_s4 + $0x20] sm:$0xff] }
 0x2a3   :  { %2763 = vmatprep.subr.mxu1 %v2616_v21  ;;  %v2835_v21 = vld [vmem:[%s7959_s4 + $0x8] sm:$0xff] }
 0x2a4   :  { %2764 = vmatpush1.msra.mxu1 %v2615_v26  ;;  %2754 = vmatprep.mubr.f32.mxu0 %v2457_v35 }
 0x2a5   :  { %2765 = vmatprep.subr.mxu1 %v2614_v36  ;;  %2755 = vmatmul.mubr.f32.vlgmr.msra.gmra.mxu0 %v2456_v34  ;;  %v5907_v34 = vld [vmem:[%s7959_s4 + $0x40] sm:$0xff] }
 0x2a6   :  { %2766 = vmatpush1.msra.mxu1 %v2613_v37  ;;  %2922 = vmatprep.mubr.f32.mxu0 %v6453_v3 }
 0x2a7   :  { %2767 = vmatprep.subr.mxu1 %v2612_v38 }
 0x2a8   :  { %2768 = vmatpush1.msra.mxu1 %v2611_v39  ;;  %v5900_v39 = vld [vmem:[%s7959_s4 + $0x28] sm:$0xff] }
 0x2a9   :  { %2769 = vmatprep.subr.mxu1 %v2610_v40  ;;  %v5908_v40 = vld [vmem:[%s7959_s4 + $0x48] sm:$0xff] }
 0x2aa   :  { %2770 = vmatpush1.msra.mxu1 %v2609_v41 }
 0x2ab   :  { %2771 = vmatprep.subr.mxu1 %v2608_v42 }
 0x2ac   :  { %2772 = vmatpush1.msra.mxu1 %v2607_v43  ;;  %v5903_v43 = vld [vmem:[%s7959_s4 + $0x30] sm:$0xff] }
 0x2ad   :  { %2773 = vmatprep.subr.mxu1 %v2606_v44  ;;  %v5915_v44 = vld [vmem:[%s7959_s4 + $0x60] sm:$0xff] }
 0x2ae   :  { %2774 = vmatpush1.msra.mxu1 %v2605_v45 }
 0x2af   :  { %2775 = vmatprep.subr.mxu1 %v2604_v46 }
 0x2b0   :  { %2776 = vmatpush1.msra.mxu1 %v2603_v47 }
 0x2b1   :  { %2777 = vmatprep.subr.mxu1 %v2602_v48 }
 0x2b2   :  { %2778 = vmatpush1.msra.mxu1 %v2601_v49  ;;  %v5904_v49 = vld [vmem:[%s7959_s4 + $0x38] sm:$0xff] }
 0x2b3   :  { %2779 = vmatprep.subr.mxu1 %v2600_v50  ;;  %v5916_v50 = vld [vmem:[%s7959_s4 + $0x68] sm:$0xff] }
 0x2b4   :  { %2780 = vmatpush1.msra.mxu1 %v2599_v51 }
 0x2b5   :  { %2781 = vmatprep.subr.mxu1 %v2598_v52 }
 0x2b6   :  { %2782 = vmatpush1.msra.mxu1 %v2597_v53  ;;  %v5911_v53 = vld [vmem:[%s7959_s4 + $0x50] sm:$0xff] }
 0x2b7   :  { %2783 = vmatprep.subr.mxu1 %v2596_v54  ;;  %v5923_v54 = vld [vmem:[%s7959_s4 + $0x80] sm:$0xff] }
 0x2b8   :  { %2784 = vmatpush1.msra.mxu1 %v2595_v55 }
 0x2b9   :  { %2785 = vmatprep.subr.mxu1 %v2594_v56 }
 0x2ba   :  { %2786 = vmatpush1.msra.mxu1 %v2593_v57  ;;  %v5912_v57 = vld [vmem:[%s7959_s4 + $0x58] sm:$0xff] }
 0x2bb   :  { %2787 = vmatprep.subr.mxu1 %v2592_v58  ;;  %v5924_v58 = vld [vmem:[%s7959_s4 + $0x88] sm:$0xff] }
 0x2bc   :  { %2788 = vmatpush1.msra.mxu1 %v2591_v59  ;;  %v5919_v59 = vld [vmem:[%s7959_s4 + $0x70] sm:$0xff] }
 0x2bd   :  { %2789 = vmatprep.subr.mxu1 %v2590_v60  ;;  %v5920_v60 = vld [vmem:[%s7959_s4 + $0x78] sm:$0xff] }
 0x2be   :  { %2790 = vmatpush1.msra.mxu1 %v2589_v62 }
 0x2bf   :  { %2791 = vmatprep.subr.mxu1 %v2588_v63 }
 0x2c0   :  { %2792 = vmatpush1.msra.mxu1 %v2587_v1 }
 0x2c1   :  { %2826 = vmatmul.mubr.f32.vlgmr.msra.gmra.mxu1 %v2458_v2 }
 0x2c2   :  { %3302 = vmatprep.mubr.f32.mxu1 %v6453_v3 }
 0x361   :  { %v2685_v4 = vpop.f32.mrf.mxu1 }
 0x363   :  { %v2687_v6 = vpop.f32.mrf.mxu1 }
 0x365   :  { %v2756_v5 = vpop.f32.mrf.mxu0 }
 0x366   :  { %v2757_v8 = vadd.f32 %v2756_v5, %v2685_v4 }
 0x367   :  { %v2758_v7 = vpop.f32.mrf.mxu0 }
 0x368   :  { %v2759_v10 = vadd.f32 %v2758_v7, %v2687_v6 }
 0x381   :  { %v2827_v9 = vpop.f32.mrf.mxu1 }
 0x382   :  { %v2828_v11 = vadd.f32 %v2827_v9, %v2757_v8 }
 0x383   :  { %v2829_v12 = vpop.f32.mrf.mxu1 }
 0x384   :  { %v2830_v13 = vadd.f32 %v2829_v12, %v2759_v10  ;;  %2843 = vrot.lane.b32.xlu1 %v2828_v11, %s6467_s2 }
 0x386   :  { %2845 = vrot.lane.b32.xlu0 %v2830_v13, %s6467_s2 }
 0x388   :  { %2935 = vrot.lane.b32.xlu1 %v2828_v11, %s6468_s3 }
 0x38a   :  { %2937 = vrot.lane.b32.xlu0 %v2830_v13, %s6468_s3  ;;  %s6476_s3 = smov 126  }
 0x38c   :  { %3029 = vrot.lane.b32.xlu1 %v2828_v11, %s6469_s14 }
 0x38e   :  { %3031 = vrot.lane.b32.xlu0 %v2830_v13, %s6469_s14  ;;  %s6477_s14 = smov 124  }
 0x390   :  { %3127 = vrot.lane.b32.xlu1 %v2828_v11, %s6456_s24 }
 0x392   :  { %3129 = vrot.lane.b32.xlu0 %v2830_v13, %s6456_s24 }
 0x394   :  { %3224 = vrot.lane.b32.xlu1 %v2828_v11, %s6470_s15 }
 0x396   :  { %3226 = vrot.lane.b32.xlu0 %v2830_v13, %s6470_s15 }
 0x398   :  { %3322 = vrot.lane.b32.xlu1 %v2828_v11, %s6471_s16 }
 0x39a   :  { %3324 = vrot.lane.b32.xlu0 %v2830_v13, %s6471_s16  ;;  %s6478_s16 = smov 120  }
 0x39c   :  { %3420 = vrot.lane.b32.xlu1 %v2828_v11, %s6472_s17 }
 0x39e   :  { %3422 = vrot.lane.b32.xlu0 %v2830_v13, %s6472_s17  ;;  %s6479_s17 = smov 116  }
 0x3a0   :  { %3518 = vrot.lane.b32.xlu1 %v2828_v11, %s6473_s18 }
 0x3a2   :  { %3520 = vrot.lane.b32.xlu0 %v2830_v13, %s6473_s18 }
 0x3a4   :  { %3616 = vrot.lane.b32.xlu1 %v2828_v11, %s6474_s19 }
 0x3a6   :  { %3618 = vrot.lane.b32.xlu0 %v2830_v13, %s6474_s19 }
 0x3a8   :  { %3715 = vperm.xlu1 %6449, %v3711_v23  }
 0x3aa   :  { %3720 = vperm.xlu0 %6423, %v3712_v22  }
 0x3f6   :  { %v2844_v20 = vpop.permute.xlu1 %2843 }
 0x3f8   :  { %v2846_v27 = vpop.permute.xlu0 %2845 }
 0x3f9   :  { %v2848_v30 = vsel %vm2847_vm14, %v2844_v20, %v2846_v27  ;;  %2888 = vmatprep.subr.mxu0 %v2846_v27 }
 0x3fa   :  { %v2936_v14 = vpop.permute.xlu1 %2935  ;;  %2889 = vmatpush1.msra.mxu0 %v2848_v30 }
 0x3fb   :  { %5895 = vmatmul.mubr.msk.f32.vlgmr.msra.gmra.mxu0 %vm2851_vm15, %v5893_v29 }
 0x3fc   :  { %v2938_v15 = vpop.permute.xlu0 %2937  ;;  %2928 = vmatprep.mubr.f32.mxu0 %v6453_v3 }
 0x3fd   :  { %v2940_v33 = vsel %vm2939_vm0, %v2936_v14, %v2938_v15  ;;  %2979 = vmatprep.subr.mxu0 %v2938_v15 }
 0x3fe   :  { %v3030_v16 = vpop.permute.xlu1 %3029  ;;  %2980 = vmatpush1.msra.mxu0 %v2940_v33 }
 0x3ff   :  { %5896 = vmatmul.mubr.msk.f32.gmra.mxu0 %vm2851_vm15, %v5894_v25 }
 0x400   :  { %v3032_v17 = vpop.permute.xlu0 %3031  ;;  %3013 = vmatprep.mubr.f32.mxu0 %v6453_v3 }
 0x401   :  { %v3034_v31 = vsel %vm3033_vm1, %v3030_v16, %v3032_v17  ;;  %3073 = vmatprep.subr.mxu0 %v3032_v17 }
 0x402   :  { %v3128_v18 = vpop.permute.xlu1 %3127 }
 0x403   :  { %5897 = vmatmul.mubr.msk.f32.vlgmr.msra.gmra.mxu0 %vm2851_vm15, %v2834_v28 }
 0x404   :  { %3074 = vmatpush1.msra.mxu0 %v3034_v31  ;;  %v3130_v19 = vpop.permute.xlu0 %3129  ;;  %3019 = vmatprep.mubr.f32.mxu0 %v6453_v3 }
 0x405   :  { %3170 = vmatprep.subr.mxu0 %v3130_v19  ;;  %v3131_v37 = vsel %vm561_vm5, %v3128_v18, %v3130_v19  ;;  %vm3620_vm5 = vcmask 826368  }
 0x406   :  { %v3225_v24 = vpop.permute.xlu1 %3224 }
 0x407   :  { %5898 = vmatmul.mubr.msk.f32.gmra.mxu0 %vm2851_vm15, %v2835_v21 }
 0x408   :  { %v3227_v26 = vpop.permute.xlu0 %3226  ;;  %3107 = vmatprep.mubr.f32.mxu0 %v6453_v3 }
 0x409   :  { %v3229_v35 = vsel %vm3228_vm2, %v3225_v24, %v3227_v26  ;;  %3268 = vmatprep.subr.mxu1 %v3227_v26 }
 0x40a   :  { %v3323_v36 = vpop.permute.xlu1 %3322  ;;  %3269 = vmatpush1.msra.mxu1 %v3229_v35 }
 0x40b   :  { %5901 = vmatmul.mubr.msk.f32.vlgmr.msra.gmra.mxu0 %vm2851_vm15, %v5899_v32  ;;  %5909 = vmatmul.mubr.msk.f32.vlgmr.msra.gmra.mxu1 %vm2851_vm15, %v5907_v34 }
 0x40c   :  { %3171 = vmatpush1.msra.mxu0 %v3131_v37  ;;  %v3325_v38 = vpop.permute.xlu0 %3324  ;;  %3113 = vmatprep.mubr.f32.mxu0 %v6453_v3 }
 0x40d   :  { %3366 = vmatprep.subr.mxu0 %v3325_v38  ;;  %3308 = vmatprep.mubr.f32.mxu1 %v6453_v3  ;;  %v3327_v47 = vsel %vm3326_vm4, %v3323_v36, %v3325_v38 }
 0x40e   :  { %v3421_v41 = vpop.permute.xlu1 %3420 }
 0x40f   :  { %5902 = vmatmul.mubr.msk.f32.gmra.mxu0 %vm2851_vm15, %v5900_v39  ;;  %5910 = vmatmul.mubr.msk.f32.gmra.mxu1 %vm2851_vm15, %v5908_v40 }
 0x410   :  { %v3423_v42 = vpop.permute.xlu0 %3422  ;;  %3204 = vmatprep.mubr.f32.mxu0 %v6453_v3  ;;  %3498 = vmatprep.mubr.f32.mxu1 %v6453_v3 }
 0x411   :  { %v3425_v45 = vsel %vm3424_vm3, %v3421_v41, %v3423_v42  ;;  %3464 = vmatprep.subr.mxu1 %v3423_v42 }
 0x412   :  { %v3519_v46 = vpop.permute.xlu1 %3518  ;;  %3465 = vmatpush1.msra.mxu1 %v3425_v45 }
 0x413   :  { %5905 = vmatmul.mubr.msk.f32.vlgmr.msra.gmra.mxu0 %vm2851_vm15, %v5903_v43  ;;  %5917 = vmatmul.mubr.msk.f32.vlgmr.msra.gmra.mxu1 %vm2851_vm15, %v5915_v44 }
 0x414   :  { %3367 = vmatpush1.msra.mxu0 %v3327_v47  ;;  %v3521_v48 = vpop.permute.xlu0 %3520  ;;  %3210 = vmatprep.mubr.f32.mxu0 %v6453_v3 }
 0x415   :  { %3562 = vmatprep.subr.mxu0 %v3521_v48  ;;  %3504 = vmatprep.mubr.f32.mxu1 %v6453_v3  ;;  %v3523_v56 = vsel %vm3522_vm6, %v3519_v46, %v3521_v48 }
 0x416   :  { %v3617_v51 = vpop.permute.xlu1 %3616 }
 0x417   :  { %5906 = vmatmul.mubr.msk.f32.gmra.mxu0 %vm2851_vm15, %v5904_v49  ;;  %5918 = vmatmul.mubr.msk.f32.gmra.mxu1 %vm2851_vm15, %v5916_v50 }
 0x418   :  { %v3619_v52 = vpop.permute.xlu0 %3618  ;;  %3400 = vmatprep.mubr.f32.mxu0 %v6453_v3  ;;  %3694 = vmatprep.mubr.f32.mxu1 %v6453_v3 }
 0x419   :  { %v3621_v55 = vsel %vm3620_vm5, %v3617_v51, %v3619_v52  ;;  %3660 = vmatprep.subr.mxu1 %v3619_v52 }
 0x41a   :  { %3661 = vmatpush1.msra.mxu1 %v3621_v55 }
 0x41b   :  { %5913 = vmatmul.mubr.msk.f32.vlgmr.msra.gmra.mxu0 %vm2851_vm15, %v5911_v53  ;;  %5925 = vmatmul.mubr.msk.f32.vlgmr.msra.gmra.mxu1 %vm2851_vm15, %v5923_v54 }
 0x41c   :  { %3563 = vmatpush1.msra.mxu0 %v3523_v56  ;;  %3406 = vmatprep.mubr.f32.mxu0 %v6453_v3 }
 0x41d   :  { %3700 = vmatprep.mubr.f32.mxu1 %v6453_v3  ;;  %3818 = vmatprep.subr.mxu0 %v6453_v3 }
 0x41f   :  { %5914 = vmatmul.mubr.msk.f32.gmra.mxu0 %vm2851_vm15, %v5912_v57  ;;  %5926 = vmatmul.mubr.msk.f32.gmra.mxu1 %vm2851_vm15, %v5924_v58 }
 0x420   :  { %3596 = vmatprep.mubr.f32.mxu0 %v6453_v3 }
 0x423   :  { %5921 = vmatmul.mubr.msk.f32.vlgmr.msra.gmra.mxu0 %vm2851_vm15, %v5919_v59  ;;  %v3716_v53 = vpop.permute.xlu1 %3715 }
 0x424   :  { %3602 = vmatprep.mubr.f32.mxu0 %v6453_v3 }
 0x427   :  { %5922 = vmatmul.mubr.msk.f32.gmra.mxu0 %vm2851_vm15, %v5920_v60 }
 0x4bb   :  { %v2924_v61 = vpop.f32.mrf.mxu0 }
 0x4bd   :  { %v2926_v62 = vpop.f32.mrf.mxu0 }
 0x4bf   :  { %v2930_v0 = vpop.f32.mrf.mxu0 }
 0x4c1   :  { %v2932_v63 = vpop.f32.mrf.mxu0 }
 0x4c3   :  { %v3015_v1 = vpop.f32.mrf.mxu0 }
 0x4c4   :  { %v3016_v20 = vadd.f32 %v3015_v1, %v2924_v61 }
 0x4c5   :  { %v3017_v2 = vpop.f32.mrf.mxu0 }
 0x4c6   :  { %v3018_v30 = vadd.f32 %v3017_v2, %v2926_v62 }
 0x4c7   :  { %v3021_v4 = vpop.f32.mrf.mxu0 }
 0x4c8   :  { %v3022_v33 = vadd.f32 %v3021_v4, %v2930_v0 }
 0x4c9   :  { %v3023_v5 = vpop.f32.mrf.mxu0 }
 0x4ca   :  { %v3024_v31 = vadd.f32 %v3023_v5, %v2932_v63  ;;  %v3721_v5 = vpop.permute.xlu0 %3720 }
 0x4cb   :  { %v3109_v6 = vpop.f32.mrf.mxu0  ;;  %v3304_v7 = vpop.f32.mrf.mxu1 }
 0x4cc   :  { %v3120_v14 = vadd.f32 %v3109_v6, %v3016_v20 }
 0x4cd   :  { %v3111_v8 = vpop.f32.mrf.mxu0  ;;  %v3306_v9 = vpop.f32.mrf.mxu1 }
 0x4ce   :  { %v3121_v16 = vadd.f32 %v3111_v8, %v3018_v30 }
 0x4cf   :  { %v3115_v10 = vpop.f32.mrf.mxu0  ;;  %v3310_v11 = vpop.f32.mrf.mxu1 }
 0x4d0   :  { %v3122_v18 = vadd.f32 %v3115_v10, %v3022_v33  ;;  %v3795_v33 = vld [vmem:[%s7960_s6 + $0x38] sm:$0xff] }
 0x4d1   :  { %v3117_v12 = vpop.f32.mrf.mxu0  ;;  %v3312_v13 = vpop.f32.mrf.mxu1 }
 0x4d2   :  { %v3123_v26 = vadd.f32 %v3117_v12, %v3024_v31  ;;  %v3791_v31 = vld [vmem:[%s7960_s6 + $0x18] sm:$0xff] }
 0x4d3   :  { %v3206_v22 = vpop.f32.mrf.mxu0  ;;  %v3500_v23 = vpop.f32.mrf.mxu1 }
 0x4d4   :  { %v3217_v17 = vadd.f32 %v3206_v22, %v3120_v14  ;;  %v3802_v22 = vld [vmem:[%s7960_s6 + $0x70] sm:$0xff] }
 0x4d5   :  { %v3208_v27 = vpop.f32.mrf.mxu0  ;;  %v3502_v29 = vpop.f32.mrf.mxu1  ;;  %v3798_v14 = vld [vmem:[%s7960_s6 + $0x50] sm:$0xff] }
 0x4d6   :  { %v3218_v19 = vadd.f32 %v3208_v27, %v3121_v16  ;;  %v3315_v32 = vadd.f32 %v3304_v7, %v3217_v17  ;;  %v3800_v27 = vld [vmem:[%s7960_s6 + $0x60] sm:$0xff]  ;;  %v3794_v16 = vld [vmem:[%s7960_s6 + $0x30] sm:$0xff]  ;;  %v3793_v17 = vld [vmem:[%s7960_s6 + $0x28] sm:$0xff] }
 0x4d7   :  { %v3212_v15 = vpop.f32.mrf.mxu0  ;;  %v3506_v25 = vpop.f32.mrf.mxu1 }
 0x4d8   :  { %v3219_v34 = vadd.f32 %v3212_v15, %v3122_v18  ;;  %v3316_v36 = vadd.f32 %v3306_v9, %v3218_v19  ;;  %v3797_v15 = vld [vmem:[%s7960_s6 + $0x48] sm:$0xff]  ;;  %v3790_v18 = vld [vmem:[%s7960_s6 + $0x10] sm:$0xff] }
 0x4d9   :  { %v3214_v28 = vpop.f32.mrf.mxu0  ;;  %v3508_v24 = vpop.f32.mrf.mxu1  ;;  %v3789_v19 = vld [vmem:[%s7960_s6 + $0x8] sm:$0xff] }
 0x4da   :  { %v3220_v37 = vadd.f32 %v3214_v28, %v3123_v26  ;;  %v3317_v41 = vadd.f32 %v3310_v11, %v3219_v34  ;;  %v3792_v28 = vld [vmem:[%s7960_s6 + $0x20] sm:$0xff]  ;;  %v3810_v26 = vld [vmem:[%s7960_s6 + $0xb0] sm:$0xff] }
 0x4db   :  { %v3402_v21 = vpop.f32.mrf.mxu0  ;;  %v3696_v40 = vpop.f32.mrf.mxu1  ;;  %v3808_v34 = vld [vmem:[%s7960_s6 + $0xa0] sm:$0xff] }
 0x4dc   :  { %v3413_v38 = vadd.f32 %v3402_v21, %v3315_v32  ;;  %v3318_v44 = vadd.f32 %v3312_v13, %v3220_v37  ;;  %v3803_v13 = vld [vmem:[%s7960_s6 + $0x78] sm:$0xff]  ;;  %v3788_v21 = vld [vmem:[%s7960_s6] sm:$0xff]  ;;  %v3809_v32 = vld [vmem:[%s7960_s6 + $0xa8] sm:$0xff] }
 0x4dd   :  { %v3404_v35 = vpop.f32.mrf.mxu0  ;;  %v3698_v48 = vpop.f32.mrf.mxu1  ;;  %3819 = vmatpush1.msra.mxu0 %v3803_v13  ;;  %v3805_v37 = vld [vmem:[%s7960_s6 + $0x88] sm:$0xff]  ;;  %v5931_v13 = vld [vmem:[%s7961_s7 + $0x30] sm:$0xff] }
 0x4de   :  { %v3414_v42 = vadd.f32 %v3404_v35, %v3316_v36  ;;  %v3511_v45 = vadd.f32 %v3500_v23, %v3413_v38  ;;  %3820 = vmatprep.subr.mxu0 %v6453_v3  ;;  %v3801_v23 = vld [vmem:[%s7960_s6 + $0x68] sm:$0xff]  ;;  %v3807_v35 = vld [vmem:[%s7960_s6 + $0x98] sm:$0xff]  ;;  %v3806_v36 = vld [vmem:[%s7960_s6 + $0x90] sm:$0xff] }
 0x4df   :  { %v3408_v39 = vpop.f32.mrf.mxu0  ;;  %v3702_v58 = vpop.f32.mrf.mxu1  ;;  %3821 = vmatpush1.msra.mxu0 %v3802_v22  ;;  %v3804_v38 = vld [vmem:[%s7960_s6 + $0x80] sm:$0xff] }
 0x4e0   :  { %v3415_v46 = vadd.f32 %v3408_v39, %v3317_v41  ;;  %v3512_v49 = vadd.f32 %v3502_v29, %v3414_v42  ;;  %3822 = vmatprep.subr.mxu0 %v6453_v3  ;;  %v3799_v29 = vld [vmem:[%s7960_s6 + $0x58] sm:$0xff] }
 0x4e1   :  { %v3410_v43 = vpop.f32.mrf.mxu0  ;;  %v3704_v6 = vpop.f32.mrf.mxu1  ;;  %3823 = vmatpush1.msra.mxu0 %v3801_v23 }
 0x4e2   :  { %v3416_v50 = vadd.f32 %v3410_v43, %v3318_v44  ;;  %v3513_v54 = vadd.f32 %v3506_v25, %v3415_v46  ;;  %3824 = vmatprep.subr.mxu0 %v6453_v3  ;;  %v3796_v25 = vld [vmem:[%s7960_s6 + $0x40] sm:$0xff] }
 0x4e3   :  { %v3598_v47 = vpop.f32.mrf.mxu0  ;;  %3825 = vmatpush1.msra.mxu0 %v3800_v27  ;;  %v3896_v27 = vld [vmem:[%s7961_s7] sm:$0xff] }
 0x4e4   :  { %v3609_v51 = vadd.f32 %v3598_v47, %v3511_v45  ;;  %v3514_v59 = vadd.f32 %v3508_v24, %v3416_v50  ;;  %3826 = vmatprep.subr.mxu0 %v6453_v3  ;;  %v3811_v24 = vld [vmem:[%s7960_s6 + $0xb8] sm:$0xff] }
 0x4e5   :  { %v3600_v52 = vpop.f32.mrf.mxu0  ;;  %3827 = vmatpush1.msra.mxu0 %v3799_v29 }
 0x4e6   :  { %v3707_v55 = vadd.f32 %v3696_v40, %v3609_v51  ;;  %v3610_v56 = vadd.f32 %v3600_v52, %v3512_v49  ;;  %3828 = vmatprep.subr.mxu0 %v6453_v3 }
 0x4e7   :  { %v3604_v57 = vpop.f32.mrf.mxu0  ;;  %3829 = vmatpush1.msra.mxu0 %v3798_v14  ;;  %v3897_v14 = vld [vmem:[%s7961_s7 + $0x8] sm:$0xff] }
 0x4e8   :  { %v3708_v60 = vadd.f32 %v3698_v48, %v3610_v56  ;;  %v7451_v61 = vadd.f32 %v3716_v53, %v3707_v55  ;;  %v3611_v62 = vadd.f32 %v3604_v57, %v3513_v54  ;;  %3830 = vmatprep.subr.mxu0 %v6453_v3 }
 0x4e9   :  { %v3606_v0 = vpop.f32.mrf.mxu0  ;;  %3831 = vmatpush1.msra.mxu0 %v3797_v15  ;;  %v3898_v15 = vld [vmem:[%s7961_s7 + $0x10] sm:$0xff] }
 0x4ea   :  { %v3724_v63 = vadd.f32 %v3716_v53, %v3708_v60  ;;  %v3727_v1 = vmax.f32 %v7451_v61, 0.0  ;;  %v3709_v2 = vadd.f32 %v3702_v58, %v3611_v62  ;;  %v3612_v4 = vadd.f32 %v3606_v0, %v3514_v59  ;;  %3832 = vmatprep.subr.mxu0 %v6453_v3  ;;  %v5929_v60 = vld [vmem:[%s7961_s7 + $0x20] sm:$0xff] }
 0x4eb   :  { %3833 = vmatpush1.msra.mxu0 %v3796_v25  ;;  %6224 = vmatprep.mubr.msk.f32.mxu1 %vm3915_vm11, %v5929_v60  ;;  %v5967_v60 = vld [vmem:[%s7961_s7 + $0xb0] sm:$0xff] }
 0x4ec   :  { %v3728_v7 = vmax.f32 %v3724_v63, 0.0  ;;  %v7454_v8 = vadd.f32 %v3721_v5, %v3709_v2  ;;  %v3710_v9 = vadd.f32 %v3704_v6, %v3612_v4  ;;  %3747 = vrot.lane.b32.xlu1 %v3727_v1, %s6465_s1  ;;  %3834 = vmatprep.subr.mxu0 %v6453_v3  ;;  %v5680_v2 = vld [vmem:[%s7962_s8 + $0x10] sm:$0xff]  ;;  %v5678_v4 = vld [vmem:[%s7962_s8] sm:$0xff]  ;;  %v5713_v6 = vld [vmem:[%s7963_s10 + $0x8] sm:$0x3] }
 0x4ed   :  { %3835 = vmatpush1.msra.mxu0 %v3795_v33 }
 0x4ee   :  { %3736 = vst.msk [vmem:[#allocation4 + $0x8] sm:$0xff] %vm3735_vm8, %v3728_v7  ;;  %v3729_v10 = vmax.f32 %v7454_v8, 0.0  ;;  %v3726_v11 = vadd.f32 %v3721_v5, %v3710_v9  ;;  %3836 = vmatprep.subr.mxu0 %v6453_v3  ;;  %v5681_v5 = vld [vmem:[%s7962_s8 + $0x18] sm:$0xff]  ;;  %v5679_v7 = vld [vmem:[%s7962_s8 + $0x8] sm:$0xff]  ;;  %v5712_v8 = vld [vmem:[%s7963_s10] sm:$0xff] }
 0x4ef   :  { %3837 = vmatpush1.msra.mxu0 %v3794_v16  ;;  %v3899_v16 = vld [vmem:[%s7961_s7 + $0x18] sm:$0xff] }
 0x4f0   :  { %v3730_v12 = vmax.f32 %v3726_v11, 0.0  ;;  %3751 = vrot.lane.b32.xlu1 %v3729_v10, %s6465_s1  ;;  %3838 = vmatprep.subr.mxu0 %v6453_v3 }
 0x4f1   :  { %3839 = vmatpush1.msra.mxu0 %v3793_v17  ;;  %v5941_v17 = vld [vmem:[%s7961_s7 + $0x40] sm:$0xff] }
 0x4f2   :  { %3738 = vst.msk [vmem:[#allocation4 + $0x18] sm:$0xff] %vm3735_vm8, %v3730_v12  ;;  %3840 = vmatprep.subr.mxu0 %v6453_v3  ;;  %v5930_v12 = vld [vmem:[%s7961_s7 + $0x28] sm:$0xff] }
 0x4f3   :  { %3841 = vmatpush1.msra.mxu0 %v3792_v28 }
 0x4f4   :  { %3842 = vmatprep.subr.mxu0 %v6453_v3 }
 0x4f5   :  { %v7475_v20 = vld [vmem:[#allocation4 + $0x8] sm:$0xff]  ;;  %3843 = vmatpush1.msra.mxu0 %v3791_v31 }
 0x4f6   :  { %3749 = vrot.lane.b32.xlu0 %v7475_v20, %s6465_s1  ;;  %3844 = vmatprep.subr.mxu0 %v6453_v3 }
 0x4f7   :  { %3845 = vmatpush1.msra.mxu0 %v3790_v18  ;;  %v5942_v18 = vld [vmem:[%s7961_s7 + $0x48] sm:$0xff] }
 0x4f8   :  { %3846 = vmatprep.subr.mxu0 %v6453_v3 }
 0x4f9   :  { %v7487_v30 = vld [vmem:[#allocation4 + $0x18] sm:$0xff]  ;;  %3847 = vmatpush1.msra.mxu0 %v3789_v19 }
 0x4fa   :  { %3753 = vrot.lane.b32.xlu0 %v7487_v30, %s6465_s1  ;;  %3848 = vmatprep.subr.mxu0 %v6453_v3 }
 0x4fb   :  { %3849 = vmatpush1.msra.mxu0 %v3788_v21 }
 0x4fc   :  { %3866 = vmatprep.subr.mxu0 %v6453_v3 }
 0x4fd   :  { %3867 = vmatpush2.msra.mxu0 %v3811_v24  ;;  %v5943_v24 = vld [vmem:[%s7961_s7 + $0x50] sm:$0xff] }
 0x4fe   :  { %3868 = vmatprep.subr.mxu0 %v6453_v3 }
 0x4ff   :  { %3869 = vmatpush2.msra.mxu0 %v3810_v26  ;;  %v5944_v26 = vld [vmem:[%s7961_s7 + $0x58] sm:$0xff] }
 0x500   :  { %3870 = vmatprep.subr.mxu0 %v6453_v3 }
 0x501   :  { %3871 = vmatpush2.msra.mxu0 %v3809_v32  ;;  %v5974_v32 = vld [vmem:[%s7961_s7 + $0xc8] sm:$0xff] }
 0x502   :  { %3872 = vmatprep.subr.mxu0 %v6453_v3 }
 0x503   :  { %3873 = vmatpush2.msra.mxu0 %v3808_v34 }
 0x504   :  { %3874 = vmatprep.subr.mxu0 %v6453_v3 }
 0x505   :  { %3875 = vmatpush2.msra.mxu0 %v3807_v35 }
 0x506   :  { %3876 = vmatprep.subr.mxu0 %v6453_v3 }
 0x507   :  { %3877 = vmatpush2.msra.mxu0 %v3806_v36  ;;  %v5949_v36 = vld [vmem:[%s7961_s7 + $0x60] sm:$0xff] }
 0x508   :  { %3878 = vmatprep.subr.mxu0 %v6453_v3 }
 0x509   :  { %3879 = vmatpush2.msra.mxu0 %v3805_v37  ;;  %v5975_v37 = vld [vmem:[%s7961_s7 + $0xd0] sm:$0xff] }
 0x50a   :  { %3880 = vmatprep.subr.mxu0 %v6453_v3 }
 0x50b   :  { %3881 = vmatpush2.msra.mxu0 %v3804_v38  ;;  %v5950_v38 = vld [vmem:[%s7961_s7 + $0x68] sm:$0xff] }
 0x55e   :  { %v3748_v39 = vpop.permute.xlu1 %3747 }
 0x562   :  { %v3752_v44 = vpop.permute.xlu1 %3751 }
 0x568   :  { %v3750_v40 = vpop.permute.xlu0 %3749 }
 0x569   :  { %v3755_v41 = vsel %vm2402_vm12, %v3748_v39, %v3750_v40  ;;  %v3762_v42 = vmax.f32 %v7475_v20, %v3750_v40  ;;  %v5932_v20 = vld [vmem:[%s7961_s7 + $0x38] sm:$0xff] }
 0x56a   :  { %v3761_v43 = vmax.f32 %v3727_v1, %v3755_v41  ;;  %v5973_v1 = vld [vmem:[%s7961_s7 + $0xc0] sm:$0xff]  ;;  %v5951_v41 = vld [vmem:[%s7961_s7 + $0x70] sm:$0xff] }
 0x56b   :  { %3771 = vrot.lane.b32.xlu0 %v3762_v42, %s6475_s12 }
 0x56c   :  { %3769 = vrot.lane.b32.xlu1 %v3761_v43, %s6475_s12  ;;  %v3754_v45 = vpop.permute.xlu0 %3753 }
 0x56d   :  { %v3756_v46 = vsel %vm2402_vm12, %v3752_v44, %v3754_v45  ;;  %v3764_v3 = vmax.f32 %v7487_v30, %v3754_v45  ;;  %v5976_v44 = vld [vmem:[%s7961_s7 + $0xd8] sm:$0xff]  ;;  %v5957_v45 = vld [vmem:[%s7961_s7 + $0x80] sm:$0xff]  ;;  %vm5807_vm12 = vcmask 9216  }
 0x56e   :  { %v3763_v47 = vmax.f32 %v3729_v10, %v3756_v46  ;;  %v5989_v46 = vld [vmem:[%s7961_s7 + $0x100] sm:$0xff] }
 0x56f   :  { %3775 = vrot.lane.b32.xlu0 %v3764_v3, %s6475_s12 }
 0x570   :  { %3773 = vrot.lane.b32.xlu1 %v3763_v47, %s6475_s12 }
 0x5dd   :  { %v3772_v48 = vpop.permute.xlu0 %3771 }
 0x5de   :  { %v3785_v49 = vmax.f32 %v3762_v42, %v3772_v48  ;;  %v3770_v50 = vpop.permute.xlu1 %3769  ;;  %v5952_v42 = vld [vmem:[%s7961_s7 + $0x78] sm:$0xff] }
 0x5df   :  { %v3778_v51 = vsel %vm3777_vm9, %v3770_v50, %v3772_v48  ;;  %v5959_v50 = vld [vmem:[%s7961_s7 + $0x90] sm:$0xff] }
 0x5e0   :  { %v3784_v52 = vmax.f32 %v3761_v43, %v3778_v51  ;;  %5927 = vmatprep.mubr.msk.f32.mxu0 %vm3735_vm8, %v3785_v49  ;;  %v5990_v49 = vld [vmem:[%s7961_s7 + $0x108] sm:$0xff] }
 0x5e1   :  { %v3776_v53 = vpop.permute.xlu0 %3775 }
 0x5e2   :  { %v3787_v54 = vmax.f32 %v3764_v3, %v3776_v53  ;;  %v3774_v55 = vpop.permute.xlu1 %3773  ;;  %3883 = vmatmul.mubr.f32.vlgmr.msra.gmra.mxu0 %v3784_v52  ;;  %v5960_v52 = vld [vmem:[%s7961_s7 + $0x98] sm:$0xff] }
 0x5e3   :  { %v3779_v56 = vsel %vm3777_vm9, %v3774_v55, %v3776_v53  ;;  %v5965_v55 = vld [vmem:[%s7961_s7 + $0xa0] sm:$0xff] }
 0x5e4   :  { %v3786_v57 = vmax.f32 %v3763_v47, %v3779_v56  ;;  %5928 = vmatprep.mubr.msk.f32.mxu0 %vm3735_vm8, %v3787_v54  ;;  %v5958_v47 = vld [vmem:[%s7961_s7 + $0x88] sm:$0xff]  ;;  %v5991_v54 = vld [vmem:[%s7961_s7 + $0x110] sm:$0xff]  ;;  %v5992_v56 = vld [vmem:[%s7961_s7 + $0x118] sm:$0xff] }
 0x5e6   :  { %3888 = vmatmul.mubr.f32.gmra.mxu0 %v3786_v57  ;;  %v6005_v57 = vld [vmem:[%s7961_s7 + $0x140] sm:$0xff] }
 0x5e7   :  { %6284 = vmatprep.mubr.msk.f32.mxu0 %vm3915_vm11, %v5973_v1  ;;  %v6007_v1 = vld [vmem:[%s7961_s7 + $0x150] sm:$0xff] }
 0x6a2   :  { %v3884_v58 = vpop.f32.mrf.mxu0 }
 0x6a3   :  { %3894 = vst.msk [vmem:[#allocation5] sm:$0xff] %vm3893_vm10, %v3884_v58 }
 0x6a4   :  { %v3886_v59 = vpop.f32.mrf.mxu0 }
 0x6a5   :  { %v5966_v59 = vld [vmem:[%s7961_s7 + $0xa8] sm:$0xff] }
 0x6a6   :  { %v3889_v61 = vpop.f32.mrf.mxu0 }
 0x6a7   :  { %3895 = vst.msk [vmem:[#allocation5 + $0x8] sm:$0xff] %vm3893_vm10, %v3889_v61  ;;  %v6006_v61 = vld [vmem:[%s7961_s7 + $0x148] sm:$0xff] }
 0x6a8   :  { %v3891_v62 = vpop.f32.mrf.mxu0 }
 0x6aa   :  { %v7588_v0 = vld [vmem:[#allocation5] sm:$0xff] }
 0x6ab   :  { %3909 = vrot.lane.b32.xlu0 %v7588_v0, %s6476_s3 }
 0x6ae   :  { %v7591_v63 = vld [vmem:[#allocation5 + $0x8] sm:$0xff] }
 0x6af   :  { %4115 = vrot.lane.b32.xlu0 %v7588_v0, %s6477_s14  ;;  %3911 = vrot.lane.b32.xlu1 %v7591_v63, %s6476_s3 }
 0x6b3   :  { %4227 = vrot.lane.b32.xlu0 %v7588_v0, %s6467_s2  ;;  %4117 = vrot.lane.b32.xlu1 %v7591_v63, %s6477_s14 }
 0x6b7   :  { %4339 = vrot.lane.b32.xlu0 %v7588_v0, %s6478_s16  ;;  %4229 = vrot.lane.b32.xlu1 %v7591_v63, %s6467_s2  ;;  %s6480_s2 = smov 108  }
 0x6bb   :  { %4451 = vrot.lane.b32.xlu0 %v7588_v0, %s6475_s12  ;;  %4341 = vrot.lane.b32.xlu1 %v7591_v63, %s6478_s16 }
 0x6bf   :  { %4563 = vrot.lane.b32.xlu0 %v7588_v0, %s6479_s17  ;;  %4453 = vrot.lane.b32.xlu1 %v7591_v63, %s6475_s12 }
 0x6c3   :  { %4675 = vrot.lane.b32.xlu0 %v7588_v0, %s6454_s23  ;;  %4565 = vrot.lane.b32.xlu1 %v7591_v63, %s6479_s17 }
 0x6c7   :  { %4787 = vrot.lane.b32.xlu0 %v7588_v0, %s6470_s15  ;;  %4677 = vrot.lane.b32.xlu1 %v7591_v63, %s6454_s23  ;;  %s6483_s23 = smov 100  }
 0x6cb   :  { %4899 = vrot.lane.b32.xlu0 %v7588_v0, %s6466_s0  ;;  %4789 = vrot.lane.b32.xlu1 %v7591_v63, %s6470_s15 }
 0x6cf   :  { %5011 = vrot.lane.b32.xlu0 %v7588_v0, %s6480_s2  ;;  %4901 = vrot.lane.b32.xlu1 %v7591_v63, %s6466_s0  ;;  %s6484_s0 = smov 98  }
 0x6d3   :  { %5123 = vrot.lane.b32.xlu0 %v7588_v0, %s6481_s20  ;;  %5013 = vrot.lane.b32.xlu1 %v7591_v63, %s6480_s2 }
 0x6d7   :  { %5235 = vrot.lane.b32.xlu0 %v7588_v0, %s6482_s21  ;;  %5125 = vrot.lane.b32.xlu1 %v7591_v63, %s6481_s20 }
 0x6db   :  { %5347 = vrot.lane.b32.xlu0 %v7588_v0, %s6473_s18  ;;  %5237 = vrot.lane.b32.xlu1 %v7591_v63, %s6482_s21 }
 0x6df   :  { %5459 = vrot.lane.b32.xlu0 %v7588_v0, %s6483_s23  ;;  %5349 = vrot.lane.b32.xlu1 %v7591_v63, %s6473_s18 }
 0x6e3   :  { %5571 = vrot.lane.b32.xlu0 %v7588_v0, %s6484_s0  ;;  %5461 = vrot.lane.b32.xlu1 %v7591_v63, %s6483_s23 }
 0x6e7   :  { %5694 = vperm.xlu0 %6423, %v5680_v2   ;;  %5573 = vrot.lane.b32.xlu1 %v7591_v63, %s6484_s0  ;;  %v5981_v2 = vld [vmem:[%s7961_s7 + $0xe0] sm:$0xff] }
 0x6eb   :  { %5684 = vperm.xlu0 %6423, %v5678_v4   ;;  %5699 = vperm.xlu1 %6449, %v5681_v5   ;;  %v6008_v4 = vld [vmem:[%s7961_s7 + $0x158] sm:$0xff] }
 0x6ef   :  { %5721 = vperm.xlu0 %6423, %v5713_v6   ;;  %5689 = vperm.xlu1 %6449, %v5679_v7   ;;  %v6021_v6 = vld [vmem:[%s7961_s7 + $0x180] sm:$0xff] }
 0x6f3   :  { %5716 = vperm.xlu1 %6449, %v5712_v8   ;;  %v5982_v8 = vld [vmem:[%s7961_s7 + $0xe8] sm:$0xff] }
 0x71d   :  { %v3910_v9 = vpop.permute.xlu0 %3909 }
 0x721   :  { %v3912_v10 = vpop.permute.xlu1 %3911  ;;  %v4116_v11 = vpop.permute.xlu0 %4115 }
 0x722   :  { %6220 = vmatprep.subr.mxu1 %v3912_v10 }
 0x723   :  { %6221 = vmatpush3.msra.mxu1 %v3912_v10  ;;  %v6022_v10 = vld [vmem:[%s7961_s7 + $0x188] sm:$0xff] }
 0x724   :  { %6222 = vmatprep.subr.mxu1 %v3910_v9 }
 0x725   :  { %v4118_v22 = vpop.permute.xlu1 %4117  ;;  %6223 = vmatpush3.msra.mxu1 %v3910_v9  ;;  %v4228_v23 = vpop.permute.xlu0 %4227  ;;  %v5983_v9 = vld [vmem:[%s7961_s7 + $0xf0] sm:$0xff] }
 0x726   :  { %6225 = vmatmul.mubr.msk.f32.vlgmr.msra.gmra.mxu1 %vm3915_vm11, %v5930_v12  ;;  %6230 = vmatprep.subr.mxu1 %v7591_v63 }
 0x727   :  { %6231 = vmatpush3.msra.mxu1 %v7591_v63  ;;  %6227 = vmatprep.mubr.msk.f32.mxu1 %vm3915_vm11, %v5931_v13  ;;  %v5968_v63 = vld [vmem:[%s7961_s7 + $0xb8] sm:$0xff]  ;;  %v5997_v13 = vld [vmem:[%s7961_s7 + $0x120] sm:$0xff] }
 0x728   :  { %6232 = vmatprep.subr.mxu1 %v7588_v0 }
 0x729   :  { %v4230_v29 = vpop.permute.xlu1 %4229  ;;  %6233 = vmatpush3.msra.mxu1 %v7588_v0  ;;  %v4340_v30 = vpop.permute.xlu0 %4339 }
 0x72a   :  { %6228 = vmatmul.mubr.msk.f32.gmra.mxu1 %vm3915_vm11, %v5932_v20  ;;  %6240 = vmatprep.subr.mxu1 %v4118_v22  ;;  %v6037_v20 = vld [vmem:[%s7961_s7 + $0x1c0] sm:$0xff] }
 0x72b   :  { %6234 = vmatprep.mubr.msk.f32.mxu1 %vm3915_vm11, %v3896_v27  ;;  %v5998_v27 = vld [vmem:[%s7961_s7 + $0x128] sm:$0xff] }
 0x72d   :  { %v4342_v25 = vpop.permute.xlu1 %4341  ;;  %v7682_v33 = vpop.permute.xlu0 %4451 }
 0x72e   :  { %6235 = vmatmul.mubr.msk.f32.vlgmr.msra.gmra.mxu1 %vm3915_vm11, %v3897_v14  ;;  %v6039_v14 = vld [vmem:[%s7961_s7 + $0x1d0] sm:$0xff] }
 0x72f   :  { %6241 = vmatpush3.msra.mxu1 %v4118_v22  ;;  %6237 = vmatprep.mubr.msk.f32.mxu1 %vm3915_vm11, %v3898_v15  ;;  %v6023_v22 = vld [vmem:[%s7961_s7 + $0x190] sm:$0xff]  ;;  %v6000_v15 = vld [vmem:[%s7961_s7 + $0x138] sm:$0xff] }
 0x730   :  { %6242 = vmatprep.subr.mxu1 %v4116_v11 }
 0x731   :  { %6243 = vmatpush3.msra.mxu1 %v4116_v11  ;;  %v4454_v28 = vpop.permute.xlu1 %4453  ;;  %v4564_v31 = vpop.permute.xlu0 %4563  ;;  %v5984_v11 = vld [vmem:[%s7961_s7 + $0xf8] sm:$0xff] }
 0x732   :  { %6250 = vmatprep.subr.mxu1 %v4230_v29  ;;  %6238 = vmatmul.mubr.msk.f32.gmra.mxu1 %vm3915_vm11, %v3899_v16  ;;  %v6014_v16 = vld [vmem:[%s7961_s7 + $0x168] sm:$0xff] }
 0x733   :  { %6244 = vmatprep.mubr.msk.f32.mxu1 %vm3915_vm11, %v5941_v17  ;;  %v6015_v17 = vld [vmem:[%s7961_s7 + $0x170] sm:$0xff] }
 0x735   :  { %v4566_v19 = vpop.permute.xlu1 %4565  ;;  %v7697_v21 = vpop.permute.xlu0 %4675 }
 0x736   :  { %6245 = vmatmul.mubr.msk.f32.vlgmr.msra.gmra.mxu1 %vm3915_vm11, %v5942_v18  ;;  %6280 = vmatprep.subr.mxu0 %v4566_v19 }
 0x737   :  { %6251 = vmatpush3.msra.mxu1 %v4230_v29  ;;  %6281 = vmatpush3.msra.mxu0 %v4566_v19  ;;  %v5999_v29 = vld [vmem:[%s7961_s7 + $0x130] sm:$0xff]  ;;  %v6030_v19 = vld [vmem:[%s7961_s7 + $0x1a8] sm:$0xff] }
 0x738   :  { %6252 = vmatprep.subr.mxu1 %v4228_v23  ;;  %6282 = vmatprep.subr.mxu0 %v4564_v31 }
 0x739   :  { %6253 = vmatpush3.msra.mxu1 %v4228_v23  ;;  %v7709_v34 = vpop.permute.xlu1 %4677  ;;  %6247 = vmatprep.mubr.msk.f32.mxu1 %vm3915_vm11, %v5943_v24  ;;  %v4788_v35 = vpop.permute.xlu0 %4787  ;;  %v6024_v23 = vld [vmem:[%s7961_s7 + $0x198] sm:$0xff] }
 0x73a   :  { %6260 = vmatprep.subr.mxu1 %v4342_v25  ;;  %6283 = vmatpush3.msra.mxu0 %v4564_v31  ;;  %v6029_v31 = vld [vmem:[%s7961_s7 + $0x1a0] sm:$0xff] }
 0x73b   :  { %6248 = vmatmul.mubr.msk.f32.gmra.mxu1 %vm3915_vm11, %v5944_v26  ;;  %6285 = vmatmul.mubr.msk.f32.vlgmr.msra.gmra.mxu0 %vm3915_vm11, %v5974_v32  ;;  %v6032_v26 = vld [vmem:[%s7961_s7 + $0x1b8] sm:$0xff]  ;;  %v6045_v32 = vld [vmem:[%s7961_s7 + $0x1e0] sm:$0xff] }
 0x73c   :  { %6254 = vmatprep.mubr.msk.f32.mxu1 %vm3915_vm11, %v5949_v36  ;;  %6287 = vmatprep.mubr.msk.f32.mxu0 %vm3915_vm11, %v5975_v37  ;;  %v6048_v36 = vld [vmem:[%s7961_s7 + $0x1f8] sm:$0xff]  ;;  %v5710_v37 = vld [vmem:[%s7964_s9] sm:$0xff] }
 0x73d   :  { %v4790_v39 = vpop.permute.xlu1 %4789  ;;  %v7725_v40 = vpop.permute.xlu0 %4899 }
 0x73e   :  { %6300 = vmatprep.subr.mxu0 %v4790_v39 }
 0x73f   :  { %6255 = vmatmul.mubr.msk.f32.vlgmr.msra.gmra.mxu1 %vm3915_vm11, %v5950_v38  ;;  %6301 = vmatpush3.msra.mxu0 %v4790_v39 }
 0x740   :  { %6261 = vmatpush3.msra.mxu1 %v4342_v25  ;;  %6302 = vmatprep.subr.mxu0 %v4788_v35  ;;  %v6013_v25 = vld [vmem:[%s7961_s7 + $0x160] sm:$0xff] }
 0x741   :  { %6262 = vmatprep.subr.mxu1 %v4340_v30  ;;  %v7734_v43 = vpop.permute.xlu1 %4901  ;;  %6257 = vmatprep.mubr.msk.f32.mxu1 %vm3915_vm11, %v5951_v41  ;;  %v5012_v3 = vpop.permute.xlu0 %5011 }
 0x742   :  { %6263 = vmatpush3.msra.mxu1 %v4340_v30  ;;  %6303 = vmatpush3.msra.mxu0 %v4788_v35  ;;  %v6038_v30 = vld [vmem:[%s7961_s7 + $0x1c8] sm:$0xff]  ;;  %v6047_v35 = vld [vmem:[%s7961_s7 + $0x1f0] sm:$0xff] }
 0x743   :  { %6270 = vmatprep.subr.mxu1 %v4454_v28  ;;  %6258 = vmatmul.mubr.msk.f32.gmra.mxu1 %vm3915_vm11, %v5952_v42 }
 0x744   :  { %6288 = vmatmul.mubr.msk.f32.gmra.mxu0 %vm3915_vm11, %v5976_v44  ;;  %6264 = vmatprep.mubr.msk.f32.mxu1 %vm3915_vm11, %v5957_v45 }
 0x745   :  { %v5014_v48 = vpop.permute.xlu1 %5013  ;;  %6304 = vmatprep.mubr.msk.f32.mxu0 %vm3915_vm11, %v5989_v46  ;;  %v7767_v53 = vpop.permute.xlu0 %5123 }
 0x746   :  { %6320 = vmatprep.subr.mxu0 %v5014_v48 }
 0x747   :  { %6265 = vmatmul.mubr.msk.f32.vlgmr.msra.gmra.mxu1 %vm3915_vm11, %v5958_v47 }
 0x748   :  { %6271 = vmatpush3.msra.mxu1 %v4454_v28  ;;  %6305 = vmatmul.mubr.msk.f32.vlgmr.msra.gmra.mxu0 %vm3915_vm11, %v5990_v49  ;;  %v6016_v28 = vld [vmem:[%s7961_s7 + $0x178] sm:$0xff] }
 0x749   :  { %6272 = vmatprep.subr.mxu1 %v7682_v33  ;;  %6321 = vmatpush3.msra.mxu0 %v5014_v48  ;;  %v7762_v51 = vpop.permute.xlu1 %5125  ;;  %v5236_v62 = vpop.permute.xlu0 %5235 }
 0x74a   :  { %6273 = vmatpush3.msra.mxu1 %v7682_v33  ;;  %6322 = vmatprep.subr.mxu0 %v5012_v3  ;;  %v6040_v33 = vld [vmem:[%s7961_s7 + $0x1d8] sm:$0xff] }
 0x74b   :  { %6267 = vmatprep.mubr.msk.f32.mxu1 %vm3915_vm11, %v5959_v50  ;;  %6290 = vmatprep.subr.mxu1 %v7709_v34 }
 0x74c   :  { %6323 = vmatpush3.msra.mxu0 %v5012_v3  ;;  %6268 = vmatmul.mubr.msk.f32.gmra.mxu1 %vm3915_vm11, %v5960_v52 }
 0x74d   :  { %6307 = vmatprep.mubr.msk.f32.mxu0 %vm3915_vm11, %v5991_v54  ;;  %v5238_v58 = vpop.permute.xlu1 %5237  ;;  %6274 = vmatprep.mubr.msk.f32.mxu1 %vm3915_vm11, %v5965_v55  ;;  %v5348_v7 = vpop.permute.xlu0 %5347 }
 0x74e   :  { %6308 = vmatmul.mubr.msk.f32.gmra.mxu0 %vm3915_vm11, %v5992_v56  ;;  %6340 = vmatprep.subr.mxu0 %v5238_v58 }
 0x74f   :  { %6324 = vmatprep.mubr.msk.f32.mxu0 %vm3915_vm11, %v6005_v57 }
 0x750   :  { %6275 = vmatmul.mubr.msk.f32.vlgmr.msra.gmra.mxu1 %vm3915_vm11, %v5966_v59 }
 0x751   :  { %6291 = vmatpush3.msra.mxu1 %v7709_v34  ;;  %v7800_v0 = vpop.permute.xlu1 %5349  ;;  %6277 = vmatprep.mubr.msk.f32.mxu1 %vm3915_vm11, %v5967_v60  ;;  %v5460_v12 = vpop.permute.xlu0 %5459  ;;  %v6046_v34 = vld [vmem:[%s7961_s7 + $0x1e8] sm:$0xff] }
 0x752   :  { %6292 = vmatprep.subr.mxu1 %v7697_v21  ;;  %6325 = vmatmul.mubr.msk.f32.vlgmr.msra.gmra.mxu0 %vm3915_vm11, %v6006_v61 }
 0x753   :  { %6341 = vmatpush3.msra.mxu0 %v5238_v58  ;;  %6293 = vmatpush3.msra.mxu1 %v7697_v21  ;;  %v6031_v21 = vld [vmem:[%s7961_s7 + $0x1b0] sm:$0xff] }
 0x754   :  { %6342 = vmatprep.subr.mxu0 %v5236_v62  ;;  %6310 = vmatprep.subr.mxu1 %v7734_v43 }
 0x755   :  { %6343 = vmatpush3.msra.mxu0 %v5236_v62  ;;  %6278 = vmatmul.mubr.msk.f32.gmra.mxu1 %vm3915_vm11, %v5968_v63  ;;  %v5462_v5 = vpop.permute.xlu1 %5461  ;;  %v5572_v24 = vpop.permute.xlu0 %5571 }
 0x756   :  { %6327 = vmatprep.mubr.msk.f32.mxu0 %vm3915_vm11, %v6007_v1  ;;  %6294 = vmatprep.mubr.msk.f32.mxu1 %vm3915_vm11, %v5981_v2 }
 0x757   :  { %6328 = vmatmul.mubr.msk.f32.gmra.mxu0 %vm3915_vm11, %v6008_v4  ;;  %6360 = vmatprep.subr.mxu0 %v5462_v5 }
 0x758   :  { %6344 = vmatprep.mubr.msk.f32.mxu0 %vm3915_vm11, %v6021_v6 }
 0x759   :  { %6295 = vmatmul.mubr.msk.f32.vlgmr.msra.gmra.mxu1 %vm3915_vm11, %v5982_v8  ;;  %v5574_v18 = vpop.permute.xlu1 %5573 }
 0x75a   :  { %6311 = vmatpush3.msra.mxu1 %v7734_v43  ;;  %6297 = vmatprep.mubr.msk.f32.mxu1 %vm3915_vm11, %v5983_v9 }
 0x75b   :  { %6312 = vmatprep.subr.mxu1 %v7725_v40  ;;  %6345 = vmatmul.mubr.msk.f32.vlgmr.msra.gmra.mxu0 %vm3915_vm11, %v6022_v10 }
 0x75c   :  { %6361 = vmatpush3.msra.mxu0 %v5462_v5  ;;  %6313 = vmatpush3.msra.mxu1 %v7725_v40 }
 0x75d   :  { %6362 = vmatprep.subr.mxu0 %v5460_v12  ;;  %6330 = vmatprep.subr.mxu1 %v7762_v51 }
 0x75e   :  { %6363 = vmatpush3.msra.mxu0 %v5460_v12  ;;  %6298 = vmatmul.mubr.msk.f32.gmra.mxu1 %vm3915_vm11, %v5984_v11 }
 0x75f   :  { %6314 = vmatprep.mubr.msk.f32.mxu1 %vm3915_vm11, %v5997_v13  ;;  %6347 = vmatprep.mubr.msk.f32.mxu0 %vm3915_vm11, %v6023_v22 }
 0x760   :  { %6348 = vmatmul.mubr.msk.f32.gmra.mxu0 %vm3915_vm11, %v6024_v23 }
 0x761   :  { %6364 = vmatprep.mubr.msk.f32.mxu0 %vm3915_vm11, %v6037_v20 }
 0x762   :  { %6315 = vmatmul.mubr.msk.f32.vlgmr.msra.gmra.mxu1 %vm3915_vm11, %v5998_v27 }
 0x763   :  { %6331 = vmatpush3.msra.mxu1 %v7762_v51  ;;  %6317 = vmatprep.mubr.msk.f32.mxu1 %vm3915_vm11, %v5999_v29 }
 0x764   :  { %6332 = vmatprep.subr.mxu1 %v7767_v53  ;;  %6365 = vmatmul.mubr.msk.f32.vlgmr.msra.gmra.mxu0 %vm3915_vm11, %v6038_v30 }
 0x765   :  { %6333 = vmatpush3.msra.mxu1 %v7767_v53  ;;  %6367 = vmatprep.mubr.msk.f32.mxu0 %vm3915_vm11, %v6039_v14 }
 0x766   :  { %6350 = vmatprep.subr.mxu1 %v7800_v0  ;;  %6318 = vmatmul.mubr.msk.f32.gmra.mxu1 %vm3915_vm11, %v6000_v15 }
 0x767   :  { %6334 = vmatprep.mubr.msk.f32.mxu1 %vm3915_vm11, %v6013_v25 }
 0x768   :  { %6368 = vmatmul.mubr.msk.f32.gmra.mxu0 %vm3915_vm11, %v6040_v33 }
 0x769   :  { %6388 = vmatprep.mubr.msk.f32.mxu0 %vm3893_vm10, %v5710_v37 }
 0x76a   :  { %6335 = vmatmul.mubr.msk.f32.vlgmr.msra.gmra.mxu1 %vm3915_vm11, %v6014_v16 }
 0x76b   :  { %6351 = vmatpush3.msra.mxu1 %v7800_v0  ;;  %6337 = vmatprep.mubr.msk.f32.mxu1 %vm3915_vm11, %v6015_v17 }
 0x76c   :  { %6352 = vmatprep.subr.mxu1 %v5348_v7 }
 0x76d   :  { %6353 = vmatpush3.msra.mxu1 %v5348_v7 }
 0x76e   :  { %6370 = vmatprep.subr.mxu1 %v5574_v18  ;;  %6338 = vmatmul.mubr.msk.f32.gmra.mxu1 %vm3915_vm11, %v6016_v28 }
 0x76f   :  { %6354 = vmatprep.mubr.msk.f32.mxu1 %vm3915_vm11, %v6029_v31 }
 0x772   :  { %6355 = vmatmul.mubr.msk.f32.vlgmr.msra.gmra.mxu1 %vm3915_vm11, %v6030_v19 }
 0x773   :  { %6371 = vmatpush3.msra.mxu1 %v5574_v18  ;;  %6357 = vmatprep.mubr.msk.f32.mxu1 %vm3915_vm11, %v6031_v21 }
 0x774   :  { %6372 = vmatprep.subr.mxu1 %v5572_v24 }
 0x775   :  { %6373 = vmatpush3.msra.mxu1 %v5572_v24 }
 0x776   :  { %6358 = vmatmul.mubr.msk.f32.gmra.mxu1 %vm3915_vm11, %v6032_v26 }
 0x777   :  { %6374 = vmatprep.mubr.msk.f32.mxu1 %vm3915_vm11, %v6045_v32 }
 0x77a   :  { %6375 = vmatmul.mubr.msk.f32.vlgmr.msra.gmra.mxu1 %vm3915_vm11, %v6046_v34 }
 0x77b   :  { %6377 = vmatprep.mubr.msk.f32.mxu1 %vm3915_vm11, %v6047_v35 }
 0x77e   :  { %6378 = vmatmul.mubr.msk.f32.gmra.mxu1 %vm3915_vm11, %v6048_v36 }
 0x7e6   :  { %v6226_v38 = vpop.f32.mrf.mxu1 }
 0x7e8   :  { %v3994_v39 = vpop.f32.mrf.mxu1 }
 0x7ea   :  { %v6229_v40 = vpop.f32.mrf.mxu1 }
 0x7ec   :  { %v4004_v41 = vpop.f32.mrf.mxu1 }
 0x7ee   :  { %v6236_v42 = vpop.f32.mrf.mxu1 }
 0x7ef   :  { %v4097_v9 = vadd.f32 %v6236_v42, %v6226_v38 }
 0x7f0   :  { %v4091_v43 = vpop.f32.mrf.mxu1 }
 0x7f1   :  { %v4092_v12 = vadd.f32 %v4091_v43, %v3994_v39 }
 0x7f2   :  { %v6239_v44 = vpop.f32.mrf.mxu1 }
 0x7f3   :  { %v4107_v10 = vadd.f32 %v6239_v44, %v6229_v40 }
 0x7f4   :  { %v4101_v45 = vpop.f32.mrf.mxu1 }
 0x7f5   :  { %v4102_v13 = vadd.f32 %v4101_v45, %v4004_v41 }
 0x7f6   :  { %v6246_v46 = vpop.f32.mrf.mxu1 }
 0x7f7   :  { %v4219_v22 = vadd.f32 %v6246_v46, %v4097_v9 }
 0x7f8   :  { %v4199_v3 = vpop.f32.mrf.mxu1 }
 0x7f9   :  { %v4218_v29 = vadd.f32 %v4199_v3, %v4092_v12 }
 0x7fb   :  { %v6249_v47 = vpop.f32.mrf.mxu1  ;;  %v6286_v48 = vpop.f32.mrf.mxu0 }
 0x7fc   :  { %v4221_v23 = vadd.f32 %v6249_v47, %v4107_v10 }
 0x7fd   :  { %v4209_v49 = vpop.f32.mrf.mxu1  ;;  %v4647_v51 = vpop.f32.mrf.mxu0 }
 0x7fe   :  { %v4220_v30 = vadd.f32 %v4209_v49, %v4102_v13 }
 0x7ff   :  { %v6256_v50 = vpop.f32.mrf.mxu1 }
 0x800   :  { %v4331_v14 = vadd.f32 %v6256_v50, %v4219_v22 }
 0x801   :  { %v4311_v52 = vpop.f32.mrf.mxu1 }
 0x802   :  { %v4330_v33 = vadd.f32 %v4311_v52, %v4218_v29 }
 0x803   :  { %v6259_v53 = vpop.f32.mrf.mxu1 }
 0x804   :  { %v6289_v54 = vpop.f32.mrf.mxu0  ;;  %v4333_v15 = vadd.f32 %v6259_v53, %v4221_v23 }
 0x805   :  { %v4321_v55 = vpop.f32.mrf.mxu1 }
 0x806   :  { %v4657_v56 = vpop.f32.mrf.mxu0  ;;  %v4332_v16 = vadd.f32 %v4321_v55, %v4220_v30 }
 0x807   :  { %v6266_v57 = vpop.f32.mrf.mxu1 }
 0x808   :  { %v6306_v58 = vpop.f32.mrf.mxu0  ;;  %v4443_v17 = vadd.f32 %v6266_v57, %v4331_v14 }
 0x809   :  { %v4423_v59 = vpop.f32.mrf.mxu1 }
 0x80a   :  { %v4871_v60 = vpop.f32.mrf.mxu0  ;;  %v4442_v19 = vadd.f32 %v4423_v59, %v4330_v33 }
 0x80c   :  { %v6269_v61 = vpop.f32.mrf.mxu1 }
 0x80d   :  { %v4445_v28 = vadd.f32 %v6269_v61, %v4333_v15 }
 0x80e   :  { %v4433_v62 = vpop.f32.mrf.mxu1  ;;  %v6309_v0 = vpop.f32.mrf.mxu0 }
 0x80f   :  { %v4444_v21 = vadd.f32 %v4433_v62, %v4332_v16 }
 0x810   :  { %v6276_v63 = vpop.f32.mrf.mxu1  ;;  %v4881_v1 = vpop.f32.mrf.mxu0 }
 0x811   :  { %v4555_v24 = vadd.f32 %v6276_v63, %v4443_v17 }
 0x812   :  { %v4535_v2 = vpop.f32.mrf.mxu1  ;;  %v6326_v4 = vpop.f32.mrf.mxu0 }
 0x813   :  { %v4554_v34 = vadd.f32 %v4535_v2, %v4442_v19  ;;  %v4667_v38 = vadd.f32 %v6286_v48, %v4555_v24 }
 0x814   :  { %v5095_v5 = vpop.f32.mrf.mxu0 }
 0x815   :  { %v6279_v6 = vpop.f32.mrf.mxu1  ;;  %v4666_v41 = vadd.f32 %v4647_v51, %v4554_v34 }
 0x816   :  { %v4557_v26 = vadd.f32 %v6279_v6, %v4445_v28 }
 0x817   :  { %v4545_v7 = vpop.f32.mrf.mxu1  ;;  %v6329_v8 = vpop.f32.mrf.mxu0 }
 0x818   :  { %v4556_v35 = vadd.f32 %v4545_v7, %v4444_v21  ;;  %v4669_v39 = vadd.f32 %v6289_v54, %v4557_v26 }
 0x819   :  { %v6296_v11 = vpop.f32.mrf.mxu1  ;;  %v5105_v27 = vpop.f32.mrf.mxu0 }
 0x81a   :  { %v4668_v42 = vadd.f32 %v4657_v56, %v4556_v35  ;;  %v4779_v43 = vadd.f32 %v6296_v11, %v4667_v38 }
 0x81b   :  { %v4759_v20 = vpop.f32.mrf.mxu1  ;;  %v6346_v18 = vpop.f32.mrf.mxu0 }
 0x81c   :  { %v4778_v3 = vadd.f32 %v4759_v20, %v4666_v41  ;;  %v4891_v50 = vadd.f32 %v6306_v58, %v4779_v43 }
 0x81d   :  { %v5319_v37 = vpop.f32.mrf.mxu0 }
 0x81e   :  { %v6299_v25 = vpop.f32.mrf.mxu1  ;;  %v4890_v57 = vadd.f32 %v4871_v60, %v4778_v3 }
 0x81f   :  { %v4781_v44 = vadd.f32 %v6299_v25, %v4669_v39 }
 0x820   :  { %v4769_v31 = vpop.f32.mrf.mxu1  ;;  %v6349_v46 = vpop.f32.mrf.mxu0 }
 0x821   :  { %v4780_v47 = vadd.f32 %v4769_v31, %v4668_v42  ;;  %v4893_v52 = vadd.f32 %v6309_v0, %v4781_v44  ;;  %v5695_v31 = vpop.permute.xlu0 %5694 }
 0x822   :  { %v6316_v32 = vpop.f32.mrf.mxu1  ;;  %v5329_v55 = vpop.f32.mrf.mxu0 }
 0x823   :  { %v4892_v59 = vadd.f32 %v4881_v1, %v4780_v47  ;;  %v5003_v61 = vadd.f32 %v6316_v32, %v4891_v50 }
 0x824   :  { %v4983_v36 = vpop.f32.mrf.mxu1  ;;  %v6366_v56 = vpop.f32.mrf.mxu0 }
 0x825   :  { %v5002_v54 = vadd.f32 %v4983_v36, %v4890_v57  ;;  %v5115_v2 = vadd.f32 %v6326_v4, %v5003_v61  ;;  %v5685_v41 = vpop.permute.xlu0 %5684 }
 0x826   :  { %v6319_v40 = vpop.f32.mrf.mxu1  ;;  %v5543_v0 = vpop.f32.mrf.mxu0 }
 0x827   :  { %v5005_v62 = vadd.f32 %v6319_v40, %v4893_v52  ;;  %v5114_v9 = vadd.f32 %v5095_v5, %v5002_v54 }
 0x828   :  { %v4993_v45 = vpop.f32.mrf.mxu1  ;;  %v6369_v29 = vpop.f32.mrf.mxu0 }
 0x829   :  { %v5004_v63 = vadd.f32 %v4993_v45, %v4892_v59  ;;  %v5117_v6 = vadd.f32 %v6329_v8, %v5005_v62  ;;  %v5700_v8 = vpop.permute.xlu1 %5699  ;;  %v5722_v3 = vpop.permute.xlu0 %5721 }
 0x82a   :  { %v6336_v49 = vpop.f32.mrf.mxu1 }
 0x82b   :  { %v5116_v10 = vadd.f32 %v5105_v27, %v5004_v63  ;;  %v5227_v11 = vadd.f32 %v6336_v49, %v5115_v2  ;;  %v5553_v27 = vpop.f32.mrf.mxu0 }
 0x82c   :  { %v5207_v53 = vpop.f32.mrf.mxu1 }
 0x82d   :  { %v5226_v13 = vadd.f32 %v5207_v53, %v5114_v9  ;;  %v5339_v1 = vadd.f32 %v6346_v18, %v5227_v11 }
 0x82e   :  { %v6339_v48 = vpop.f32.mrf.mxu1 }
 0x82f   :  { %v5229_v12 = vadd.f32 %v6339_v48, %v5117_v6  ;;  %v5338_v30 = vadd.f32 %v5319_v37, %v5226_v13  ;;  %v5690_v37 = vpop.permute.xlu1 %5689 }
 0x830   :  { %v5217_v51 = vpop.f32.mrf.mxu1 }
 0x831   :  { %v5228_v22 = vadd.f32 %v5217_v51, %v5116_v10  ;;  %v5341_v23 = vadd.f32 %v6349_v46, %v5229_v12  ;;  %v5711_v46 = vld [vmem:[%s7964_s9 + $0x8] sm:$0x3] }
 0x832   :  { %v6356_v7 = vpop.f32.mrf.mxu1 }
 0x833   :  { %v5340_v14 = vadd.f32 %v5329_v55, %v5228_v22  ;;  %v5451_v15 = vadd.f32 %v6356_v7, %v5339_v1  ;;  %v5717_v50 = vpop.permute.xlu1 %5716 }
 0x834   :  { %v5431_v58 = vpop.f32.mrf.mxu1 }
 0x835   :  { %v5450_v33 = vadd.f32 %v5431_v58, %v5338_v30  ;;  %v5563_v17 = vadd.f32 %v6366_v56, %v5451_v15 }
 0x836   :  { %v6359_v60 = vpop.f32.mrf.mxu1 }
 0x837   :  { %v5453_v25 = vadd.f32 %v6359_v60, %v5341_v23  ;;  %v5562_v21 = vadd.f32 %v5543_v0, %v5450_v33 }
 0x838   :  { %v5441_v20 = vpop.f32.mrf.mxu1 }
 0x839   :  { %v5452_v5 = vadd.f32 %v5441_v20, %v5340_v14  ;;  %v5565_v28 = vadd.f32 %v6369_v29, %v5453_v25 }
 0x83a   :  { %v6376_v4 = vpop.f32.mrf.mxu1 }
 0x83b   :  { %v5564_v24 = vadd.f32 %v5553_v27, %v5452_v5  ;;  %v5675_v18 = vadd.f32 %v6376_v4, %v5563_v17 }
 0x83c   :  { %v5655_v16 = vpop.f32.mrf.mxu1 }
 0x83d   :  { %v5674_v34 = vadd.f32 %v5655_v16, %v5562_v21  ;;  %v5703_v38 = vadd.f32 %v5690_v37, %v5675_v18 }
 0x83e   :  { %v6379_v19 = vpop.f32.mrf.mxu1 }
 0x83f   :  { %v5677_v26 = vadd.f32 %v6379_v19, %v5565_v28  ;;  %v5702_v42 = vadd.f32 %v5685_v41, %v5674_v34  ;;  %v5707_v44 = vmax.f32 %v5703_v38, 0.0 }
 0x840   :  { %v5665_v32 = vpop.f32.mrf.mxu1 }
 0x841   :  { %v5705_v35 = vadd.f32 %v5700_v8, %v5677_v26  ;;  %v5676_v36 = vadd.f32 %v5665_v32, %v5564_v24  ;;  %v5706_v45 = vmax.f32 %v5702_v42, 0.0 }
 0x843   :  { %v5709_v39 = vmax.f32 %v5705_v35, 0.0  ;;  %v5704_v40 = vadd.f32 %v5695_v31, %v5676_v36 }
 0x845   :  { %v5708_v43 = vmax.f32 %v5704_v40, 0.0  ;;  %6380 = vmatprep.subr.mxu0 %v5709_v39 }
 0x846   :  { %6381 = vmatpush3.msra.mxu0 %v5709_v39 }
 0x847   :  { %6382 = vmatprep.subr.mxu0 %v5708_v43 }
 0x848   :  { %6383 = vmatpush3.msra.mxu0 %v5708_v43 }
 0x849   :  { %6384 = vmatprep.subr.mxu0 %v5707_v44 }
 0x84a   :  { %6385 = vmatpush3.msra.mxu0 %v5707_v44 }
 0x84b   :  { %6386 = vmatprep.subr.mxu0 %v5706_v45 }
 0x84c   :  { %6387 = vmatpush3.msra.mxu0 %v5706_v45 }
 0x84d   :  { %6389 = vmatmul.mubr.msk.f32.vlgmr.msra.gmra.mxu0 %vm3893_vm10, %v5711_v46 }
 0x90d   :  { %v6390_v47 = vpop.f32.mrf.mxu0 }
 0x90e   :  { %v5802_v49 = vadd.f32 %v6390_v47, %v5722_v3 }
 0x90f   :  { %v5796_v52 = vpop.f32.mrf.mxu0 }
 0x910   :  { %5808 = vst.msk [vmem:[%s7965_s11 + $0x8] sm:$0x3] %vm5807_vm12, %v5802_v49  ;;  %v5797_v53 = vadd.f32 %v5796_v52, %v5717_v50 }
 0x912   :  { %5806 = vst.msk [vmem:[%s7965_s11] sm:$0xff] %vm5805_vm13, %v5797_v53 }

</bundles_post_ra>
